<compile_context>
chip_gen: v5e
topology: v5e:2x2
jax: 0.10.0
libtpu: 0.0.40
codegen_flags: <defaults>
</compile_context>

<pallas_src>
import functools

import jax
import jax.numpy as jnp
from jax.experimental import pallas as pl
from jax.experimental.pallas import tpu as pltpu

EMBEDDING_DIM = 128
BLOCK_SIZE = 64
NUM_HEADS = 4
HEAD_SIZE = EMBEDDING_DIM // NUM_HEADS
LN_EPS = 1e-5
NEG_MASK = -1e30  # large finite negative instead of -inf


def _layer_norm(v, gamma, beta):
    mu = jnp.mean(v, axis=-1, keepdims=True)
    var = jnp.mean((v - mu) ** 2, axis=-1, keepdims=True)
    return (v - mu) * jax.lax.rsqrt(var + LN_EPS) * gamma + beta


def transformer_block_kernel(
    x_ref,
    ln1g_ref, ln1b_ref,
    wq_ref, wk_ref, wv_ref,
    wp_ref, bp_ref,
    ln2g_ref, ln2b_ref,
    w1_ref, b1_ref, w2_ref, b2_ref,
    o_ref,
    attn_scratch,          # (bblk*T, E) bf16 VMEM scratch for merged head outputs
    *, bblk, seq_len,
):
    T = seq_len
    E = EMBEDDING_DIM
    M = bblk * T

    # (bblk, T, E) -> (M, E): leading-dim merge, vreg-aligned (T multiple of 8).
    x = x_ref[...].reshape(M, E)                                   # f32

    # ---- LayerNorm 1 (f32) -------------------------------------------------
    xn = _layer_norm(x, ln1g_ref[...], ln1b_ref[...])
    xn_bf = xn.astype(jnp.bfloat16)

    # ---- QKV projections: bf16 MXU inputs, f32 accumulation -----------------
    # (1/sqrt(hs) is already folded into wq by the wrapper.)
    q = jnp.dot(xn_bf, wq_ref[...], preferred_element_type=jnp.float32)
    k = jnp.dot(xn_bf, wk_ref[...], preferred_element_type=jnp.float32)
    v = jnp.dot(xn_bf, wv_ref[...], preferred_element_type=jnp.float32)
    q = q.astype(jnp.bfloat16)
    k = k.astype(jnp.bfloat16)
    v = v.astype(jnp.bfloat16)

    # Additive causal mask, one (T, T) f32 constant shared by all heads/batches.
    row = jax.lax.broadcasted_iota(jnp.int32, (T, T), 0)
    col = jax.lax.broadcasted_iota(jnp.int32, (T, T), 1)
    neg = jnp.where(row >= col, jnp.float32(0.0), jnp.float32(NEG_MASK))

    # ---- causal multi-head self-attention -----------------------------------
    for h in range(NUM_HEADS):                     # static unroll over heads
        sl = slice(h * HEAD_SIZE, (h + 1) * HEAD_SIZE)
        # (M, hs) -> (bblk, T, hs): leading-dim split, vreg-aligned (T % 8 == 0).
        qh = q[:, sl].reshape(bblk, T, HEAD_SIZE)
        kh = k[:, sl].reshape(bblk, T, HEAD_SIZE)
        vh = v[:, sl].reshape(bblk, T, HEAD_SIZE)

        wei = jnp.einsum("bqd,bkd->bqk", qh, kh,
                         preferred_element_type=jnp.float32) + neg[None]
        wei = wei - jnp.max(wei, axis=-1, keepdims=True)
        p = jnp.exp(wei)
        p = p * pl.reciprocal(jnp.sum(p, axis=-1, keepdims=True), approx=True)

        oh = jnp.einsum("bqk,bkd->bqd", p.astype(jnp.bfloat16), vh,
                        preferred_element_type=jnp.float32)
        # Write this head's output into its static column slice (no lane concat).
        attn_scratch[:, sl] = oh.reshape(M, HEAD_SIZE).astype(jnp.bfloat16)

    attn = jnp.dot(attn_scratch[...], wp_ref[...],
                   preferred_element_type=jnp.float32) + bp_ref[...]
    x1 = x + attn

    # ---- LayerNorm 2 + feed-forward ------------------------------------------
    xn2 = _layer_norm(x1, ln2g_ref[...], ln2b_ref[...]).astype(jnp.bfloat16)
    h1 = jnp.dot(xn2, w1_ref[...], preferred_element_type=jnp.float32) + b1_ref[...]
    h1 = jnp.maximum(h1, 0.0).astype(jnp.bfloat16)
    ff = jnp.dot(h1, w2_ref[...], preferred_element_type=jnp.float32) + b2_ref[...]

    o_ref[...] = (x1 + ff).reshape(bblk, T, E)


def prepare_params(params):
    """Fold the attention scale into wq and cast matmul weights to bf16 (once)."""
    (ln1g, ln1b, wq, wk, wv, wp, bp, ln2g, ln2b, w1, b1, w2, b2) = params
    scale = 1.0 / (HEAD_SIZE ** 0.5)
    bf = lambda a: a.astype(jnp.bfloat16)
    return (ln1g, ln1b,
            bf(wq * scale), bf(wk), bf(wv), bf(wp), bp,
            ln2g, ln2b,
            bf(w1), b1, bf(w2), b2)


def _tensorcores_per_chip():
    try:
        kind = jax.devices()[0].device_kind.lower()
    except Exception:
        return 1
    return 2 if "7" in kind else 1


def _cost_estimate(B, T, E):
    H, hs = NUM_HEADS, HEAD_SIZE
    matmul_flops = 2 * B * T * (3 * E * E + E * E + 2 * E * 4 * E)  # qkv+proj+ffn
    attn_flops = 2 * B * H * T * T * hs * 2                          # scores + PV
    transcendentals = B * H * T * T                                  # exp
    weight_bytes = 2 * (3 * E * E + E * E + 2 * 4 * E * E)           # bf16 weights
    act_bytes = 4 * 2 * B * T * E                                    # x in + out (f32)
    return pl.CostEstimate(flops=matmul_flops + attn_flops,
                           transcendentals=transcendentals,
                           bytes_accessed=weight_bytes + act_bytes)


def transformer_block(x, params):
    """x: (B, T, E) float32. params: raw f32 params (same layout as reference)."""
    B, T, E = x.shape
    prepped = prepare_params(params)

    # 1-TC chips (v5e/v6e): fuse the batch -> one (B*T, E) slab, M=128 fills MXU.
    # 2-TC chips (v7x): keep a parallel batch axis so both TensorCores get work.
    n_cores = _tensorcores_per_chip()
    steps = n_cores if (n_cores > 1 and B % n_cores == 0) else 1
    bblk = B // steps

    kernel = functools.partial(transformer_block_kernel, bblk=bblk, seq_len=T)
    x_spec = pl.BlockSpec((bblk, T, E), lambda i: (i, 0, 0))
    w_spec = lambda p: pl.BlockSpec(p.shape, lambda i: (0, 0))

    return pl.pallas_call(
        kernel,
        out_shape=jax.ShapeDtypeStruct((B, T, E), jnp.float32),
        grid_spec=pltpu.PrefetchScalarGridSpec(
            num_scalar_prefetch=0,
            grid=(steps,),
            in_specs=[x_spec] + [w_spec(p) for p in prepped],
            out_specs=pl.BlockSpec((bblk, T, E), lambda i: (i, 0, 0)),
            scratch_shapes=[pltpu.VMEM((bblk * T, E), jnp.bfloat16)],
        ),
        compiler_params=pltpu.CompilerParams(
            dimension_semantics=("parallel",),
        ),
        cost_estimate=_cost_estimate(B, T, E),
    )(x, *prepped)


def reference_block(x, params):
    """Pure-JAX f32 reference mirroring the PyTorch forward (eval mode)."""
    (ln1g, ln1b, wq, wk, wv, wp, bp, ln2g, ln2b, w1, b1, w2, b2) = params
    T = x.shape[1]
    xn = _layer_norm(x, ln1g, ln1b)
    q = xn @ wq
    k = xn @ wk
    v = xn @ wv

    def split(a):  # (B, T, E) -> (B, H, T, hs)
        B, T, _ = a.shape
        return a.reshape(B, T, NUM_HEADS, HEAD_SIZE).transpose(0, 2, 1, 3)

    qh, kh, vh = split(q), split(k), split(v)
    wei = jnp.einsum("bhqd,bhkd->bhqk", qh, kh) * (HEAD_SIZE ** -0.5)
    mask = jnp.tril(jnp.ones((T, T), dtype=bool))
    wei = jnp.where(mask, wei, -jnp.inf)
    wei = jax.nn.softmax(wei, axis=-1)
    out = jnp.einsum("bhqk,bhkd->bhqd", wei, vh)
    out = out.transpose(0, 2, 1, 3).reshape(x.shape)
    attn = out @ wp + bp
    x1 = x + attn
    xn2 = _layer_norm(x1, ln2g, ln2b)
    ff = jnp.maximum(xn2 @ w1 + b1, 0.0) @ w2 + b2
    return x1 + ff


def make_params(key):
    E = EMBEDDING_DIM
    ks = jax.random.split(key, 8)
    n = lambda k, shape: (0.02 * jax.random.normal(k, shape)).astype(jnp.float32)
    ln1g = jnp.ones((1, E), jnp.float32)
    ln1b = jnp.zeros((1, E), jnp.float32)
    wq = n(ks[0], (E, E))
    wk = n(ks[1], (E, E))
    wv = n(ks[2], (E, E))
    wp = n(ks[3], (E, E))
    bp = n(ks[4], (1, E))
    ln2g = jnp.ones((1, E), jnp.float32)
    ln2b = jnp.zeros((1, E), jnp.float32)
    w1 = n(ks[5], (E, 4 * E))
    b1 = n(ks[6], (1, 4 * E))
    w2 = n(ks[7], (4 * E, E))
    b2 = jnp.zeros((1, E), jnp.float32)
    return (ln1g, ln1b, wq, wk, wv, wp, bp, ln2g, ln2b, w1, b1, w2, b2)


if __name__ == "__main__":
    key = jax.random.PRNGKey(0)
    k_x, k_p = jax.random.split(key)

    B, T, E = 2, BLOCK_SIZE, EMBEDDING_DIM      # T = 64 <= BLOCK_SIZE
    x = jax.random.normal(k_x, (B, T, E), dtype=jnp.float32)
    params = make_params(k_p)

    out = jax.block_until_ready(transformer_block(x, params))
    ref = jax.block_until_ready(reference_block(x, params))

    assert out.shape == (B, T, E)
    max_diff = float(jnp.max(jnp.abs(out - ref)))
    assert jnp.allclose(out, ref, atol=2e-2, rtol=2e-2), f"max abs diff {max_diff}"
    print("KERNEL_OK")
</pallas_src>

<mosaic_0001>
module attributes {stable_mosaic.version = 11 : i64} {
  func.func @transformer_block_kernel(%arg0: i32, %arg1: memref<2x64x128xf32, #tpu.memory_space<vmem>>, %arg2: memref<1x128xf32, #tpu.memory_space<vmem>>, %arg3: memref<1x128xf32, #tpu.memory_space<vmem>>, %arg4: memref<128x128xbf16, #tpu.memory_space<vmem>>, %arg5: memref<128x128xbf16, #tpu.memory_space<vmem>>, %arg6: memref<128x128xbf16, #tpu.memory_space<vmem>>, %arg7: memref<128x128xbf16, #tpu.memory_space<vmem>>, %arg8: memref<1x128xf32, #tpu.memory_space<vmem>>, %arg9: memref<1x128xf32, #tpu.memory_space<vmem>>, %arg10: memref<1x128xf32, #tpu.memory_space<vmem>>, %arg11: memref<128x512xbf16, #tpu.memory_space<vmem>>, %arg12: memref<1x512xf32, #tpu.memory_space<vmem>>, %arg13: memref<512x128xbf16, #tpu.memory_space<vmem>>, %arg14: memref<1x128xf32, #tpu.memory_space<vmem>>, %arg15: memref<2x64x128xf32, #tpu.memory_space<vmem>>, %arg16: memref<128x128xbf16, #tpu.memory_space<vmem>>) attributes {dimension_semantics = [#tpu.dimension_semantics<parallel>], iteration_bounds = array<i64: 1>, scalar_prefetch = 0 : i64, scratch_operands = 1 : i64, tpu.core_type = #tpu.core_type<tc>, window_params = [{transform_indices = @transform_0, window_bounds = array<i64: 2, 64, 128>}, {pipeline_mode = #tpu.pipeline_mode<synchronous>, transform_indices = @transform_1, window_bounds = array<i64: 1, 128>}, {pipeline_mode = #tpu.pipeline_mode<synchronous>, transform_indices = @transform_2, window_bounds = array<i64: 1, 128>}, {pipeline_mode = #tpu.pipeline_mode<synchronous>, transform_indices = @transform_3, window_bounds = array<i64: 128, 128>}, {pipeline_mode = #tpu.pipeline_mode<synchronous>, transform_indices = @transform_4, window_bounds = array<i64: 128, 128>}, {pipeline_mode = #tpu.pipeline_mode<synchronous>, transform_indices = @transform_5, window_bounds = array<i64: 128, 128>}, {pipeline_mode = #tpu.pipeline_mode<synchronous>, transform_indices = @transform_6, window_bounds = array<i64: 128, 128>}, {pipeline_mode = #tpu.pipeline_mode<synchronous>, transform_indices = @transform_7, window_bounds = array<i64: 1, 128>}, {pipeline_mode = #tpu.pipeline_mode<synchronous>, transform_indices = @transform_8, window_bounds = array<i64: 1, 128>}, {pipeline_mode = #tpu.pipeline_mode<synchronous>, transform_indices = @transform_9, window_bounds = array<i64: 1, 128>}, {pipeline_mode = #tpu.pipeline_mode<synchronous>, transform_indices = @transform_10, window_bounds = array<i64: 128, 512>}, {pipeline_mode = #tpu.pipeline_mode<synchronous>, transform_indices = @transform_11, window_bounds = array<i64: 1, 512>}, {pipeline_mode = #tpu.pipeline_mode<synchronous>, transform_indices = @transform_12, window_bounds = array<i64: 512, 128>}, {pipeline_mode = #tpu.pipeline_mode<synchronous>, transform_indices = @transform_13, window_bounds = array<i64: 1, 128>}, {transform_indices = @transform_14, window_bounds = array<i64: 2, 64, 128>}]} {
    %c0 = arith.constant 0 : index
    %c0_0 = arith.constant 0 : index
    %c0_1 = arith.constant 0 : index
    %0 = vector.load %arg1[%c0, %c0_0, %c0_1] : memref<2x64x128xf32, #tpu.memory_space<vmem>>, vector<2x64x128xf32>
    %1 = vector.shape_cast %0 : vector<2x64x128xf32> to vector<128x128xf32>
    %c0_2 = arith.constant 0 : index
    %c0_3 = arith.constant 0 : index
    %2 = vector.load %arg2[%c0_2, %c0_3] : memref<1x128xf32, #tpu.memory_space<vmem>>, vector<1x128xf32>
    %c0_4 = arith.constant 0 : index
    %c0_5 = arith.constant 0 : index
    %3 = vector.load %arg3[%c0_4, %c0_5] : memref<1x128xf32, #tpu.memory_space<vmem>>, vector<1x128xf32>
    %cst = arith.constant dense<0.000000e+00> : vector<128xf32>
    %4 = vector.multi_reduction <add>, %1, %cst [1] : vector<128x128xf32> to vector<128xf32>
    %5 = vector.shape_cast %4 : vector<128xf32> to vector<128x1xf32>
    %cst_6 = arith.constant 1.280000e+02 : f32
    %6 = vector.broadcast %cst_6 : f32 to vector<128x1xf32>
    %7 = arith.divf %5, %6 : vector<128x1xf32>
    %8 = vector.broadcast %7 : vector<128x1xf32> to vector<128x128xf32>
    %9 = arith.subf %1, %8 : vector<128x128xf32>
    %10 = arith.mulf %9, %9 : vector<128x128xf32>
    %cst_7 = arith.constant dense<0.000000e+00> : vector<128xf32>
    %11 = vector.multi_reduction <add>, %10, %cst_7 [1] : vector<128x128xf32> to vector<128xf32>
    %12 = vector.shape_cast %11 : vector<128xf32> to vector<128x1xf32>
    %cst_8 = arith.constant 1.280000e+02 : f32
    %13 = vector.broadcast %cst_8 : f32 to vector<128x1xf32>
    %14 = arith.divf %12, %13 : vector<128x1xf32>
    %15 = vector.broadcast %7 : vector<128x1xf32> to vector<128x128xf32>
    %16 = arith.subf %1, %15 : vector<128x128xf32>
    %cst_9 = arith.constant 9.99999974E-6 : f32
    %17 = vector.broadcast %cst_9 : f32 to vector<128x1xf32>
    %18 = arith.addf %14, %17 : vector<128x1xf32>
    %19 = math.rsqrt %18 : vector<128x1xf32>
    %20 = vector.broadcast %19 : vector<128x1xf32> to vector<128x128xf32>
    %21 = arith.mulf %16, %20 : vector<128x128xf32>
    %22 = vector.broadcast %2 : vector<1x128xf32> to vector<128x128xf32>
    %23 = arith.mulf %21, %22 : vector<128x128xf32>
    %24 = vector.broadcast %3 : vector<1x128xf32> to vector<128x128xf32>
    %25 = arith.addf %23, %24 : vector<128x128xf32>
    %26 = arith.truncf %25 : vector<128x128xf32> to vector<128x128xbf16>
    %c0_10 = arith.constant 0 : index
    %c0_11 = arith.constant 0 : index
    %27 = vector.load %arg4[%c0_10, %c0_11] : memref<128x128xbf16, #tpu.memory_space<vmem>>, vector<128x128xbf16>
    %cst_12 = arith.constant dense<0.000000e+00> : vector<128x128xf32>
    %28 = tpu.matmul %26, %27, %cst_12 {dimension_numbers = #tpu.dot_dimension_numbers<[1], [0], [0], [1], [0, 0, 1, 1], [], []>} : vector<128x128xbf16>, vector<128x128xbf16>, vector<128x128xf32> -> vector<128x128xf32>
    %c0_13 = arith.constant 0 : index
    %c0_14 = arith.constant 0 : index
    %29 = vector.load %arg5[%c0_13, %c0_14] : memref<128x128xbf16, #tpu.memory_space<vmem>>, vector<128x128xbf16>
    %cst_15 = arith.constant dense<0.000000e+00> : vector<128x128xf32>
    %30 = tpu.matmul %26, %29, %cst_15 {dimension_numbers = #tpu.dot_dimension_numbers<[1], [0], [0], [1], [0, 0, 1, 1], [], []>} : vector<128x128xbf16>, vector<128x128xbf16>, vector<128x128xf32> -> vector<128x128xf32>
    %c0_16 = arith.constant 0 : index
    %c0_17 = arith.constant 0 : index
    %31 = vector.load %arg6[%c0_16, %c0_17] : memref<128x128xbf16, #tpu.memory_space<vmem>>, vector<128x128xbf16>
    %cst_18 = arith.constant dense<0.000000e+00> : vector<128x128xf32>
    %32 = tpu.matmul %26, %31, %cst_18 {dimension_numbers = #tpu.dot_dimension_numbers<[1], [0], [0], [1], [0, 0, 1, 1], [], []>} : vector<128x128xbf16>, vector<128x128xbf16>, vector<128x128xf32> -> vector<128x128xf32>
    %33 = arith.truncf %28 : vector<128x128xf32> to vector<128x128xbf16>
    %34 = arith.truncf %30 : vector<128x128xf32> to vector<128x128xbf16>
    %35 = arith.truncf %32 : vector<128x128xf32> to vector<128x128xbf16>
    %36 = tpu.iota {dimensions = array<i32: 0>} : vector<64x64xi32>
    %37 = tpu.iota {dimensions = array<i32: 1>} : vector<64x64xi32>
    %38 = arith.cmpi sge, %36, %37 : vector<64x64xi32>
    %cst_19 = arith.constant 0.000000e+00 : f32
    %cst_20 = arith.constant -1.000000e+30 : f32
    %39 = vector.broadcast %cst_19 : f32 to vector<64x64xf32>
    %40 = vector.broadcast %cst_20 : f32 to vector<64x64xf32>
    %41 = arith.select %38, %39, %40 : vector<64x64xi1>, vector<64x64xf32>
    %42 = vector.extract_strided_slice %33 {offsets = [0, 0], sizes = [128, 32], strides = [1, 1]} : vector<128x128xbf16> to vector<128x32xbf16>
    %43 = vector.shape_cast %42 : vector<128x32xbf16> to vector<2x64x32xbf16>
    %44 = vector.extract_strided_slice %34 {offsets = [0, 0], sizes = [128, 32], strides = [1, 1]} : vector<128x128xbf16> to vector<128x32xbf16>
    %45 = vector.shape_cast %44 : vector<128x32xbf16> to vector<2x64x32xbf16>
    %46 = vector.extract_strided_slice %35 {offsets = [0, 0], sizes = [128, 32], strides = [1, 1]} : vector<128x128xbf16> to vector<128x32xbf16>
    %47 = vector.shape_cast %46 : vector<128x32xbf16> to vector<2x64x32xbf16>
    "tpu.trace_start"() <{level = 10 : i32, message = "bqd,bkd->bqk"}> : () -> ()
    %cst_21 = arith.constant dense<0.000000e+00> : vector<2x64x64xf32>
    %48 = tpu.matmul %43, %45, %cst_21 {dimension_numbers = #tpu.dot_dimension_numbers<[2], [2], [1], [1], [0, 0, 0, 1, 1, 1], [0], [0]>} : vector<2x64x32xbf16>, vector<2x64x32xbf16>, vector<2x64x64xf32> -> vector<2x64x64xf32>
    "tpu.trace_stop"() : () -> ()
    %49 = vector.shape_cast %41 : vector<64x64xf32> to vector<1x64x64xf32>
    %50 = vector.broadcast %49 : vector<1x64x64xf32> to vector<2x64x64xf32>
    %51 = arith.addf %48, %50 : vector<2x64x64xf32>
    %cst_22 = arith.constant dense<0xFF800000> : vector<2x64xf32>
    %52 = vector.multi_reduction <maximumf>, %51, %cst_22 [2] : vector<2x64x64xf32> to vector<2x64xf32>
    %53 = vector.shape_cast %52 : vector<2x64xf32> to vector<2x64x1xf32>
    %54 = vector.broadcast %53 : vector<2x64x1xf32> to vector<2x64x64xf32>
    %55 = arith.subf %51, %54 : vector<2x64x64xf32>
    %56 = math.exp %55 : vector<2x64x64xf32>
    %cst_23 = arith.constant dense<0.000000e+00> : vector<2x64xf32>
    %57 = vector.multi_reduction <add>, %56, %cst_23 [2] : vector<2x64x64xf32> to vector<2x64xf32>
    %58 = vector.shape_cast %57 : vector<2x64xf32> to vector<2x64x1xf32>
    %59 = tpu.reciprocal %58 {approx = true} : vector<2x64x1xf32> -> vector<2x64x1xf32>
    %60 = vector.broadcast %59 : vector<2x64x1xf32> to vector<2x64x64xf32>
    %61 = arith.mulf %56, %60 : vector<2x64x64xf32>
    %62 = arith.truncf %61 : vector<2x64x64xf32> to vector<2x64x64xbf16>
    "tpu.trace_start"() <{level = 10 : i32, message = "bqk,bkd->bqd"}> : () -> ()
    %cst_24 = arith.constant dense<0.000000e+00> : vector<2x64x32xf32>
    %63 = tpu.matmul %62, %47, %cst_24 {dimension_numbers = #tpu.dot_dimension_numbers<[2], [1], [1], [2], [0, 0, 0, 1, 1, 2], [0], [0]>} : vector<2x64x64xbf16>, vector<2x64x32xbf16>, vector<2x64x32xf32> -> vector<2x64x32xf32>
    "tpu.trace_stop"() : () -> ()
    %64 = vector.shape_cast %63 : vector<2x64x32xf32> to vector<128x32xf32>
    %65 = arith.truncf %64 : vector<128x32xf32> to vector<128x32xbf16>
    %c0_25 = arith.constant 0 : index
    %c0_26 = arith.constant 0 : index
    %66 = vector.load %arg16[%c0_25, %c0_26] : memref<128x128xbf16, #tpu.memory_space<vmem>>, vector<128x32xbf16>
    tpu.vector_store %arg16[%c0_25, %c0_26], %65 {strides = array<i32>} : memref<128x128xbf16, #tpu.memory_space<vmem>>, vector<128x32xbf16>,
    %67 = vector.extract_strided_slice %33 {offsets = [0, 32], sizes = [128, 32], strides = [1, 1]} : vector<128x128xbf16> to vector<128x32xbf16>
    %68 = vector.shape_cast %67 : vector<128x32xbf16> to vector<2x64x32xbf16>
    %69 = vector.extract_strided_slice %34 {offsets = [0, 32], sizes = [128, 32], strides = [1, 1]} : vector<128x128xbf16> to vector<128x32xbf16>
    %70 = vector.shape_cast %69 : vector<128x32xbf16> to vector<2x64x32xbf16>
    %71 = vector.extract_strided_slice %35 {offsets = [0, 32], sizes = [128, 32], strides = [1, 1]} : vector<128x128xbf16> to vector<128x32xbf16>
    %72 = vector.shape_cast %71 : vector<128x32xbf16> to vector<2x64x32xbf16>
    "tpu.trace_start"() <{level = 10 : i32, message = "bqd,bkd->bqk"}> : () -> ()
    %cst_27 = arith.constant dense<0.000000e+00> : vector<2x64x64xf32>
    %73 = tpu.matmul %68, %70, %cst_27 {dimension_numbers = #tpu.dot_dimension_numbers<[2], [2], [1], [1], [0, 0, 0, 1, 1, 1], [0], [0]>} : vector<2x64x32xbf16>, vector<2x64x32xbf16>, vector<2x64x64xf32> -> vector<2x64x64xf32>
    "tpu.trace_stop"() : () -> ()
    %74 = vector.shape_cast %41 : vector<64x64xf32> to vector<1x64x64xf32>
    %75 = vector.broadcast %74 : vector<1x64x64xf32> to vector<2x64x64xf32>
    %76 = arith.addf %73, %75 : vector<2x64x64xf32>
    %cst_28 = arith.constant dense<0xFF800000> : vector<2x64xf32>
    %77 = vector.multi_reduction <maximumf>, %76, %cst_28 [2] : vector<2x64x64xf32> to vector<2x64xf32>
    %78 = vector.shape_cast %77 : vector<2x64xf32> to vector<2x64x1xf32>
    %79 = vector.broadcast %78 : vector<2x64x1xf32> to vector<2x64x64xf32>
    %80 = arith.subf %76, %79 : vector<2x64x64xf32>
    %81 = math.exp %80 : vector<2x64x64xf32>
    %cst_29 = arith.constant dense<0.000000e+00> : vector<2x64xf32>
    %82 = vector.multi_reduction <add>, %81, %cst_29 [2] : vector<2x64x64xf32> to vector<2x64xf32>
    %83 = vector.shape_cast %82 : vector<2x64xf32> to vector<2x64x1xf32>
    %84 = tpu.reciprocal %83 {approx = true} : vector<2x64x1xf32> -> vector<2x64x1xf32>
    %85 = vector.broadcast %84 : vector<2x64x1xf32> to vector<2x64x64xf32>
    %86 = arith.mulf %81, %85 : vector<2x64x64xf32>
    %87 = arith.truncf %86 : vector<2x64x64xf32> to vector<2x64x64xbf16>
    "tpu.trace_start"() <{level = 10 : i32, message = "bqk,bkd->bqd"}> : () -> ()
    %cst_30 = arith.constant dense<0.000000e+00> : vector<2x64x32xf32>
    %88 = tpu.matmul %87, %72, %cst_30 {dimension_numbers = #tpu.dot_dimension_numbers<[2], [1], [1], [2], [0, 0, 0, 1, 1, 2], [0], [0]>} : vector<2x64x64xbf16>, vector<2x64x32xbf16>, vector<2x64x32xf32> -> vector<2x64x32xf32>
    "tpu.trace_stop"() : () -> ()
    %89 = vector.shape_cast %88 : vector<2x64x32xf32> to vector<128x32xf32>
    %90 = arith.truncf %89 : vector<128x32xf32> to vector<128x32xbf16>
    %c0_31 = arith.constant 0 : index
    %c32 = arith.constant 32 : index
    %91 = vector.load %arg16[%c0_31, %c32] : memref<128x128xbf16, #tpu.memory_space<vmem>>, vector<128x32xbf16>
    tpu.vector_store %arg16[%c0_31, %c32], %90 {strides = array<i32>} : memref<128x128xbf16, #tpu.memory_space<vmem>>, vector<128x32xbf16>,
    %92 = vector.extract_strided_slice %33 {offsets = [0, 64], sizes = [128, 32], strides = [1, 1]} : vector<128x128xbf16> to vector<128x32xbf16>
    %93 = vector.shape_cast %92 : vector<128x32xbf16> to vector<2x64x32xbf16>
    %94 = vector.extract_strided_slice %34 {offsets = [0, 64], sizes = [128, 32], strides = [1, 1]} : vector<128x128xbf16> to vector<128x32xbf16>
    %95 = vector.shape_cast %94 : vector<128x32xbf16> to vector<2x64x32xbf16>
    %96 = vector.extract_strided_slice %35 {offsets = [0, 64], sizes = [128, 32], strides = [1, 1]} : vector<128x128xbf16> to vector<128x32xbf16>
    %97 = vector.shape_cast %96 : vector<128x32xbf16> to vector<2x64x32xbf16>
    "tpu.trace_start"() <{level = 10 : i32, message = "bqd,bkd->bqk"}> : () -> ()
    %cst_32 = arith.constant dense<0.000000e+00> : vector<2x64x64xf32>
    %98 = tpu.matmul %93, %95, %cst_32 {dimension_numbers = #tpu.dot_dimension_numbers<[2], [2], [1], [1], [0, 0, 0, 1, 1, 1], [0], [0]>} : vector<2x64x32xbf16>, vector<2x64x32xbf16>, vector<2x64x64xf32> -> vector<2x64x64xf32>
    "tpu.trace_stop"() : () -> ()
    %99 = vector.shape_cast %41 : vector<64x64xf32> to vector<1x64x64xf32>
    %100 = vector.broadcast %99 : vector<1x64x64xf32> to vector<2x64x64xf32>
    %101 = arith.addf %98, %100 : vector<2x64x64xf32>
    %cst_33 = arith.constant dense<0xFF800000> : vector<2x64xf32>
    %102 = vector.multi_reduction <maximumf>, %101, %cst_33 [2] : vector<2x64x64xf32> to vector<2x64xf32>
    %103 = vector.shape_cast %102 : vector<2x64xf32> to vector<2x64x1xf32>
    %104 = vector.broadcast %103 : vector<2x64x1xf32> to vector<2x64x64xf32>
    %105 = arith.subf %101, %104 : vector<2x64x64xf32>
    %106 = math.exp %105 : vector<2x64x64xf32>
    %cst_34 = arith.constant dense<0.000000e+00> : vector<2x64xf32>
    %107 = vector.multi_reduction <add>, %106, %cst_34 [2] : vector<2x64x64xf32> to vector<2x64xf32>
    %108 = vector.shape_cast %107 : vector<2x64xf32> to vector<2x64x1xf32>
    %109 = tpu.reciprocal %108 {approx = true} : vector<2x64x1xf32> -> vector<2x64x1xf32>
    %110 = vector.broadcast %109 : vector<2x64x1xf32> to vector<2x64x64xf32>
    %111 = arith.mulf %106, %110 : vector<2x64x64xf32>
    %112 = arith.truncf %111 : vector<2x64x64xf32> to vector<2x64x64xbf16>
    "tpu.trace_start"() <{level = 10 : i32, message = "bqk,bkd->bqd"}> : () -> ()
    %cst_35 = arith.constant dense<0.000000e+00> : vector<2x64x32xf32>
    %113 = tpu.matmul %112, %97, %cst_35 {dimension_numbers = #tpu.dot_dimension_numbers<[2], [1], [1], [2], [0, 0, 0, 1, 1, 2], [0], [0]>} : vector<2x64x64xbf16>, vector<2x64x32xbf16>, vector<2x64x32xf32> -> vector<2x64x32xf32>
    "tpu.trace_stop"() : () -> ()
    %114 = vector.shape_cast %113 : vector<2x64x32xf32> to vector<128x32xf32>
    %115 = arith.truncf %114 : vector<128x32xf32> to vector<128x32xbf16>
    %c0_36 = arith.constant 0 : index
    %c64 = arith.constant 64 : index
    %116 = vector.load %arg16[%c0_36, %c64] : memref<128x128xbf16, #tpu.memory_space<vmem>>, vector<128x32xbf16>
    tpu.vector_store %arg16[%c0_36, %c64], %115 {strides = array<i32>} : memref<128x128xbf16, #tpu.memory_space<vmem>>, vector<128x32xbf16>,
    %117 = vector.extract_strided_slice %33 {offsets = [0, 96], sizes = [128, 32], strides = [1, 1]} : vector<128x128xbf16> to vector<128x32xbf16>
    %118 = vector.shape_cast %117 : vector<128x32xbf16> to vector<2x64x32xbf16>
    %119 = vector.extract_strided_slice %34 {offsets = [0, 96], sizes = [128, 32], strides = [1, 1]} : vector<128x128xbf16> to vector<128x32xbf16>
    %120 = vector.shape_cast %119 : vector<128x32xbf16> to vector<2x64x32xbf16>
    %121 = vector.extract_strided_slice %35 {offsets = [0, 96], sizes = [128, 32], strides = [1, 1]} : vector<128x128xbf16> to vector<128x32xbf16>
    %122 = vector.shape_cast %121 : vector<128x32xbf16> to vector<2x64x32xbf16>
    "tpu.trace_start"() <{level = 10 : i32, message = "bqd,bkd->bqk"}> : () -> ()
    %cst_37 = arith.constant dense<0.000000e+00> : vector<2x64x64xf32>
    %123 = tpu.matmul %118, %120, %cst_37 {dimension_numbers = #tpu.dot_dimension_numbers<[2], [2], [1], [1], [0, 0, 0, 1, 1, 1], [0], [0]>} : vector<2x64x32xbf16>, vector<2x64x32xbf16>, vector<2x64x64xf32> -> vector<2x64x64xf32>
    "tpu.trace_stop"() : () -> ()
    %124 = vector.shape_cast %41 : vector<64x64xf32> to vector<1x64x64xf32>
    %125 = vector.broadcast %124 : vector<1x64x64xf32> to vector<2x64x64xf32>
    %126 = arith.addf %123, %125 : vector<2x64x64xf32>
    %cst_38 = arith.constant dense<0xFF800000> : vector<2x64xf32>
    %127 = vector.multi_reduction <maximumf>, %126, %cst_38 [2] : vector<2x64x64xf32> to vector<2x64xf32>
    %128 = vector.shape_cast %127 : vector<2x64xf32> to vector<2x64x1xf32>
    %129 = vector.broadcast %128 : vector<2x64x1xf32> to vector<2x64x64xf32>
    %130 = arith.subf %126, %129 : vector<2x64x64xf32>
    %131 = math.exp %130 : vector<2x64x64xf32>
    %cst_39 = arith.constant dense<0.000000e+00> : vector<2x64xf32>
    %132 = vector.multi_reduction <add>, %131, %cst_39 [2] : vector<2x64x64xf32> to vector<2x64xf32>
    %133 = vector.shape_cast %132 : vector<2x64xf32> to vector<2x64x1xf32>
    %134 = tpu.reciprocal %133 {approx = true} : vector<2x64x1xf32> -> vector<2x64x1xf32>
    %135 = vector.broadcast %134 : vector<2x64x1xf32> to vector<2x64x64xf32>
    %136 = arith.mulf %131, %135 : vector<2x64x64xf32>
    %137 = arith.truncf %136 : vector<2x64x64xf32> to vector<2x64x64xbf16>
    "tpu.trace_start"() <{level = 10 : i32, message = "bqk,bkd->bqd"}> : () -> ()
    %cst_40 = arith.constant dense<0.000000e+00> : vector<2x64x32xf32>
    %138 = tpu.matmul %137, %122, %cst_40 {dimension_numbers = #tpu.dot_dimension_numbers<[2], [1], [1], [2], [0, 0, 0, 1, 1, 2], [0], [0]>} : vector<2x64x64xbf16>, vector<2x64x32xbf16>, vector<2x64x32xf32> -> vector<2x64x32xf32>
    "tpu.trace_stop"() : () -> ()
    %139 = vector.shape_cast %138 : vector<2x64x32xf32> to vector<128x32xf32>
    %140 = arith.truncf %139 : vector<128x32xf32> to vector<128x32xbf16>
    %c0_41 = arith.constant 0 : index
    %c96 = arith.constant 96 : index
    %141 = vector.load %arg16[%c0_41, %c96] : memref<128x128xbf16, #tpu.memory_space<vmem>>, vector<128x32xbf16>
    tpu.vector_store %arg16[%c0_41, %c96], %140 {strides = array<i32>} : memref<128x128xbf16, #tpu.memory_space<vmem>>, vector<128x32xbf16>,
    %c0_42 = arith.constant 0 : index
    %c0_43 = arith.constant 0 : index
    %142 = vector.load %arg16[%c0_42, %c0_43] : memref<128x128xbf16, #tpu.memory_space<vmem>>, vector<128x128xbf16>
    %c0_44 = arith.constant 0 : index
    %c0_45 = arith.constant 0 : index
    %143 = vector.load %arg7[%c0_44, %c0_45] : memref<128x128xbf16, #tpu.memory_space<vmem>>, vector<128x128xbf16>
    %cst_46 = arith.constant dense<0.000000e+00> : vector<128x128xf32>
    %144 = tpu.matmul %142, %143, %cst_46 {dimension_numbers = #tpu.dot_dimension_numbers<[1], [0], [0], [1], [0, 0, 1, 1], [], []>} : vector<128x128xbf16>, vector<128x128xbf16>, vector<128x128xf32> -> vector<128x128xf32>
    %c0_47 = arith.constant 0 : index
    %c0_48 = arith.constant 0 : index
    %145 = vector.load %arg8[%c0_47, %c0_48] : memref<1x128xf32, #tpu.memory_space<vmem>>, vector<1x128xf32>
    %146 = vector.broadcast %145 : vector<1x128xf32> to vector<128x128xf32>
    %147 = arith.addf %144, %146 : vector<128x128xf32>
    %148 = arith.addf %1, %147 : vector<128x128xf32>
    %c0_49 = arith.constant 0 : index
    %c0_50 = arith.constant 0 : index
    %149 = vector.load %arg9[%c0_49, %c0_50] : memref<1x128xf32, #tpu.memory_space<vmem>>, vector<1x128xf32>
    %c0_51 = arith.constant 0 : index
    %c0_52 = arith.constant 0 : index
    %150 = vector.load %arg10[%c0_51, %c0_52] : memref<1x128xf32, #tpu.memory_space<vmem>>, vector<1x128xf32>
    %cst_53 = arith.constant dense<0.000000e+00> : vector<128xf32>
    %151 = vector.multi_reduction <add>, %148, %cst_53 [1] : vector<128x128xf32> to vector<128xf32>
    %152 = vector.shape_cast %151 : vector<128xf32> to vector<128x1xf32>
    %cst_54 = arith.constant 1.280000e+02 : f32
    %153 = vector.broadcast %cst_54 : f32 to vector<128x1xf32>
    %154 = arith.divf %152, %153 : vector<128x1xf32>
    %155 = vector.broadcast %154 : vector<128x1xf32> to vector<128x128xf32>
    %156 = arith.subf %148, %155 : vector<128x128xf32>
    %157 = arith.mulf %156, %156 : vector<128x128xf32>
    %cst_55 = arith.constant dense<0.000000e+00> : vector<128xf32>
    %158 = vector.multi_reduction <add>, %157, %cst_55 [1] : vector<128x128xf32> to vector<128xf32>
    %159 = vector.shape_cast %158 : vector<128xf32> to vector<128x1xf32>
    %cst_56 = arith.constant 1.280000e+02 : f32
    %160 = vector.broadcast %cst_56 : f32 to vector<128x1xf32>
    %161 = arith.divf %159, %160 : vector<128x1xf32>
    %162 = vector.broadcast %154 : vector<128x1xf32> to vector<128x128xf32>
    %163 = arith.subf %148, %162 : vector<128x128xf32>
    %cst_57 = arith.constant 9.99999974E-6 : f32
    %164 = vector.broadcast %cst_57 : f32 to vector<128x1xf32>
    %165 = arith.addf %161, %164 : vector<128x1xf32>
    %166 = math.rsqrt %165 : vector<128x1xf32>
    %167 = vector.broadcast %166 : vector<128x1xf32> to vector<128x128xf32>
    %168 = arith.mulf %163, %167 : vector<128x128xf32>
    %169 = vector.broadcast %149 : vector<1x128xf32> to vector<128x128xf32>
    %170 = arith.mulf %168, %169 : vector<128x128xf32>
    %171 = vector.broadcast %150 : vector<1x128xf32> to vector<128x128xf32>
    %172 = arith.addf %170, %171 : vector<128x128xf32>
    %173 = arith.truncf %172 : vector<128x128xf32> to vector<128x128xbf16>
    %c0_58 = arith.constant 0 : index
    %c0_59 = arith.constant 0 : index
    %174 = vector.load %arg11[%c0_58, %c0_59] : memref<128x512xbf16, #tpu.memory_space<vmem>>, vector<128x512xbf16>
    %cst_60 = arith.constant dense<0.000000e+00> : vector<128x512xf32>
    %175 = tpu.matmul %173, %174, %cst_60 {dimension_numbers = #tpu.dot_dimension_numbers<[1], [0], [0], [1], [0, 0, 1, 1], [], []>} : vector<128x128xbf16>, vector<128x512xbf16>, vector<128x512xf32> -> vector<128x512xf32>
    %c0_61 = arith.constant 0 : index
    %c0_62 = arith.constant 0 : index
    %176 = vector.load %arg12[%c0_61, %c0_62] : memref<1x512xf32, #tpu.memory_space<vmem>>, vector<1x512xf32>
    %177 = vector.broadcast %176 : vector<1x512xf32> to vector<128x512xf32>
    %178 = arith.addf %175, %177 : vector<128x512xf32>
    %cst_63 = arith.constant 0.000000e+00 : f32
    %179 = vector.broadcast %cst_63 : f32 to vector<128x512xf32>
    %180 = arith.maximumf %178, %179 : vector<128x512xf32>
    %181 = arith.truncf %180 : vector<128x512xf32> to vector<128x512xbf16>
    %c0_64 = arith.constant 0 : index
    %c0_65 = arith.constant 0 : index
    %182 = vector.load %arg13[%c0_64, %c0_65] : memref<512x128xbf16, #tpu.memory_space<vmem>>, vector<512x128xbf16>
    %cst_66 = arith.constant dense<0.000000e+00> : vector<128x128xf32>
    %183 = tpu.matmul %181, %182, %cst_66 {dimension_numbers = #tpu.dot_dimension_numbers<[1], [0], [0], [1], [0, 0, 1, 1], [], []>} : vector<128x512xbf16>, vector<512x128xbf16>, vector<128x128xf32> -> vector<128x128xf32>
    %c0_67 = arith.constant 0 : index
    %c0_68 = arith.constant 0 : index
    %184 = vector.load %arg14[%c0_67, %c0_68] : memref<1x128xf32, #tpu.memory_space<vmem>>, vector<1x128xf32>
    %185 = vector.broadcast %184 : vector<1x128xf32> to vector<128x128xf32>
    %186 = arith.addf %183, %185 : vector<128x128xf32>
    %187 = arith.addf %148, %186 : vector<128x128xf32>
    %188 = vector.shape_cast %187 : vector<128x128xf32> to vector<2x64x128xf32>
    %c0_69 = arith.constant 0 : index
    %c0_70 = arith.constant 0 : index
    %c0_71 = arith.constant 0 : index
    %189 = vector.load %arg15[%c0_69, %c0_70, %c0_71] : memref<2x64x128xf32, #tpu.memory_space<vmem>>, vector<2x64x128xf32>
    tpu.vector_store %arg15[%c0_69, %c0_70, %c0_71], %188 {strides = array<i32>} : memref<2x64x128xf32, #tpu.memory_space<vmem>>, vector<2x64x128xf32>,
    return
  }
  func.func @transform_0(%arg0: i32) -> (i32, i32, i32) {
    %c0_i32 = arith.constant 0 : i32
    %c0_i32_0 = arith.constant 0 : i32
    %c0_i32_1 = arith.constant 0 : i32
    return %arg0, %c0_i32, %c0_i32_0 : i32, i32, i32
  }
  func.func @transform_1(%arg0: i32) -> (i32, i32) {
    %c0_i32 = arith.constant 0 : i32
    %c0_i32_0 = arith.constant 0 : i32
    %c0_i32_1 = arith.constant 0 : i32
    return %c0_i32, %c0_i32_0 : i32, i32
  }
  func.func @transform_2(%arg0: i32) -> (i32, i32) {
    %c0_i32 = arith.constant 0 : i32
    %c0_i32_0 = arith.constant 0 : i32
    %c0_i32_1 = arith.constant 0 : i32
    return %c0_i32, %c0_i32_0 : i32, i32
  }
  func.func @transform_3(%arg0: i32) -> (i32, i32) {
    %c0_i32 = arith.constant 0 : i32
    %c0_i32_0 = arith.constant 0 : i32
    %c0_i32_1 = arith.constant 0 : i32
    return %c0_i32, %c0_i32_0 : i32, i32
  }
  func.func @transform_4(%arg0: i32) -> (i32, i32) {
    %c0_i32 = arith.constant 0 : i32
    %c0_i32_0 = arith.constant 0 : i32
    %c0_i32_1 = arith.constant 0 : i32
    return %c0_i32, %c0_i32_0 : i32, i32
  }
  func.func @transform_5(%arg0: i32) -> (i32, i32) {
    %c0_i32 = arith.constant 0 : i32
    %c0_i32_0 = arith.constant 0 : i32
    %c0_i32_1 = arith.constant 0 : i32
    return %c0_i32, %c0_i32_0 : i32, i32
  }
  func.func @transform_6(%arg0: i32) -> (i32, i32) {
    %c0_i32 = arith.constant 0 : i32
    %c0_i32_0 = arith.constant 0 : i32
    %c0_i32_1 = arith.constant 0 : i32
    return %c0_i32, %c0_i32_0 : i32, i32
  }
  func.func @transform_7(%arg0: i32) -> (i32, i32) {
    %c0_i32 = arith.constant 0 : i32
    %c0_i32_0 = arith.constant 0 : i32
    %c0_i32_1 = arith.constant 0 : i32
    return %c0_i32, %c0_i32_0 : i32, i32
  }
  func.func @transform_8(%arg0: i32) -> (i32, i32) {
    %c0_i32 = arith.constant 0 : i32
    %c0_i32_0 = arith.constant 0 : i32
    %c0_i32_1 = arith.constant 0 : i32
    return %c0_i32, %c0_i32_0 : i32, i32
  }
  func.func @transform_9(%arg0: i32) -> (i32, i32) {
    %c0_i32 = arith.constant 0 : i32
    %c0_i32_0 = arith.constant 0 : i32
    %c0_i32_1 = arith.constant 0 : i32
    return %c0_i32, %c0_i32_0 : i32, i32
  }
  func.func @transform_10(%arg0: i32) -> (i32, i32) {
    %c0_i32 = arith.constant 0 : i32
    %c0_i32_0 = arith.constant 0 : i32
    %c0_i32_1 = arith.constant 0 : i32
    return %c0_i32, %c0_i32_0 : i32, i32
  }
  func.func @transform_11(%arg0: i32) -> (i32, i32) {
    %c0_i32 = arith.constant 0 : i32
    %c0_i32_0 = arith.constant 0 : i32
    %c0_i32_1 = arith.constant 0 : i32
    return %c0_i32, %c0_i32_0 : i32, i32
  }
  func.func @transform_12(%arg0: i32) -> (i32, i32) {
    %c0_i32 = arith.constant 0 : i32
    %c0_i32_0 = arith.constant 0 : i32
    %c0_i32_1 = arith.constant 0 : i32
    return %c0_i32, %c0_i32_0 : i32, i32
  }
  func.func @transform_13(%arg0: i32) -> (i32, i32) {
    %c0_i32 = arith.constant 0 : i32
    %c0_i32_0 = arith.constant 0 : i32
    %c0_i32_1 = arith.constant 0 : i32
    return %c0_i32, %c0_i32_0 : i32, i32
  }
  func.func @transform_14(%arg0: i32) -> (i32, i32, i32) {
    %c0_i32 = arith.constant 0 : i32
    %c0_i32_0 = arith.constant 0 : i32
    %c0_i32_1 = arith.constant 0 : i32
    return %arg0, %c0_i32, %c0_i32_0 : i32, i32, i32
  }
}

</mosaic_0001>

<bundles_post_ra>
// kernel: tpu_custom_call.1
= control target key start
LH: loop header
LB: loop body
LE: loop exit
PB: predicated region body
PF: predicated region fallthrough
CT: control target
= control target key end

     0   :  { %19 = vsyncpa [#allocation4], 0  ;;  %s8362_s0 = inlined_call_operand.hbm [shape: f32[2,64,128], index: 0, kind: input, shape index: {}]   ;;  %s8363_s1 = inlined_call_operand.hbm [shape: f32[1,128], index: 1, kind: input, shape index: {}]   ;;  %s8364_s2 = inlined_call_operand.vmem [shape: f32[1,128], index: 2, kind: input, shape index: {}]   ;;  %s8365_s3 = inlined_call_operand.hbm [shape: bf16[128,128], index: 3, kind: input, shape index: {}]   ;;  %s8366_s4 = inlined_call_operand.hbm [shape: bf16[128,128], index: 4, kind: input, shape index: {}]   ;;  %s8367_s5 = inlined_call_operand.hbm [shape: bf16[128,128], index: 5, kind: input, shape index: {}]   ;;  %s8368_s6 = inlined_call_operand.hbm [shape: bf16[128,128], index: 6, kind: input, shape index: {}]   ;;  %s8369_s7 = inlined_call_operand.vmem [shape: f32[1,128], index: 7, kind: input, shape index: {}]   ;;  %s8370_s8 = inlined_call_operand.vmem [shape: f32[1,128], index: 8, kind: input, shape index: {}]   ;;  %s8371_s9 = inlined_call_operand.vmem [shape: f32[1,128], index: 9, kind: input, shape index: {}]   ;;  %s8372_s10 = inlined_call_operand.hbm [shape: bf16[128,512], index: 10, kind: input, shape index: {}]   ;;  %s8373_s11 = inlined_call_operand.vmem [shape: f32[1,512], index: 11, kind: input, shape index: {}]   ;;  %s8374_s12 = inlined_call_operand.hbm [shape: bf16[512,128], index: 12, kind: input, shape index: {}]   ;;  %s8375_s13 = inlined_call_operand.vmem [shape: f32[1,128], index: 13, kind: input, shape index: {}]   ;;  %s8376_s14 = inlined_call_operand.hbm [shape: f32[2,64,128], index: 14, kind: output, shape index: {}]  }
   0x1   :  { %20 = vsyncpa [#allocation7], 0 }
   0x2   :  { %21 = vsyncpa [#allocation10], 0 }
   0x3   :  { %22 = vsyncpa [#allocation13], 0 }
   0x4   :  { %23 = vsyncpa [#allocation16], 0  ;;  %s43_s15 = sshll.u32 %s8363_s1, 4  ;;  %s44_s15 = int_to_ptr.hbm [resolvable:$true] %s43_s15 }
   0x5   :  { %24 = vsyncpa [#allocation5], 0  ;;  %s6032_s16 = smov [#allocation6]   ;;  %s68_s20 = sshll.u32 %s8366_s4, 4  ;;  %s69_s20 = int_to_ptr.hbm [resolvable:$true] %s68_s20 }
   0x6   :  { %s45_s17 = sshll.u32 %s6032_s16, 4  ;;  %s6033_s21 = smov [#allocation9]   ;;  %s46_s17 = int_to_ptr.vmem [resolvable:$true] %s45_s17 }
   0x7   :  { %48 = dma.hbm_to_vmem [thread:$0]  %s44_s15, 16, %s46_s17, [#allocation7]  }
   0x8   :  { %s70_s22 = sshll.u32 %s6033_s21, 4  ;;  %s94_s25 = sshll.u32 %s8368_s6, 4  ;;  %s71_s22 = int_to_ptr.vmem [resolvable:$true] %s70_s22  ;;  %s95_s25 = int_to_ptr.hbm [resolvable:$true] %s94_s25 }
   0x9   :  { %s6034_s1 = smov 64   ;;  %s6035_s26 = smov 4  }
   0xa   :  { %76 = dma.hbm_to_vmem [thread:$0]  %s69_s20, 1024, %s71_s22, [#allocation10], %s6034_s1, %s6034_s1, %s6035_s26  }
   0xb   :  { %s29_s29 = sshll.u32 %s8362_s0, 4  ;;  %s6036_s4 = smov [#allocation12]   ;;  %s30_s29 = int_to_ptr.hbm [resolvable:$true] %s29_s29 }
   0xc   :  { %s96_s30 = sshll.u32 %s6036_s4, 4  ;;  %s6037_s6 = smov [#allocation3]   ;;  %s97_s30 = int_to_ptr.vmem [resolvable:$true] %s96_s30 }
   0xd   :  { %102 = dma.hbm_to_vmem [thread:$0]  %s95_s25, 1024, %s97_s30, [#allocation13], %s6034_s1, %s6034_s1, %s6035_s26  }
   0xe   :  { %s31_s15 = sshll.u32 %s6037_s6, 4  ;;  %s6038_s16 = smov 128   ;;  %s32_s15 = int_to_ptr.vmem [resolvable:$true] %s31_s15 }
   0xf   :  { %s6039_s17 = smov 8   ;;  %s55_s0 = sshll.u32 %s8365_s3, 4  ;;  %s56_s0 = int_to_ptr.hbm [resolvable:$true] %s55_s0 }
  0x10   :  { %37 = dma.hbm_to_vmem [thread:$0]  %s30_s29, 2048, %s32_s15, [#allocation4], %s6038_s16, %s6038_s16, %s6039_s17  }
  0x11   :  { %s6040_s20 = smov [#allocation8]   ;;  %s81_s24 = sshll.u32 %s8367_s5, 4  ;;  %s82_s24 = int_to_ptr.hbm [resolvable:$true] %s81_s24 }
  0x12   :  { %s57_s21 = sshll.u32 %s6040_s20, 4  ;;  %s6041_s25 = smov [#allocation11]   ;;  %s58_s21 = int_to_ptr.vmem [resolvable:$true] %s57_s21 }
  0x13   :  { %63 = dma.hbm_to_vmem [thread:$0]  %s56_s0, 1024, %s58_s21, [#allocation7], %s6034_s1, %s6034_s1, %s6035_s26  }
  0x14   :  { %s83_s27 = sshll.u32 %s6041_s25, 4  ;;  %s113_s4 = sshll.u32 %s8372_s10, 4  ;;  %s84_s27 = int_to_ptr.vmem [resolvable:$true] %s83_s27  ;;  %s114_s4 = int_to_ptr.hbm [resolvable:$true] %s113_s4 }
  0x15   :  { %89 = dma.hbm_to_vmem [thread:$0]  %s82_s24, 1024, %s84_s27, [#allocation10], %s6034_s1, %s6034_s1, %s6035_s26  }
  0x16   :  { %s6042_s3 = smov [#allocation14]   ;;  %s128_s15 = sshll.u32 %s8374_s12, 4  ;;  %s129_s15 = int_to_ptr.hbm [resolvable:$true] %s128_s15 }
  0x17   :  { %s115_s30 = sshll.u32 %s6042_s3, 4  ;;  %s6043_s18 = smov 256   ;;  %s116_s30 = int_to_ptr.vmem [resolvable:$true] %s115_s30 }
  0x18   :  { %s6044_s19 = smov 16   ;;  %s6045_s0 = smov [#allocation15]  }
  0x19   :  { %121 = dma.hbm_to_vmem [thread:$0]  %s114_s4, 4096, %s116_s30, [#allocation13], %s6043_s18, %s6043_s18, %s6044_s19  }
  0x1a   :  { %s130_s20 = sshll.u32 %s6045_s0, 4  ;;  %s131_s20 = int_to_ptr.vmem [resolvable:$true] %s130_s20 }
  0x1b   :  { %136 = dma.hbm_to_vmem [thread:$0]  %s129_s15, 4096, %s131_s20, [#allocation16], %s6034_s1, %s6034_s1, %s6035_s26  }
  0x1c   :  { %6020 = dma.done.wait [#allocation4], 2048  }
  0x1d   :  { %6021 = vsyncadd [#allocation4], 4294965248 }
  0x1e   :  { %6022 = dma.done.wait [#allocation7], 1040  }
  0x1f   :  { %6023 = vsyncadd [#allocation7], 4294966256 }
  0x20   :  { %6024 = dma.done.wait [#allocation10], 2048  }
  0x21   :  { %6025 = vsyncadd [#allocation10], 4294965248 }
  0x22   :  { %6026 = dma.done.wait [#allocation13], 5120  }
  0x23   :  { %6027 = vsyncadd [#allocation13], 4294962176 }
  0x24   :  { %6028 = dma.done.wait [#allocation16], 4096  }
  0x25   :  { %6029 = vsyncadd [#allocation16], 4294963200  ;;  %v174_v0 = vld [vmem:[#allocation3 + $0x10] sm:$0xff]  ;;  %v172_v1 = vld [vmem:[#allocation3] sm:$0xff]  ;;  %v6046_v7 = vmov 128.0   ;;  %s6048_s26 = smov 32  }
  0x26   :  { %194 = vadd.xlane.f32.xlu1 %v174_v0  ;;  %190 = vadd.xlane.f32.xlu0 %v172_v1  ;;  %v176_v2 = vld [vmem:[#allocation3 + $0x20] sm:$0xff]  ;;  %v175_v3 = vld [vmem:[#allocation3 + $0x18] sm:$0xff]  ;;  %v173_v4 = vld [vmem:[#allocation3 + $0x8] sm:$0xff]  ;;  %5466 = vrcp.f32 %v6046_v7  ;;  %s4832_s4 = sshll.u32 %s8376_s14, 4  ;;  %s4833_s4 = int_to_ptr.hbm [resolvable:$true] %s4832_s4 }
  0x27   :  { %198 = vadd.xlane.f32.xlu2 %v176_v2  ;;  %v177_v5 = vld [vmem:[#allocation3 + $0x28] sm:$0xff]  ;;  %v178_v6 = vld [vmem:[#allocation3 + $0x30] sm:$0xff]  ;;  %v6183_v28 = vld [vmem:[#allocation3 + $0x38] sm:$0xff] }
  0x28   :  { %v6197_v36 = vld [vmem:[#allocation3 + $0x40] sm:$0xff]  ;;  %v6207_v42 = vld [vmem:[#allocation3 + $0x58] sm:$0xff]  ;;  %v6209_v43 = vld [vmem:[#allocation3 + $0x48] sm:$0xff] }
  0x29   :  { %v6217_v46 = vld [vmem:[#allocation3 + $0x60] sm:$0xff]  ;;  %v6219_v47 = vld [vmem:[#allocation3 + $0x50] sm:$0xff]  ;;  %v6223_v48 = vld [vmem:[#allocation3 + $0x68] sm:$0xff] }
  0x2a   :  { %v6226_v49 = vld [vmem:[#allocation3 + $0x70] sm:$0xff]  ;;  %v5336_v50 = vld [vmem:[#allocation8 + $0x38] sm:$0xff]  ;;  %v5333_v59 = vld [vmem:[#allocation8 + $0x20] sm:$0xff] }
  0x2b   :  { %v5344_v51 = vld [vmem:[#allocation9 + $0x38] sm:$0xff]  ;;  %627 = vmatpush.bf16.msra.mxu0 %v5336_v50  ;;  %v5335_v53 = vld [vmem:[#allocation8 + $0x30] sm:$0xff]  ;;  %v5334_v56 = vld [vmem:[#allocation8 + $0x28] sm:$0xff] }
  0x2c   :  { %v5467_v8 = vpop.eup %5466  ;;  %v5352_v52 = vld [vmem:[#allocation11 + $0x38] sm:$0xff]  ;;  %740 = vmatpush.bf16.msra.mxu1 %v5344_v51  ;;  %v5343_v54 = vld [vmem:[#allocation9 + $0x30] sm:$0xff]  ;;  %v5342_v57 = vld [vmem:[#allocation9 + $0x28] sm:$0xff] }
  0x2d   :  { %v223_v9 = vmul.f32 128.0, %v5467_v8  ;;  %vm227_vm0 = vweird.f32 %v5467_v8  ;;  %853 = vmatpush.bf16.msra.mxu2 %v5352_v52  ;;  %5433 = vmatpush.bf16.msra.mxu3 %v5352_v52  ;;  %v5351_v55 = vld [vmem:[#allocation11 + $0x30] sm:$0xff]  ;;  %v5350_v58 = vld [vmem:[#allocation11 + $0x28] sm:$0xff]  ;;  %v5341_v60 = vld [vmem:[#allocation9 + $0x20] sm:$0xff] }
  0x2e   :  { %196 = vadd.xlane.f32.xlu1 %v175_v3  ;;  %192 = vadd.xlane.f32.xlu0 %v173_v4  ;;  %v5349_v61 = vld [vmem:[#allocation11 + $0x20] sm:$0xff]  ;;  %v5332_v62 = vld [vmem:[#allocation8 + $0x18] sm:$0xff] }
  0x2f   :  { %200 = vadd.xlane.f32.xlu2 %v177_v5  ;;  %v224_v10 = vsub.f32 1.0, %v223_v9  ;;  %628 = vmatpush.bf16.msra.mxu0 %v5335_v53  ;;  %v5340_v63 = vld [vmem:[#allocation9 + $0x18] sm:$0xff] }
  0x30   :  { %741 = vmatpush.bf16.msra.mxu1 %v5343_v54 }
  0x31   :  { %v225_v11 = vmul.f32 %v5467_v8, %v224_v10  ;;  %854 = vmatpush.bf16.msra.mxu2 %v5351_v55  ;;  %5434 = vmatpush.bf16.msra.mxu3 %v5351_v55  ;;  %v5329_v10 = vld [vmem:[#allocation8] sm:$0xff] }
  0x33   :  { %v226_v12 = vadd.f32 %v5467_v8, %v225_v11  ;;  %629 = vmatpush.bf16.msra.mxu0 %v5334_v56  ;;  %v5337_v11 = vld [vmem:[#allocation9] sm:$0xff] }
  0x34   :  { %742 = vmatpush.bf16.msra.mxu1 %v5342_v57 }
  0x35   :  { %v6168_v13 = vsel %vm227_vm0, %v5467_v8, %v226_v12  ;;  %855 = vmatpush.bf16.msra.mxu2 %v5350_v58  ;;  %5435 = vmatpush.bf16.msra.mxu3 %v5350_v58  ;;  %v5346_v8 = vld [vmem:[#allocation11 + $0x8] sm:$0xff]  ;;  %v5345_v12 = vld [vmem:[#allocation11] sm:$0xff] }
  0x36   :  { %8402 = vst [vmem:[#allocation24_spill] sm:$0xff] %v6168_v13 }
  0x37   :  { %202 = vadd.xlane.f32.xlu2 %v178_v6  ;;  %630 = vmatpush.bf16.msra.mxu0 %v5333_v59 }
  0x38   :  { %743 = vmatpush.bf16.msra.mxu1 %v5341_v60 }
  0x39   :  { %856 = vmatpush.bf16.msra.mxu2 %v5349_v61  ;;  %5436 = vmatpush.bf16.msra.mxu3 %v5349_v61 }
  0x3b   :  { %631 = vmatpush.bf16.msra.mxu0 %v5332_v62 }
  0x3c   :  { %744 = vmatpush.bf16.msra.mxu1 %v5340_v63 }
  0x99   :  { %v195_v14 = vpop.xlane.xlu1 %194  ;;  %v191_v15 = vpop.xlane.xlu0 %190 }
  0x9a   :  { %v229_v16 = vmul.f32 %v6168_v13, %v191_v15  ;;  %v199_v18 = vpop.xlane.xlu2 %198  ;;  %v231_v27 = vmul.f32 %v6168_v13, %v195_v14 }
  0x9b   :  { %v233_v26 = vmul.f32 %v6168_v13, %v199_v18 }
  0x9c   :  { %v6171_v17 = vsub.f32 %v172_v1, %v229_v16  ;;  %v6192_v33 = vsub.f32 %v174_v0, %v231_v27  ;;  %v5348_v0 = vld [vmem:[#allocation11 + $0x18] sm:$0xff]  ;;  %v5331_v1 = vld [vmem:[#allocation8 + $0x10] sm:$0xff] }
  0x9d   :  { %v6190_v32 = vsub.f32 %v176_v2, %v233_v26  ;;  %857 = vmatpush.bf16.msra.mxu2 %v5348_v0  ;;  %5437 = vmatpush.bf16.msra.mxu3 %v5348_v0  ;;  %v5339_v2 = vld [vmem:[#allocation9 + $0x10] sm:$0xff] }
  0x9e   :  { %v261_v19 = vmul.f32 %v6171_v17, %v6171_v17  ;;  %v263_v37 = vmul.f32 %v6192_v33, %v6192_v33  ;;  %632 = vmatpush.bf16.msra.mxu0 %v5331_v1  ;;  %745 = vmatpush.bf16.msra.mxu1 %v5339_v2 }
  0x9f   :  { %v265_v34 = vmul.f32 %v6190_v32, %v6190_v32 }
  0xa0   :  { %277 = vadd.xlane.f32.xlu0 %v261_v19 }
  0xa1   :  { %v197_v20 = vpop.xlane.xlu1 %196  ;;  %v193_v21 = vpop.xlane.xlu0 %192 }
  0xa2   :  { %v232_v22 = vmul.f32 %v6168_v13, %v197_v20  ;;  %v230_v23 = vmul.f32 %v6168_v13, %v193_v21  ;;  %v201_v31 = vpop.xlane.xlu2 %200 }
  0xa3   :  { %v234_v35 = vmul.f32 %v6168_v13, %v201_v31 }
  0xa4   :  { %v6177_v24 = vsub.f32 %v175_v3, %v232_v22  ;;  %v6179_v25 = vsub.f32 %v173_v4, %v230_v23  ;;  %v5347_v3 = vld [vmem:[#allocation11 + $0x10] sm:$0xff] }
  0xa5   :  { %v6202_v38 = vsub.f32 %v177_v5, %v234_v35  ;;  %858 = vmatpush.bf16.msra.mxu2 %v5347_v3  ;;  %5438 = vmatpush.bf16.msra.mxu3 %v5347_v3  ;;  %v5330_v5 = vld [vmem:[#allocation8 + $0x8] sm:$0xff] }
  0xa6   :  { %v264_v29 = vmul.f32 %v6177_v24, %v6177_v24  ;;  %v262_v30 = vmul.f32 %v6179_v25, %v6179_v25  ;;  %633 = vmatpush.bf16.msra.mxu0 %v5330_v5 }
  0xa7   :  { %v266_v40 = vmul.f32 %v6202_v38, %v6202_v38 }
  0xa8   :  { %283 = vadd.xlane.f32.xlu2 %v264_v29  ;;  %204 = vadd.xlane.f32.xlu0 %v6183_v28 }
  0xa9   :  { %279 = vadd.xlane.f32.xlu1 %v262_v30  ;;  %859 = vmatpush.bf16.msra.mxu2 %v5346_v8 }
  0xaa   :  { %v203_v39 = vpop.xlane.xlu2 %202  ;;  %5439 = vmatpush.bf16.msra.mxu3 %v5346_v8  ;;  %634 = vmatpush.bf16.msra.mxu0 %v5329_v10 }
  0xab   :  { %v235_v41 = vmul.f32 %v6168_v13, %v203_v39 }
  0xad   :  { %v6212_v44 = vsub.f32 %v178_v6, %v235_v41  ;;  %v5338_v6 = vld [vmem:[#allocation9 + $0x8] sm:$0xff]  ;;  %860 = vmatpush.bf16.msra.mxu2 %v5345_v12 }
  0xae   :  { %746 = vmatpush.bf16.msra.mxu1 %v5338_v6  ;;  %5440 = vmatpush.bf16.msra.mxu3 %v5345_v12  ;;  %v6283_v12 = vld [vmem:[#allocation6] ss:$0 sm:$0xff] }
  0xaf   :  { %v267_v45 = vmul.f32 %v6212_v44, %v6212_v44 }
  0xb0   :  { %285 = vadd.xlane.f32.xlu2 %v265_v34  ;;  %206 = vadd.xlane.f32.xlu0 %v6197_v36 }
  0xb1   :  { %281 = vadd.xlane.f32.xlu1 %v263_v37 }
  0xb2   :  { %747 = vmatpush.bf16.msra.mxu1 %v5337_v11 }
  0xb8   :  { %212 = vadd.xlane.f32.xlu2 %v6207_v42  ;;  %287 = vadd.xlane.f32.xlu0 %v266_v40 }
  0xb9   :  { %208 = vadd.xlane.f32.xlu1 %v6209_v43 }
  0xc0   :  { %214 = vadd.xlane.f32.xlu2 %v6217_v46  ;;  %289 = vadd.xlane.f32.xlu0 %v267_v45 }
  0xc1   :  { %210 = vadd.xlane.f32.xlu1 %v6219_v47 }
  0xc8   :  { %216 = vadd.xlane.f32.xlu0 %v6223_v48 }
  0xd0   :  { %218 = vadd.xlane.f32.xlu0 %v6226_v49 }
 0x113   :  { %v278_v4 = vpop.xlane.xlu0 %277 }
 0x114   :  { %v309_v7 = vmul.f32 %v278_v4, %v6168_v13 }
 0x116   :  { %v325_v9 = vadd.f32 1e-05, %v309_v7 }
 0x118   :  { %5468 = vrsqrt.f32 %v325_v9  ;;  %vm347_vm2 = vweird.f32 %v325_v9 }
 0x11b   :  { %v284_v14 = vpop.xlane.xlu2 %283  ;;  %v205_v15 = vpop.xlane.xlu0 %204 }
 0x11c   :  { %v312_v16 = vmul.f32 %v284_v14, %v6168_v13  ;;  %v280_v18 = vpop.xlane.xlu1 %279  ;;  %v236_v19 = vmul.f32 %v6168_v13, %v205_v15  ;;  %v6287_v15 = vld [vmem:[#allocation3 + $0x78] sm:$0xff] }
 0x11d   :  { %v310_v20 = vmul.f32 %v280_v18, %v6168_v13 }
 0x11e   :  { %v5469_v21 = vpop.eup %5468  ;;  %v6233_v22 = vadd.f32 1e-05, %v312_v16  ;;  %v6236_v23 = vsub.f32 %v6183_v28, %v236_v19 }
 0x11f   :  { %v342_v26 = vmul.f32 %v5469_v21, %v325_v9  ;;  %v326_v27 = vadd.f32 1e-05, %v310_v20  ;;  %vm348_vm1 = vweird.f32 %v5469_v21 }
 0x120   :  { %5470 = vrsqrt.f32 %v6233_v22  ;;  %v268_v29 = vmul.f32 %v6236_v23, %v6236_v23  ;;  %vm6258_vm3 = vmor %vm347_vm2, %vm348_vm1  ;;  %vm377_vm7 = vweird.f32 %v6233_v22 }
 0x121   :  { %v343_v30 = vmul.f32 %v5469_v21, %v342_v26  ;;  %5472 = vrsqrt.f32 %v326_v27  ;;  %vm357_vm5 = vweird.f32 %v326_v27 }
 0x122   :  { %291 = vadd.xlane.f32.xlu1 %v268_v29 }
 0x123   :  { %v344_v31 = vmul.f32 0.5, %v343_v30  ;;  %v286_v34 = vpop.xlane.xlu2 %285  ;;  %v207_v35 = vpop.xlane.xlu0 %206  ;;  %v6301_v30 = vld [vmem:[%s8364_s2] ss:$0 sm:$0xff]  ;;  %s6047_s2 = smov 96  }
 0x124   :  { %v282_v37 = vpop.xlane.xlu1 %281  ;;  %v237_v39 = vmul.f32 %v6168_v13, %v207_v35  ;;  %v313_v51 = vmul.f32 %v286_v34, %v6168_v13 }
 0x125   :  { %v345_v40 = vsub.f32 1.5, %v344_v31  ;;  %v311_v28 = vmul.f32 %v282_v37, %v6168_v13 }
 0x126   :  { %v6243_v41 = vpop.eup %5470  ;;  %v6246_v45 = vsub.f32 %v6197_v36, %v237_v39  ;;  %v6256_v36 = vadd.f32 1e-05, %v313_v51 }
 0x127   :  { %v5473_v50 = vpop.eup %5472  ;;  %v6249_v52 = vadd.f32 1e-05, %v311_v28  ;;  %v346_v54 = vmul.f32 %v5469_v21, %v345_v40  ;;  %v372_v55 = vmul.f32 %v6243_v41, %v6233_v22  ;;  %vm378_vm8 = vweird.f32 %v6243_v41 }
 0x128   :  { %v352_v53 = vmul.f32 %v5473_v50, %v326_v27  ;;  %v269_v57 = vmul.f32 %v6246_v45, %v6246_v45  ;;  %vm358_vm4 = vweird.f32 %v5473_v50  ;;  %vm6324_vm10 = vmor %vm377_vm7, %vm378_vm8  ;;  %vm387_vm15 = vweird.f32 %v6256_v36 }
 0x129   :  { %5474 = vrsqrt.f32 %v6249_v52  ;;  %v350_v1 = vsel %vm6258_vm3, %v5469_v21, %v346_v54  ;;  %v373_v2 = vmul.f32 %v6243_v41, %v372_v55  ;;  %vm359_vm6 = vmor %vm357_vm5, %vm358_vm4  ;;  %vm367_vm11 = vweird.f32 %v6249_v52 }
 0x12a   :  { %v353_v56 = vmul.f32 %v5473_v50, %v352_v53  ;;  %293 = vadd.xlane.f32.xlu1 %v269_v57  ;;  %5476 = vrsqrt.f32 %v6256_v36  ;;  %v501_v11 = vmul.f32 %v350_v1, %v6171_v17 }
 0x12b   :  { %v213_v58 = vpop.xlane.xlu2 %212  ;;  %v288_v59 = vpop.xlane.xlu0 %287 }
 0x12c   :  { %v354_v61 = vmul.f32 0.5, %v353_v56  ;;  %v240_v62 = vmul.f32 %v6168_v13, %v213_v58  ;;  %v209_v63 = vpop.xlane.xlu1 %208  ;;  %v314_v0 = vmul.f32 %v288_v59, %v6168_v13  ;;  %v520_v29 = vmul.f32 %v6283_v12, %v501_v11 }
 0x12d   :  { %v238_v3 = vmul.f32 %v6168_v13, %v209_v63 }
 0x12e   :  { %v355_v4 = vsub.f32 1.5, %v354_v61  ;;  %v6268_v5 = vadd.f32 1e-05, %v314_v0  ;;  %v6271_v6 = vsub.f32 %v6207_v42, %v240_v62  ;;  %v374_v42 = vmul.f32 0.5, %v373_v2 }
 0x12f   :  { %v6273_v7 = vpop.eup %5474  ;;  %v6277_v8 = vsub.f32 %v6209_v43, %v238_v3  ;;  %v539_v53 = vadd.f32 %v6301_v30, %v520_v29 }
 0x130   :  { %v356_v9 = vmul.f32 %v5473_v50, %v355_v4  ;;  %v362_v10 = vmul.f32 %v6273_v7, %v6249_v52  ;;  %5478 = vrsqrt.f32 %v6268_v5  ;;  %v272_v14 = vmul.f32 %v6271_v6, %v6271_v6  ;;  %v6303_v31 = vpop.eup %5476 }
 0x131   :  { %v270_v18 = vmul.f32 %v6277_v8, %v6277_v8  ;;  %v375_v34 = vsub.f32 1.5, %v374_v42  ;;  %vm368_vm9 = vweird.f32 %v6273_v7  ;;  %vm397_vm13 = vweird.f32 %v6268_v5 }
 0x132   :  { %v360_v16 = vsel %vm359_vm6, %v5473_v50, %v356_v9  ;;  %v363_v43 = vmul.f32 %v6273_v7, %v362_v10  ;;  %299 = vadd.xlane.f32.xlu0 %v272_v14  ;;  %220 = vadd.xlane.f32.xlu1 %v6287_v15  ;;  %vm369_vm12 = vmor %vm367_vm11, %vm368_vm9  ;;  %vm388_vm0 = vweird.f32 %v6303_v31 }
 0x133   :  { %v215_v19 = vpop.xlane.xlu2 %214  ;;  %v6292_v20 = vpop.xlane.xlu0 %289  ;;  %v502_v17 = vmul.f32 %v360_v16, %v6179_v25  ;;  %295 = vadd.xlane.f32.xlu2 %v270_v18  ;;  %v376_v54 = vmul.f32 %v6243_v41, %v375_v34  ;;  %vm389_vm2 = vmor %vm387_vm15, %vm388_vm0 }
 0x134   :  { %v364_v21 = vmul.f32 0.5, %v363_v43  ;;  %v241_v26 = vmul.f32 %v6168_v13, %v215_v19  ;;  %v211_v27 = vpop.xlane.xlu1 %210 }
 0x135   :  { %v239_v35 = vmul.f32 %v6168_v13, %v211_v27  ;;  %v521_v25 = vmul.f32 %v6283_v12, %v502_v17  ;;  %v380_v52 = vsel %vm6324_vm10, %v6243_v41, %v376_v54 }
 0x136   :  { %v6307_v37 = vpop.eup %5478  ;;  %v365_v39 = vsub.f32 1.5, %v364_v21  ;;  %v6312_v40 = vsub.f32 %v6217_v46, %v241_v26  ;;  %v382_v46 = vmul.f32 %v6303_v31, %v6256_v36  ;;  %v504_v3 = vmul.f32 %v380_v52, %v6177_v24 }
 0x137   :  { %v392_v28 = vmul.f32 %v6307_v37, %v6268_v5  ;;  %v6318_v50 = vsub.f32 %v6219_v47, %v239_v35  ;;  %v540_v22 = vadd.f32 %v6301_v30, %v521_v25  ;;  %vm398_vm14 = vweird.f32 %v6307_v37 }
 0x138   :  { %v366_v51 = vmul.f32 %v6273_v7, %v365_v39  ;;  %v273_v57 = vmul.f32 %v6312_v40, %v6312_v40  ;;  %v383_v62 = vmul.f32 %v6303_v31, %v382_v46  ;;  %v523_v11 = vmul.f32 %v6283_v12, %v504_v3  ;;  %vm399_vm1 = vmor %vm397_vm13, %vm398_vm14 }
 0x139   :  { %v271_v47 = vmul.f32 %v6318_v50, %v6318_v50  ;;  %v555_v56 = vpack.c.bf16 %v540_v22, %v539_v53  ;;  %v393_v59 = vmul.f32 %v6307_v37, %v392_v28 }
 0x13a   :  { %v370_v58 = vsel %vm369_vm12, %v6273_v7, %v366_v51  ;;  %301 = vadd.xlane.f32.xlu1 %v273_v57  ;;  %v384_v4 = vmul.f32 0.5, %v383_v62  ;;  %v542_v14 = vadd.f32 %v6301_v30, %v523_v11 }
 0x13b   :  { %v217_v60 = vpop.xlane.xlu0 %216  ;;  %297 = vadd.xlane.f32.xlu2 %v271_v47  ;;  %635 = vmatmul.bf16.vlgmr.msra.gmra.mxu0 %v555_v56  ;;  %v503_v0 = vmul.f32 %v370_v58, %v6192_v33  ;;  %v394_v1 = vmul.f32 0.5, %v393_v59 }
 0x13c   :  { %v242_v61 = vmul.f32 %v6168_v13, %v217_v60  ;;  %748 = vmatmul.bf16.vlgmr.msra.gmra.mxu1 %v555_v56  ;;  %861 = vmatmul.bf16.vlgmr.msra.gmra.mxu2 %v555_v56 }
 0x13d   :  { %v522_v7 = vmul.f32 %v6283_v12, %v503_v0  ;;  %v395_v41 = vsub.f32 1.5, %v394_v1 }
 0x13e   :  { %v6343_v63 = vsub.f32 %v6223_v48, %v242_v61  ;;  %v385_v48 = vsub.f32 1.5, %v384_v4 }
 0x13f   :  { %v541_v33 = vadd.f32 %v6301_v30, %v522_v7  ;;  %v396_v24 = vmul.f32 %v6307_v37, %v395_v41 }
 0x140   :  { %v274_v2 = vmul.f32 %v6343_v63, %v6343_v63  ;;  %v386_v5 = vmul.f32 %v6303_v31, %v385_v48 }
 0x141   :  { %v556_v43 = vpack.c.bf16 %v542_v14, %v541_v33 }
 0x142   :  { %v390_v36 = vsel %vm389_vm2, %v6303_v31, %v386_v5  ;;  %v315_v31 = vmul.f32 %v6292_v20, %v6168_v13 }
 0x143   :  { %v219_v9 = vpop.xlane.xlu0 %218  ;;  %303 = vadd.xlane.f32.xlu2 %v274_v2  ;;  %v505_v19 = vmul.f32 %v390_v36, %v6190_v32 }
 0x144   :  { %v243_v10 = vmul.f32 %v6168_v13, %v219_v9  ;;  %v331_v34 = vadd.f32 1e-05, %v315_v31 }
 0x145   :  { %v524_v21 = vmul.f32 %v6283_v12, %v505_v19 }
 0x146   :  { %v6356_v42 = vsub.f32 %v6226_v49, %v243_v10  ;;  %v400_v49 = vsel %vm399_vm1, %v6307_v37, %v396_v24  ;;  %5480 = vrsqrt.f32 %v331_v34  ;;  %vm407_vm3 = vweird.f32 %v331_v34 }
 0x147   :  { %v506_v18 = vmul.f32 %v400_v49, %v6202_v38  ;;  %v543_v27 = vadd.f32 %v6301_v30, %v524_v21 }
 0x148   :  { %v275_v16 = vmul.f32 %v6356_v42, %v6356_v42 }
 0x149   :  { %v525_v17 = vmul.f32 %v6283_v12, %v506_v18 }
 0x14a   :  { %305 = vadd.xlane.f32.xlu0 %v275_v16 }
 0x14b   :  { %640 = vmatmul.bf16.gmra.mxu0 %v556_v43  ;;  %v544_v26 = vadd.f32 %v6301_v30, %v525_v17 }
 0x14c   :  { %753 = vmatmul.bf16.gmra.mxu1 %v556_v43  ;;  %866 = vmatmul.bf16.gmra.mxu2 %v556_v43  ;;  %v5481_v38 = vpop.eup %5480 }
 0x14d   :  { %v557_v29 = vpack.c.bf16 %v544_v26, %v543_v27  ;;  %v402_v35 = vmul.f32 %v5481_v38, %v331_v34  ;;  %vm408_vm4 = vweird.f32 %v5481_v38 }
 0x14e   :  { %vm6377_vm5 = vmor %vm407_vm3, %vm408_vm4 }
 0x14f   :  { %v403_v25 = vmul.f32 %v5481_v38, %v402_v35 }
 0x151   :  { %v404_v28 = vmul.f32 0.5, %v403_v25 }
 0x153   :  { %v405_v51 = vsub.f32 1.5, %v404_v28 }
 0x155   :  { %v406_v20 = vmul.f32 %v5481_v38, %v405_v51 }
 0x157   :  { %v410_v58 = vsel %vm6377_vm5, %v5481_v38, %v406_v20 }
 0x158   :  { %v507_v4 = vmul.f32 %v410_v58, %v6212_v44 }
 0x15a   :  { %v526_v14 = vmul.f32 %v6283_v12, %v507_v4 }
 0x15b   :  { %645 = vmatmul.bf16.gmra.mxu0 %v557_v29 }
 0x15c   :  { %758 = vmatmul.bf16.gmra.mxu1 %v557_v29  ;;  %871 = vmatmul.bf16.gmra.mxu2 %v557_v29  ;;  %v545_v18 = vadd.f32 %v6301_v30, %v526_v14 }
 0x195   :  { %v292_v32 = vpop.xlane.xlu1 %291 }
 0x196   :  { %v316_v37 = vmul.f32 %v292_v32, %v6168_v13 }
 0x198   :  { %v332_v39 = vadd.f32 1e-05, %v316_v37 }
 0x19a   :  { %5482 = vrsqrt.f32 %v332_v39  ;;  %vm417_vm7 = vweird.f32 %v332_v39 }
 0x19d   :  { %v294_v53 = vpop.xlane.xlu1 %293 }
 0x19e   :  { %v317_v54 = vmul.f32 %v294_v53, %v6168_v13 }
 0x1a0   :  { %v5483_v22 = vpop.eup %5482  ;;  %v333_v46 = vadd.f32 1e-05, %v317_v54 }
 0x1a1   :  { %v412_v55 = vmul.f32 %v5483_v22, %v332_v39  ;;  %vm418_vm6 = vweird.f32 %v5483_v22 }
 0x1a2   :  { %5484 = vrsqrt.f32 %v333_v46  ;;  %vm419_vm8 = vmor %vm417_vm7, %vm418_vm6  ;;  %vm427_vm10 = vweird.f32 %v333_v46 }
 0x1a3   :  { %v413_v56 = vmul.f32 %v5483_v22, %v412_v55 }
 0x1a5   :  { %v414_v57 = vmul.f32 0.5, %v413_v56  ;;  %v300_v59 = vpop.xlane.xlu0 %299  ;;  %v221_v52 = vpop.xlane.xlu1 %220 }
 0x1a6   :  { %v296_v61 = vpop.xlane.xlu2 %295  ;;  %v320_v62 = vmul.f32 %v300_v59, %v6168_v13  ;;  %v244_v1 = vmul.f32 %v6168_v13, %v221_v52 }
 0x1a7   :  { %v415_v60 = vsub.f32 1.5, %v414_v57  ;;  %v318_v0 = vmul.f32 %v296_v61, %v6168_v13 }
 0x1a8   :  { %v6386_v3 = vadd.f32 1e-05, %v320_v62  ;;  %v5485_v7 = vpop.eup %5484  ;;  %v6390_v9 = vsub.f32 %v6287_v15, %v244_v1 }
 0x1a9   :  { %v416_v2 = vmul.f32 %v5483_v22, %v415_v60  ;;  %v334_v41 = vadd.f32 1e-05, %v318_v0  ;;  %v422_v11 = vmul.f32 %v5485_v7, %v333_v46  ;;  %vm428_vm9 = vweird.f32 %v5485_v7 }
 0x1aa   :  { %5486 = vrsqrt.f32 %v6386_v3  ;;  %v276_v48 = vmul.f32 %v6390_v9, %v6390_v9  ;;  %vm429_vm11 = vmor %vm427_vm10, %vm428_vm9  ;;  %vm457_vm1 = vweird.f32 %v6386_v3 }
 0x1ab   :  { %v420_v10 = vsel %vm419_vm8, %v5483_v22, %v416_v2  ;;  %5488 = vrsqrt.f32 %v334_v41  ;;  %v423_v33 = vmul.f32 %v5485_v7, %v422_v11  ;;  %vm437_vm13 = vweird.f32 %v334_v41 }
 0x1ac   :  { %v508_v24 = vmul.f32 %v420_v10, %v6236_v23  ;;  %307 = vadd.xlane.f32.xlu1 %v276_v48 }
 0x1ad   :  { %v424_v44 = vmul.f32 0.5, %v423_v33  ;;  %v302_v36 = vpop.xlane.xlu1 %301 }
 0x1ae   :  { %v298_v16 = vpop.xlane.xlu2 %297  ;;  %v527_v5 = vmul.f32 %v6283_v12, %v508_v24  ;;  %v321_v21 = vmul.f32 %v302_v36, %v6168_v13 }
 0x1af   :  { %v319_v15 = vmul.f32 %v298_v16, %v6168_v13  ;;  %v425_v49 = vsub.f32 1.5, %v424_v44 }
 0x1b0   :  { %v6399_v43 = vpop.eup %5486  ;;  %v546_v19 = vadd.f32 %v6301_v30, %v527_v5  ;;  %v6406_v38 = vadd.f32 1e-05, %v321_v21 }
 0x1b1   :  { %v5489_v17 = vpop.eup %5488  ;;  %v335_v23 = vadd.f32 1e-05, %v319_v15  ;;  %v426_v26 = vmul.f32 %v5485_v7, %v425_v49  ;;  %v452_v29 = vmul.f32 %v6399_v43, %v6386_v3  ;;  %vm458_vm2 = vweird.f32 %v6399_v43 }
 0x1b2   :  { %v432_v27 = vmul.f32 %v5489_v17, %v334_v41  ;;  %v558_v31 = vpack.c.bf16 %v546_v19, %v545_v18  ;;  %vm438_vm12 = vweird.f32 %v5489_v17  ;;  %vm6437_vm4 = vmor %vm457_vm1, %vm458_vm2  ;;  %vm467_vm7 = vweird.f32 %v6406_v38 }
 0x1b3   :  { %5490 = vrsqrt.f32 %v335_v23  ;;  %v430_v35 = vsel %vm429_vm11, %v5485_v7, %v426_v26  ;;  %v453_v25 = vmul.f32 %v6399_v43, %v452_v29  ;;  %vm439_vm14 = vmor %vm437_vm13, %vm438_vm12  ;;  %vm447_vm15 = vweird.f32 %v335_v23 }
 0x1b4   :  { %v433_v34 = vmul.f32 %v5489_v17, %v432_v27  ;;  %650 = vmatmul.bf16.gmra.mxu0 %v558_v31  ;;  %763 = vmatmul.bf16.gmra.mxu1 %v558_v31  ;;  %5492 = vrsqrt.f32 %v6406_v38  ;;  %v509_v55 = vmul.f32 %v430_v35, %v6246_v45  ;;  %vm1017_vm1 = vcmask 261120  }
 0x1b5   :  { %876 = vmatmul.bf16.gmra.mxu2 %v558_v31  ;;  %v454_v46 = vmul.f32 0.5, %v453_v25 }
 0x1b6   :  { %v434_v32 = vmul.f32 0.5, %v433_v34  ;;  %v304_v37 = vpop.xlane.xlu2 %303  ;;  %v528_v59 = vmul.f32 %v6283_v12, %v509_v55 }
 0x1b7   :  { %v322_v39 = vmul.f32 %v304_v37, %v6168_v13  ;;  %v455_v60 = vsub.f32 1.5, %v454_v46 }
 0x1b8   :  { %v435_v28 = vsub.f32 1.5, %v434_v32  ;;  %v636_v51 = vpop.f32.mrf.mxu0  ;;  %v547_v11 = vadd.f32 %v6301_v30, %v528_v59 }
 0x1b9   :  { %v5491_v53 = vpop.eup %5490  ;;  %v6411_v22 = vadd.f32 1e-05, %v322_v39  ;;  %v749_v54 = vpop.f32.mrf.mxu1  ;;  %v902_v45 = vpack.c.bf16 %v636_v51, %v636_v51  ;;  %v456_v33 = vmul.f32 %v6399_v43, %v455_v60 }
 0x1ba   :  { %v436_v20 = vmul.f32 %v5489_v17, %v435_v28  ;;  %v442_v47 = vmul.f32 %v5491_v53, %v335_v23  ;;  %vm448_vm0 = vweird.f32 %v5491_v53  ;;  %v6417_v52 = vpop.eup %5492  ;;  %v918_v7 = vpack.c.bf16 %v749_v54, %v749_v54 }
 0x1bb   :  { %5494 = vrsqrt.f32 %v6411_v22  ;;  %vm6424_vm3 = vmor %vm447_vm15, %vm448_vm0  ;;  %v462_v14 = vmul.f32 %v6417_v52, %v6406_v38  ;;  %v985_v5 = vunpack.c.l.b16 %v902_v45  ;;  %v460_v3 = vsel %vm6437_vm4, %v6399_v43, %v456_v33 }
 0x1bc   :  { %v440_v56 = vsel %vm439_vm14, %v5489_v17, %v436_v20  ;;  %v443_v57 = vmul.f32 %v5491_v53, %v442_v47  ;;  %v1005_v17 = vunpack.c.l.b16 %v918_v7  ;;  %v512_v37 = vmul.f32 %v460_v3, %v6271_v6 }
 0x1bd   :  { %v510_v58 = vmul.f32 %v440_v56, %v6277_v8  ;;  %v463_v26 = vmul.f32 %v6417_v52, %v462_v14  ;;  %vm477_vm5 = vweird.f32 %v6411_v22  ;;  %vm468_vm8 = vweird.f32 %v6417_v52 }
 0x1be   :  { %v444_v61 = vmul.f32 0.5, %v443_v57  ;;  %vm6482_vm10 = vmor %vm467_vm7, %vm468_vm8  ;;  %vm1164_vm4 = vcmask 523264  }
 0x1bf   :  { %v862_v62 = vpop.f32.mrf.mxu2  ;;  %v529_v0 = vmul.f32 %v6283_v12, %v510_v58  ;;  %v464_v39 = vmul.f32 0.5, %v463_v26 }
 0x1c0   :  { %v445_v1 = vsub.f32 1.5, %v444_v61  ;;  %v638_v2 = vpop.f32.mrf.mxu0  ;;  %v934_v27 = vpack.c.bf16 %v862_v62, %v862_v62 }
 0x1c1   :  { %v6422_v4 = vpop.eup %5494  ;;  %v903_v41 = vpack.c.bf16 %v638_v2, %v638_v2  ;;  %v751_v10 = vpop.f32.mrf.mxu1  ;;  %v548_v48 = vadd.f32 %v6301_v30, %v529_v0  ;;  %v465_v20 = vsub.f32 1.5, %v464_v39 }
 0x1c2   :  { %v446_v24 = vmul.f32 %v5491_v53, %v445_v1  ;;  %v472_v44 = vmul.f32 %v6422_v4, %v6411_v22  ;;  %v919_v49 = vpack.c.bf16 %v751_v10, %v751_v10  ;;  %v1385_v51 = vunpack.c.l.b16 %v934_v27  ;;  %v306_v39 = vpop.xlane.xlu0 %305 }
 0x1c3   :  { %v986_v15 = vunpack.c.l.b16 %v903_v41  ;;  %v559_v36 = vpack.c.bf16 %v548_v48, %v547_v11  ;;  %vm478_vm6 = vweird.f32 %v6422_v4  ;;  %v466_v38 = vmul.f32 %v6417_v52, %v465_v20 }
 0x1c4   :  { %v450_v18 = vsel %vm6424_vm3, %v5491_v53, %v446_v24  ;;  %v473_v19 = vmul.f32 %v6422_v4, %v472_v44  ;;  %v1006_v21 = vunpack.c.l.b16 %v919_v49  ;;  %vm6472_vm9 = vmor %vm477_vm5, %vm478_vm6 }
 0x1c5   :  { %v6444_v23 = vpack.c.b16 %v986_v15, %v985_v5  ;;  %655 = vmatmul.bf16.gmra.mxu0 %v559_v36  ;;  %768 = vmatmul.bf16.gmra.mxu1 %v559_v36  ;;  %v511_v34 = vmul.f32 %v450_v18, %v6318_v50  ;;  %v531_v50 = vmul.f32 %v6283_v12, %v512_v37 }
 0x1c6   :  { %881 = vmatmul.bf16.vlgmr.msra.gmra.mxu3 %v559_v36  ;;  %v6450_v29 = vpack.c.b16 %v1006_v21, %v1005_v17  ;;  %v474_v35 = vmul.f32 0.5, %v473_v19  ;;  %v470_v2 = vsel %vm6482_vm10, %v6417_v52, %v466_v38 }
 0x1c7   :  { %v864_v31 = vpop.f32.mrf.mxu2  ;;  %1560 = vrot.lane.b32.xlu0 %v6444_v23, %s6047_s2  ;;  %v530_v53 = vmul.f32 %v6283_v12, %v511_v34  ;;  %v550_v58 = vadd.f32 %v6301_v30, %v531_v50 }
 0x1c8   :  { %v935_v32 = vpack.c.bf16 %v864_v31, %v864_v31  ;;  %v641_v25 = vpop.f32.mrf.mxu0  ;;  %2141 = vrot.lane.b32.xlu1 %v6450_v29, %s6034_s1  ;;  %1568 = vrot.lane.b32.xlu2 %v6450_v29, %s6047_s2  ;;  %v475_v54 = vsub.f32 1.5, %v474_v35 }
 0x1c9   :  { %v754_v43 = vpop.f32.mrf.mxu1  ;;  %v549_v6 = vadd.f32 %v6301_v30, %v530_v53  ;;  %v904_v10 = vpack.c.bf16 %v641_v25, %v641_v25 }
 0x1ca   :  { %v1386_v28 = vunpack.c.l.b16 %v935_v32  ;;  %v476_v46 = vmul.f32 %v6422_v4, %v475_v54  ;;  %v920_v47 = vpack.c.bf16 %v754_v43, %v754_v43 }
 0x1cb   :  { %v560_v45 = vpack.c.bf16 %v550_v58, %v549_v6  ;;  %v987_v24 = vunpack.c.l.b16 %v904_v10 }
 0x1cc   :  { %v6461_v55 = vpack.c.b16 %v1386_v28, %v1385_v51  ;;  %v480_v62 = vsel %vm6472_vm9, %v6422_v4, %v476_v46  ;;  %v1007_v0 = vunpack.c.l.b16 %v920_v47  ;;  %v513_v4 = vmul.f32 %v470_v2, %v6312_v40 }
 0x1cd   :  { %v514_v41 = vmul.f32 %v480_v62, %v6343_v63  ;;  %v323_v28 = vmul.f32 %v306_v39, %v6168_v13 }
 0x1ce   :  { %8413 = vst [vmem:[#allocation25_spill] sm:$0xff] %v6461_v55  ;;  %v532_v14 = vmul.f32 %v6283_v12, %v513_v4 }
 0x1cf   :  { %1910 = vrot.lane.b32.xlu0 %v6461_v55, %s6047_s2  ;;  %v867_v59 = vpop.f32.mrf.mxu2  ;;  %v533_v52 = vmul.f32 %v6283_v12, %v514_v41  ;;  %v339_v51 = vadd.f32 1e-05, %v323_v28 }
 0x1d0   :  { %v643_v56 = vpop.f32.mrf.mxu0  ;;  %2483 = vrot.lane.b32.xlu1 %v6461_v55, %s6034_s1  ;;  %2133 = vrot.lane.b32.xlu2 %v6444_v23, %s6034_s1  ;;  %v936_v5 = vpack.c.bf16 %v867_v59, %v867_v59  ;;  %v551_v40 = vadd.f32 %v6301_v30, %v532_v14 }
 0x1d1   :  { %v756_v22 = vpop.f32.mrf.mxu1  ;;  %v905_v7 = vpack.c.bf16 %v643_v56, %v643_v56  ;;  %v552_v16 = vadd.f32 %v6301_v30, %v533_v52  ;;  %5496 = vrsqrt.f32 %v339_v51  ;;  %vm487_vm11 = vweird.f32 %v339_v51 }
 0x1d2   :  { %v921_v60 = vpack.c.bf16 %v756_v22, %v756_v22  ;;  %v1387_v18 = vunpack.c.l.b16 %v936_v5 }
 0x1d3   :  { %v988_v48 = vunpack.c.l.b16 %v905_v7  ;;  %v561_v49 = vpack.c.bf16 %v552_v16, %v551_v40 }
 0x1d4   :  { %v1008_v1 = vunpack.c.l.b16 %v921_v60 }
 0x1d5   :  { %660 = vmatmul.bf16.gmra.mxu0 %v560_v45  ;;  %773 = vmatmul.bf16.gmra.mxu1 %v560_v45  ;;  %v6502_v44 = vpack.c.b16 %v988_v48, %v987_v24 }
 0x1d6   :  { %v6492_v8 = vpack.c.b16 %v1008_v1, %v1007_v0  ;;  %886 = vmatmul.bf16.gmra.mxu3 %v560_v45 }
 0x1d7   :  { %v869_v33 = vpop.f32.mrf.mxu2  ;;  %v5497_v53 = vpop.eup %5496 }
 0x1d8   :  { %1570 = vrot.lane.b32.xlu1 %v6492_v8, %s6047_s2  ;;  %2714 = vrot.lane.b32.xlu2 %v6450_v29, %s6048_s26  ;;  %v646_v11 = vpop.f32.mrf.mxu0  ;;  %v937_v63 = vpack.c.bf16 %v869_v33, %v869_v33  ;;  %v482_v54 = vmul.f32 %v5497_v53, %v339_v51  ;;  %vm488_vm12 = vweird.f32 %v5497_v53 }
 0x1d9   :  { %v906_v21 = vpack.c.bf16 %v646_v11, %v646_v11  ;;  %v759_v50 = vpop.f32.mrf.mxu1  ;;  %vm489_vm13 = vmor %vm487_vm11, %vm488_vm12  ;;  %vm1543_vm11 = vcmask 257024   ;;  %vm2116_vm12 = vcmask 519424  }
 0x1da   :  { %v1388_v15 = vunpack.c.l.b16 %v937_v63  ;;  %v483_v20 = vmul.f32 %v5497_v53, %v482_v54 }
 0x1db   :  { %v989_v26 = vunpack.c.l.b16 %v906_v21 }
 0x1dc   :  { %v6510_v19 = vpack.c.b16 %v1388_v15, %v1387_v18  ;;  %v484_v56 = vmul.f32 0.5, %v483_v20 }
 0x1de   :  { %v485_v57 = vsub.f32 1.5, %v484_v56 }
 0x1df   :  { %v872_v31 = vpop.f32.mrf.mxu2 }
 0x1e0   :  { %2708 = vrot.lane.b32.xlu1 %v6502_v44, %s6048_s26  ;;  %2706 = vrot.lane.b32.xlu2 %v6444_v23, %s6048_s26  ;;  %v648_v36 = vpop.f32.mrf.mxu0  ;;  %v938_v32 = vpack.c.bf16 %v872_v31, %v872_v31  ;;  %v486_v38 = vmul.f32 %v5497_v53, %v485_v57  ;;  %v1034_v57 = vsel %vm1017_vm1, %v6492_v8, 0 }
 0x1e1   :  { %v907_v17 = vpack.c.bf16 %v648_v36, %v648_v36  ;;  %v761_v22 = vpop.f32.mrf.mxu1 }
 0x1e2   :  { %v1389_v43 = vunpack.c.l.b16 %v938_v32  ;;  %v490_v61 = vsel %vm489_vm13, %v5497_v53, %v486_v38  ;;  %vm2689_vm13 = vcmask 781824  }
 0x1e3   :  { %v990_v3 = vunpack.c.l.b16 %v907_v17  ;;  %v515_v2 = vmul.f32 %v490_v61, %v6356_v42 }
 0x1e5   :  { %665 = vmatmul.bf16.gmra.mxu0 %v561_v49  ;;  %778 = vmatmul.bf16.gmra.mxu1 %v561_v49  ;;  %v6516_v27 = vpack.c.b16 %v990_v3, %v989_v26  ;;  %v534_v4 = vmul.f32 %v6283_v12, %v515_v2  ;;  %v922_v3 = vpack.c.bf16 %v759_v50, %v759_v50  ;;  %v1031_v2 = vsel %vm1017_vm1, %v6450_v29, 0 }
 0x1e6   :  { %891 = vmatmul.bf16.gmra.mxu3 %v561_v49 }
 0x1e7   :  { %v874_v34 = vpop.f32.mrf.mxu2  ;;  %v553_v42 = vadd.f32 %v6301_v30, %v534_v4 }
 0x1e8   :  { %2485 = vrot.lane.b32.xlu1 %v6510_v19, %s6034_s1  ;;  %1562 = vrot.lane.b32.xlu2 %v6502_v44, %s6047_s2  ;;  %v939_v35 = vpack.c.bf16 %v874_v34, %v874_v34 }
 0x1ea   :  { %v1390_v25 = vunpack.c.l.b16 %v939_v35 }
 0x1ec   :  { %v6528_v37 = vpack.c.b16 %v1390_v25, %v1389_v43  ;;  %v1009_v25 = vunpack.c.l.b16 %v922_v3 }
 0x1f0   :  { %1564 = vrot.lane.b32.xlu1 %v6516_v27, %s6047_s2  ;;  %2716 = vrot.lane.b32.xlu2 %v6492_v8, %s6048_s26 }
 0x1f8   :  { %2137 = vrot.lane.b32.xlu1 %v6516_v27, %s6034_s1  ;;  %1912 = vrot.lane.b32.xlu2 %v6510_v19, %s6047_s2 }
 0x200   :  { %2710 = vrot.lane.b32.xlu2 %v6516_v27, %s6048_s26 }
 0x208   :  { %2487 = vrot.lane.b32.xlu2 %v6528_v37, %s6034_s1 }
 0x210   :  { %3060 = vrot.lane.b32.xlu2 %v6528_v37, %s6048_s26 }
 0x21f   :  { %v308_v6 = vpop.xlane.xlu1 %307 }
 0x220   :  { %v324_v46 = vmul.f32 %v308_v6, %v6168_v13 }
 0x222   :  { %v340_v47 = vadd.f32 1e-05, %v324_v46  ;;  %v6539_v52 = vpop.permute.xlu2 %1568 }
 0x224   :  { %5498 = vrsqrt.f32 %v340_v47  ;;  %vm497_vm15 = vweird.f32 %v340_v47 }
 0x22a   :  { %v5499_v58 = vpop.eup %5498  ;;  %v6550_v43 = vpop.permute.xlu2 %2133 }
 0x22b   :  { %v492_v59 = vmul.f32 %v5499_v58, %v340_v47  ;;  %vm498_vm14 = vweird.f32 %v5499_v58 }
 0x22c   :  { %vm499_vm0 = vmor %vm497_vm15, %vm498_vm14  ;;  %vm3262_vm14 = vcmask 1044224  }
 0x22d   :  { %v493_v60 = vmul.f32 %v5499_v58, %v492_v59 }
 0x22f   :  { %v494_v45 = vmul.f32 0.5, %v493_v60 }
 0x231   :  { %v651_v62 = vpop.f32.mrf.mxu0  ;;  %v764_v0 = vpop.f32.mrf.mxu1  ;;  %v495_v1 = vsub.f32 1.5, %v494_v45 }
 0x232   :  { %v908_v11 = vpack.c.bf16 %v651_v62, %v651_v62  ;;  %v924_v33 = vpack.c.bf16 %v764_v0, %v764_v0  ;;  %v6559_v6 = vpop.permute.xlu2 %2714 }
 0x233   :  { %v496_v7 = vmul.f32 %v5499_v58, %v495_v1 }
 0x234   :  { %v991_v15 = vunpack.c.l.b16 %v908_v11  ;;  %v1011_v36 = vunpack.c.l.b16 %v924_v33 }
 0x235   :  { %v500_v41 = vsel %vm499_vm0, %v5499_v58, %v496_v7 }
 0x236   :  { %v516_v10 = vmul.f32 %v500_v41, %v6390_v9  ;;  %v923_v9 = vpack.c.bf16 %v761_v22, %v761_v22 }
 0x238   :  { %v877_v48 = vpop.f32.mrf.mxu2  ;;  %v535_v14 = vmul.f32 %v6283_v12, %v516_v10 }
 0x239   :  { %v653_v24 = vpop.f32.mrf.mxu0  ;;  %v766_v16 = vpop.f32.mrf.mxu1  ;;  %v940_v26 = vpack.c.bf16 %v877_v48, %v877_v48 }
 0x23a   :  { %v909_v63 = vpack.c.bf16 %v653_v24, %v653_v24  ;;  %v925_v5 = vpack.c.bf16 %v766_v16, %v766_v16  ;;  %v554_v40 = vadd.f32 %v6301_v30, %v535_v14  ;;  %v1010_v30 = vunpack.c.l.b16 %v923_v9  ;;  %v6570_v45 = vpop.permute.xlu2 %2706  ;;  %v6596_v3 = vpop.permute.xlu1 %2141 }
 0x23b   :  { %v1391_v39 = vunpack.c.l.b16 %v940_v26 }
 0x23c   :  { %v992_v49 = vunpack.c.l.b16 %v909_v63  ;;  %v1012_v18 = vunpack.c.l.b16 %v925_v5  ;;  %v562_v17 = vpack.c.bf16 %v554_v40, %v553_v42  ;;  %v6552_v51 = vpack.c.b16 %v1010_v30, %v1009_v25 }
 0x23e   :  { %v6544_v21 = vpack.c.b16 %v992_v49, %v991_v15  ;;  %v1016_v31 = vpack.c.b16 %v1012_v18, %v1011_v36  ;;  %670 = vmatmul.bf16.gmra.mxu0 %v562_v17  ;;  %783 = vmatmul.bf16.gmra.mxu1 %v562_v17  ;;  %v1037_v50 = vsel %vm1017_vm1, %v6552_v51, 0 }
 0x23f   :  { %896 = vmatmul.bf16.gmra.mxu3 %v562_v17 }
 0x240   :  { %v879_v12 = vpop.f32.mrf.mxu2  ;;  %2139 = vrot.lane.b32.xlu1 %v6544_v21, %s6034_s1  ;;  %1574 = vrot.lane.b32.xlu2 %v1016_v31, %s6047_s2  ;;  %v1040_v35 = vsel %vm1017_vm1, %v1016_v31, 0 }
 0x241   :  { %v941_v34 = vpack.c.bf16 %v879_v12, %v879_v12  ;;  %1046 = vmatpush.bf16.xpose.msrb.mxu3 %v1040_v35 }
 0x242   :  { %v769_v32 = vpop.f32.mrf.mxu1  ;;  %v656_v46 = vpop.f32.mrf.mxu0 }
 0x243   :  { %v1392_v28 = vunpack.c.l.b16 %v941_v34  ;;  %v926_v0 = vpack.c.bf16 %v769_v32, %v769_v32  ;;  %v910_v48 = vpack.c.bf16 %v656_v46, %v656_v46  ;;  %v6584_v33 = vpop.permute.xlu2 %1562 }
 0x245   :  { %v1396_v53 = vpack.c.b16 %v1392_v28, %v1391_v39  ;;  %v1099_v41 = vunpack.c.l.b16 %v926_v0  ;;  %v1079_v63 = vunpack.c.l.b16 %v910_v48 }
 0x247   :  { %1417 = vmatpush.bf16.msrb.mxu0 %v1396_v53 }
 0x248   :  { %1916 = vrot.lane.b32.xlu1 %v1396_v53, %s6047_s2  ;;  %2147 = vrot.lane.b32.xlu2 %v1016_v31, %s6034_s1 }
 0x249   :  { %v882_v54 = vpop.f32.mrf.mxu3  ;;  %1047 = vmatpush.bf16.xpose.msrb.mxu3 %v1037_v50 }
 0x24a   :  { %v771_v20 = vpop.f32.mrf.mxu1  ;;  %v942_v47 = vpack.c.bf16 %v882_v54, %v882_v54  ;;  %v658_v62 = vpop.f32.mrf.mxu0 }
 0x24b   :  { %1418 = vmatpush.bf16.msrb.mxu0 %v6528_v37  ;;  %v927_v60 = vpack.c.bf16 %v771_v20, %v771_v20  ;;  %v911_v10 = vpack.c.bf16 %v658_v62, %v658_v62  ;;  %v6594_v36 = vpop.permute.xlu2 %2716 }
 0x24c   :  { %v1470_v58 = vunpack.c.l.b16 %v942_v47 }
 0x24d   :  { %v1100_v7 = vunpack.c.l.b16 %v927_v60  ;;  %v1080_v29 = vunpack.c.l.b16 %v911_v10 }
 0x24f   :  { %1419 = vmatpush.bf16.msrb.mxu0 %v6510_v19  ;;  %v6578_v4 = vpack.c.b16 %v1100_v7, %v1099_v41  ;;  %v6588_v16 = vpack.c.b16 %v1080_v29, %v1079_v63  ;;  %v6669_v41 = vpop.permute.xlu0 %1560 }
 0x250   :  { %2489 = vrot.lane.b32.xlu1 %v1396_v53, %s6034_s1  ;;  %1566 = vrot.lane.b32.xlu2 %v6544_v21, %s6047_s2 }
 0x251   :  { %v884_v56 = vpop.f32.mrf.mxu3  ;;  %1048 = vmatpush.bf16.xpose.msrb.mxu3 %v1034_v57 }
 0x252   :  { %v943_v22 = vpack.c.bf16 %v884_v56, %v884_v56  ;;  %v774_v59 = vpop.f32.mrf.mxu1  ;;  %v661_v24 = vpop.f32.mrf.mxu0 }
 0x253   :  { %1420 = vmatpush.bf16.msrb.mxu0 %v6461_v55  ;;  %v928_v40 = vpack.c.bf16 %v774_v59, %v774_v59  ;;  %v912_v30 = vpack.c.bf16 %v661_v24, %v661_v24  ;;  %v6608_v25 = vpop.permute.xlu2 %1912 }
 0x254   :  { %v1471_v38 = vunpack.c.l.b16 %v943_v22 }
 0x255   :  { %v1101_v18 = vunpack.c.l.b16 %v928_v40  ;;  %v1081_v32 = vunpack.c.l.b16 %v912_v30 }
 0x256   :  { %v6568_v61 = vpack.c.b16 %v1471_v38, %v1470_v58 }
 0x257   :  { %v6675_v48 = vpop.permute.xlu0 %1910 }
 0x258   :  { %8418 = vst [vmem:[#allocation26_spill] sm:$0xff] %v6568_v61  ;;  %1983 = vrot.lane.b32.xlu0 %v6568_v61, %s6047_s2  ;;  %3062 = vrot.lane.b32.xlu1 %v1396_v53, %s6048_s26  ;;  %v6612_v53 = vpop.permute.xlu1 %2483 }
 0x259   :  { %v887_v1 = vpop.f32.mrf.mxu3  ;;  %2720 = vrot.lane.b32.xlu2 %v1016_v31, %s6048_s26  ;;  %1049 = vmatpush.bf16.xpose.msrb.mxu3 %v1031_v2 }
 0x25a   :  { %v776_v11 = vpop.f32.mrf.mxu1  ;;  %v944_v15 = vpack.c.bf16 %v887_v1, %v887_v1 }
 0x25b   :  { %v929_v5 = vpack.c.bf16 %v776_v11, %v776_v11  ;;  %v6620_v46 = vpop.permute.xlu2 %2710 }
 0x25c   :  { %v1472_v17 = vunpack.c.l.b16 %v944_v15 }
 0x25d   :  { %v1102_v49 = vunpack.c.l.b16 %v929_v5 }
 0x25f   :  { %v6598_v31 = vpack.c.b16 %v1102_v49, %v1101_v18 }
 0x260   :  { %2143 = vrot.lane.b32.xlu0 %v6492_v8, %s6034_s1  ;;  %2783 = vrot.lane.b32.xlu1 %v6578_v4, %s6048_s26  ;;  %v6628_v56 = vpop.permute.xlu1 %1570 }
 0x261   :  { %4945 = vmatmul.msk.bf16.vlgmr.msrb.gmra.mxu3 %vm1017_vm1, %v6444_v23  ;;  %v889_v14 = vpop.f32.mrf.mxu3  ;;  %v663_v23 = vpop.f32.mrf.mxu0 }
 0x262   :  { %v945_v42 = vpack.c.bf16 %v889_v14, %v889_v14  ;;  %v779_v8 = vpop.f32.mrf.mxu1  ;;  %v913_v26 = vpack.c.bf16 %v663_v23, %v663_v23 }
 0x263   :  { %v930_v54 = vpack.c.bf16 %v779_v8, %v779_v8  ;;  %v6634_v57 = vpop.permute.xlu2 %2487 }
 0x264   :  { %v1473_v9 = vunpack.c.l.b16 %v945_v42  ;;  %v1082_v34 = vunpack.c.l.b16 %v913_v26  ;;  %v950_v26 = vlaneseq }
 0x265   :  { %v1103_v20 = vunpack.c.l.b16 %v930_v54 }
 0x266   :  { %v6600_v12 = vpack.c.b16 %v1473_v9, %v1472_v17  ;;  %v6610_v39 = vpack.c.b16 %v1082_v34, %v1081_v32  ;;  %v6694_v32 = vshrl.u32 %v950_v26, 7  ;;  %v6698_v54 = vand.u32 127, %v950_v26 }
 0x268   :  { %2135 = vrot.lane.b32.xlu0 %v6502_v44, %s6034_s1  ;;  %2775 = vrot.lane.b32.xlu1 %v6588_v16, %s6048_s26  ;;  %8419 = vst [vmem:[#allocation27_spill] sm:$0xff] %v6600_v12  ;;  %v6636_v58 = vpop.permute.xlu1 %2708  ;;  %vm961_vm3 = vcmp.ge.s32.totalorder %v6694_v32, %v6698_v54 }
 0x269   :  { %v892_v47 = vpop.f32.mrf.mxu3  ;;  %v6677_v63 = vpop.f32.mrf.mxu0 }
 0x26a   :  { %v781_v35 = vpop.f32.mrf.mxu1  ;;  %v946_v59 = vpack.c.bf16 %v892_v47, %v892_v47 }
 0x26b   :  { %v931_v28 = vpack.c.bf16 %v781_v35, %v781_v35 }
 0x26c   :  { %v1474_v60 = vunpack.c.l.b16 %v946_v59 }
 0x26d   :  { %v1104_v50 = vunpack.c.l.b16 %v931_v28 }
 0x270   :  { %1985 = vrot.lane.b32.xlu0 %v6600_v12, %s6047_s2  ;;  %1639 = vrot.lane.b32.xlu1 %v6598_v31, %s6047_s2  ;;  %v6646_v62 = vpop.permute.xlu1 %2485 }
 0x271   :  { %4946 = vmatmul.msk.bf16.gmra.mxu3 %vm1017_vm1, %v6502_v44  ;;  %v6618_v44 = vpack.c.b16 %v1104_v50, %v1103_v20  ;;  %v894_v22 = vpop.f32.mrf.mxu3  ;;  %v6687_v34 = vpop.f32.mrf.mxu0  ;;  %v953_v50 = vadd.s32 16, %v6694_v32  ;;  %v6049_v20 = vmov -1e+30  }
 0x272   :  { %v947_v38 = vpack.c.bf16 %v894_v22, %v894_v22 }
 0x273   :  { %v1130_v28 = vsel %vm1017_vm1, %v6618_v44, 0  ;;  %vm963_vm2 = vcmp.ge.s32.totalorder %v953_v50, %v6698_v54 }
 0x274   :  { %v6704_v47 = vsel %vm963_vm2, 0.0, %v6049_v20 }
 0x278   :  { %1572 = vrot.lane.b32.xlu0 %v6552_v51, %s6047_s2  ;;  %1631 = vrot.lane.b32.xlu1 %v6610_v39, %s6047_s2  ;;  %v6655_v2 = vpop.permute.xlu1 %1564 }
 0x280   :  { %2145 = vrot.lane.b32.xlu0 %v6552_v51, %s6034_s1  ;;  %1641 = vrot.lane.b32.xlu1 %v6618_v44, %s6047_s2  ;;  %v6663_v7 = vpop.permute.xlu1 %2137 }
 0x281   :  { %4947 = vmatmul.msk.bf16.gmra.mxu3 %vm1017_vm1, %v6516_v27  ;;  %v1475_v27 = vunpack.c.l.b16 %v947_v38  ;;  %v1127_v38 = vsel %vm1017_vm1, %v6598_v31, 0 }
 0x283   :  { %v6648_v0 = vpack.c.b16 %v1475_v27, %v1474_v60  ;;  %v6724_v27 = vsel %vm961_vm3, 0.0, %v6049_v20 }
 0x285   :  { %8421 = vst [vmem:[#allocation29_spill] sm:$0xff] %v6648_v0 }
 0x288   :  { %2718 = vrot.lane.b32.xlu0 %v6552_v51, %s6048_s26  ;;  %2214 = vrot.lane.b32.xlu1 %v6618_v44, %s6034_s1  ;;  %v6644_v51 = vpop.permute.xlu2 %3060 }
 0x289   :  { %8420 = vst [vmem:[#allocation28_spill] sm:$0xff] %v6644_v51 }
 0x290   :  { %1914 = vrot.lane.b32.xlu0 %v6528_v37, %s6047_s2  ;;  %2787 = vrot.lane.b32.xlu1 %v6618_v44, %s6048_s26 }
 0x291   :  { %4948 = vmatmul.msk.bf16.gmra.mxu3 %vm1017_vm1, %v6544_v21 }
 0x298   :  { %1987 = vrot.lane.b32.xlu0 %v6648_v0, %s6047_s2  ;;  %3058 = vrot.lane.b32.xlu1 %v6510_v19, %s6048_s26 }
 0x29a   :  { %v1575_v37 = vpop.permute.xlu2 %1574 }
 0x29b   :  { %v1598_v1 = vsel %vm1017_vm1, %v1575_v37, 0  ;;  %v1124_v37 = vsel %vm1017_vm1, %v6578_v4, 0 }
 0x29c   :  { %1604 = vmatpush.bf16.xpose.msrb.mxu2 %v1598_v1 }
 0x2a0   :  { %2560 = vrot.lane.b32.xlu0 %v6648_v0, %s6034_s1  ;;  %2556 = vrot.lane.b32.xlu1 %v6568_v61, %s6034_s1 }
 0x2a2   :  { %v2148_v26 = vpop.permute.xlu2 %2147 }
 0x2a8   :  { %2712 = vrot.lane.b32.xlu0 %v6544_v21, %s6048_s26 }
 0x2b0   :  { %1629 = vrot.lane.b32.xlu0 %v6588_v16, %s6047_s2 }
 0x2b2   :  { %v6667_v19 = vpop.permute.xlu1 %2139 }
 0x2b8   :  { %2212 = vrot.lane.b32.xlu0 %v6598_v31, %s6034_s1 }
 0x2ba   :  { %v1917_v10 = vpop.permute.xlu1 %1916 }
 0x2bb   :  { %1938 = vmatpush.bf16.msra.mxu0 %v1917_v10  ;;  %v784_v11 = vpop.f32.mrf.mxu1  ;;  %v671_v22 = vpop.f32.mrf.mxu0 }
 0x2bc   :  { %v932_v21 = vpack.c.bf16 %v784_v11, %v784_v11 }
 0x2be   :  { %v1105_v5 = vunpack.c.l.b16 %v932_v21 }
 0x2c0   :  { %2204 = vrot.lane.b32.xlu0 %v6610_v39, %s6034_s1 }
 0x2c2   :  { %v897_v24 = vpop.f32.mrf.mxu3 }
 0x2c3   :  { %v786_v29 = vpop.f32.mrf.mxu1  ;;  %v948_v15 = vpack.c.bf16 %v897_v24, %v897_v24  ;;  %v673_v60 = vpop.f32.mrf.mxu0  ;;  %v916_v24 = vpack.c.bf16 %v671_v22, %v671_v22  ;;  %v1589_v22 = vsel %vm1017_vm1, %v6539_v52, 0  ;;  %v956_v52 = vadd.s32 40, %v6694_v32 }
 0x2c4   :  { %v933_v14 = vpack.c.bf16 %v786_v29, %v786_v29  ;;  %v917_v11 = vpack.c.bf16 %v673_v60, %v673_v60 }
 0x2c5   :  { %v1476_v18 = vunpack.c.l.b16 %v948_v15  ;;  %vm966_vm7 = vcmp.ge.s32.totalorder %v956_v52, %v6698_v54 }
 0x2c6   :  { %v1106_v42 = vunpack.c.l.b16 %v933_v14  ;;  %v1086_v29 = vunpack.c.l.b16 %v917_v11 }
 0x2c8   :  { %2777 = vrot.lane.b32.xlu0 %v6610_v39, %s6048_s26  ;;  %v1110_v40 = vpack.c.b16 %v1106_v42, %v1105_v5  ;;  %v1085_v42 = vunpack.c.l.b16 %v916_v24  ;;  %v1567_v24 = vpop.permute.xlu2 %1566 }
 0x2ca   :  { %v6681_v8 = vpop.permute.xlu0 %1983  ;;  %v899_v49 = vpop.f32.mrf.mxu3  ;;  %v1133_v9 = vsel %vm1017_vm1, %v1110_v40, 0 }
 0x2cb   :  { %v949_v23 = vpack.c.bf16 %v899_v49, %v899_v49  ;;  %1139 = vmatpush.bf16.xpose.msra.mxu3 %v1133_v9  ;;  %v6741_v49 = vpack.c.b16 %v1086_v29, %v1085_v42  ;;  %v954_v9 = vadd.s32 24, %v6694_v32 }
 0x2cd   :  { %v1477_v17 = vunpack.c.l.b16 %v949_v23  ;;  %v957_v23 = vadd.s32 48, %v6694_v32  ;;  %vm964_vm6 = vcmp.ge.s32.totalorder %v954_v9, %v6698_v54 }
 0x2ce   :  { %v6767_v50 = vsel %vm964_vm6, 0.0, %v6049_v20 }
 0x2cf   :  { %v6684_v30 = vpack.c.b16 %v1477_v17, %v1476_v18  ;;  %vm967_vm5 = vcmp.ge.s32.totalorder %v957_v23, %v6698_v54 }
 0x2d0   :  { %1643 = vrot.lane.b32.xlu0 %v1110_v40, %s6047_s2  ;;  %v6755_v17 = vsel %vm967_vm5, 0.0, %v6049_v20  ;;  %v2721_v9 = vpop.permute.xlu2 %2720 }
 0x2d1   :  { %8422 = vst [vmem:[#allocation30_spill] sm:$0xff] %v6684_v30  ;;  %1989 = vrot.lane.b32.xlu2 %v6684_v30, %s6047_s2  ;;  %1502 = vmatpush.bf16.msrb.mxu1 %v6684_v30 }
 0x2d2   :  { %v6692_v35 = vpop.permute.xlu0 %2143 }
 0x2d3   :  { %1140 = vmatpush.bf16.xpose.msra.mxu3 %v1130_v28 }
 0x2d5   :  { %1503 = vmatpush.bf16.msrb.mxu1 %v6648_v0 }
 0x2d8   :  { %2558 = vrot.lane.b32.xlu0 %v6600_v12, %s6034_s1 }
 0x2d9   :  { %2562 = vrot.lane.b32.xlu2 %v6684_v30, %s6034_s1  ;;  %1504 = vmatpush.bf16.msrb.mxu1 %v6600_v12 }
 0x2da   :  { %v6711_v44 = vpop.permute.xlu0 %2135 }
 0x2db   :  { %1141 = vmatpush.bf16.xpose.msra.mxu3 %v1127_v38 }
 0x2dd   :  { %1505 = vmatpush.bf16.msrb.mxu1 %v6568_v61 }
 0x2e0   :  { %2216 = vrot.lane.b32.xlu0 %v1110_v40, %s6034_s1 }
 0x2e1   :  { %1637 = vrot.lane.b32.xlu2 %v6578_v4, %s6047_s2 }
 0x2e2   :  { %v6721_v59 = vpop.permute.xlu0 %1985 }
 0x2e3   :  { %1142 = vmatpush.bf16.xpose.msra.mxu3 %v1124_v37 }
 0x2e4   :  { %v1051_v1 = vpop.f32.mrf.mxu3 }
 0x2e5   :  { %v6729_v10 = vadd.f32 %v1051_v1, %v6724_v27 }
 0x2e7   :  { %v1165_v21 = vsel %vm1164_vm4, %v6729_v10, -inf }
 0x2e8   :  { %2789 = vrot.lane.b32.xlu0 %v1110_v40, %s6048_s26  ;;  %1166 = vmax.xlane.f32.xlu1 %v1165_v21 }
 0x2e9   :  { %2210 = vrot.lane.b32.xlu2 %v6578_v4, %s6034_s1  ;;  %v1592_v4 = vsel %vm1017_vm1, %v6628_v56, 0  ;;  %v914_v56 = vpack.c.bf16 %v6677_v63, %v6677_v63 }
 0x2ea   :  { %v1573_v14 = vpop.permute.xlu0 %1572  ;;  %4949 = vmatmul.msk.bf16.vlgmr.msra.gmra.mxu3 %vm1017_vm1, %v6588_v16 }
 0x2eb   :  { %v1595_v5 = vsel %vm1017_vm1, %v1573_v14, 0  ;;  %v6788_v14 = vsel %vm966_vm7, 0.0, %v6049_v20 }
 0x2ec   :  { %1605 = vmatpush.bf16.xpose.msrb.mxu2 %v1595_v5  ;;  %v6739_v15 = vpop.f32.mrf.mxu3  ;;  %v6793_v5 = vpop.permute.xlu1 %2489 }
 0x2f0   :  { %2781 = vrot.lane.b32.xlu0 %v6741_v49, %s6048_s26 }
 0x2f1   :  { %2202 = vrot.lane.b32.xlu2 %v6588_v16, %s6034_s1  ;;  %v915_v16 = vpack.c.bf16 %v6687_v34, %v6687_v34  ;;  %v2171_v34 = vsel %vm1017_vm1, %v2148_v26, 0 }
 0x2f2   :  { %v2146_v40 = vpop.permute.xlu0 %2145 }
 0x2f3   :  { %v1084_v38 = vunpack.c.l.b16 %v915_v16  ;;  %v2168_v21 = vsel %vm1017_vm1, %v2146_v40, 0  ;;  %v958_v16 = vadd.s32 56, %v6694_v32 }
 0x2f4   :  { %1606 = vmatpush.bf16.xpose.msrb.mxu2 %v1592_v4  ;;  %v6751_v18 = vpop.f32.mrf.mxu3 }
 0x2f5   :  { %vm968_vm10 = vcmp.ge.s32.totalorder %v958_v16, %v6698_v54 }
 0x2f9   :  { %2785 = vrot.lane.b32.xlu2 %v6598_v31, %s6048_s26  ;;  %v1083_v31 = vunpack.c.l.b16 %v914_v56  ;;  %v2162_v56 = vsel %vm1017_vm1, %v6596_v3, 0 }
 0x2fa   :  { %v6764_v28 = vpop.permute.xlu0 %2718  ;;  %4950 = vmatmul.msk.bf16.gmra.mxu3 %vm1017_vm1, %v6610_v39 }
 0x2fb   :  { %v1089_v1 = vpack.c.b16 %v1084_v38, %v1083_v31 }
 0x2fc   :  { %1607 = vmatpush.bf16.xpose.msrb.mxu2 %v1589_v22  ;;  %v1058_v60 = vpop.f32.mrf.mxu3  ;;  %v2744_v22 = vsel %vm1017_vm1, %v2721_v9, 0 }
 0x2fd   :  { %v6775_v63 = vadd.f32 %v1058_v60, %v6767_v50 }
 0x2ff   :  { %v1174_v37 = vsel %vm1164_vm4, %v6775_v63, -inf }
 0x300   :  { %1175 = vmax.xlane.f32.xlu1 %v1174_v37  ;;  %v2741_v37 = vsel %vm1017_vm1, %v6764_v28, 0  ;;  %v2738_v28 = vsel %vm1017_vm1, %v6594_v36, 0 }
 0x301   :  { %1633 = vrot.lane.b32.xlu2 %v1089_v1, %s6047_s2 }
 0x302   :  { %v1915_v39 = vpop.permute.xlu0 %1914 }
 0x303   :  { %4961 = vmatmul.msk.bf16.vlgmr.msrb.gmra.mxu2 %vm1017_vm1, %v6669_v41  ;;  %1939 = vmatpush.bf16.msra.mxu0 %v1915_v39  ;;  %v952_v41 = vadd.s32 8, %v6694_v32 }
 0x304   :  { %2177 = vmatpush.bf16.xpose.msra.mxu2 %v2171_v34  ;;  %v1061_v11 = vpop.f32.mrf.mxu3  ;;  %v6820_v34 = vpop.permute.xlu1 %3062 }
 0x305   :  { %vm962_vm8 = vcmp.ge.s32.totalorder %v952_v41, %v6698_v54  ;;  %8423 = vst [vmem:[#allocation31_spill] sm:$0xff] %v6820_v34 }
 0x307   :  { %1940 = vmatpush.bf16.msra.mxu0 %v6608_v25  ;;  %v2165_v25 = vsel %vm1017_vm1, %v6692_v35, 0  ;;  %v955_v35 = vadd.s32 32, %v6694_v32 }
 0x309   :  { %2206 = vrot.lane.b32.xlu2 %v1089_v1, %s6034_s1  ;;  %vm965_vm9 = vcmp.ge.s32.totalorder %v955_v35, %v6698_v54 }
 0x30a   :  { %v1988_v29 = vpop.permute.xlu0 %1987  ;;  %4951 = vmatmul.msk.bf16.gmra.mxu3 %vm1017_vm1, %v1089_v1  ;;  %v6827_v32 = vsel %vm965_vm9, 0.0, %v6049_v20 }
 0x30b   :  { %1941 = vmatpush.bf16.msra.mxu0 %v6675_v48  ;;  %v6804_v48 = vsel %vm962_vm8, 0.0, %v6049_v20  ;;  %v6839_v54 = vadd.f32 %v1061_v11, %v6827_v32 }
 0x30c   :  { %2178 = vmatpush.bf16.xpose.msra.mxu2 %v2168_v21  ;;  %v1063_v42 = vpop.f32.mrf.mxu3  ;;  %v6818_v38 = vadd.f32 %v6739_v15, %v6804_v48  ;;  %v6834_v15 = vsel %vm968_vm10, 0.0, %v6049_v20  ;;  %v6848_v39 = vpop.permute.xlu1 %2783 }
 0x30d   :  { %v6798_v40 = vadd.f32 %v1063_v42, %v6788_v14  ;;  %v1177_v20 = vsel %vm1164_vm4, %v6839_v54, -inf  ;;  %v2735_v42 = vsel %vm1017_vm1, %v6559_v6, 0  ;;  %v6876_v6 = vadd.f32 %v6751_v18, %v6704_v47 }
 0x30f   :  { %v1180_v4 = vsel %vm1164_vm4, %v6798_v40, -inf }
 0x310   :  { %1181 = vmax.xlane.f32.xlu1 %v1180_v4 }
 0x311   :  { %2779 = vrot.lane.b32.xlu2 %v1089_v1, %s6048_s26 }
 0x312   :  { %v6807_v23 = vpop.permute.xlu0 %2560 }
 0x313   :  { %4962 = vmatmul.msk.bf16.gmra.mxu2 %vm1017_vm1, %v6584_v33  ;;  %v1168_v33 = vsel %vm1164_vm4, %v6818_v38, -inf }
 0x314   :  { %2179 = vmatpush.bf16.xpose.msra.mxu2 %v2165_v25  ;;  %v1066_v26 = vpop.f32.mrf.mxu3  ;;  %v6858_v11 = vpop.permute.xlu1 %2775 }
 0x315   :  { %v6882_v16 = vadd.f32 %v1066_v26, %v6755_v17 }
 0x319   :  { %1635 = vrot.lane.b32.xlu2 %v6741_v49, %s6047_s2 }
 0x31a   :  { %1169 = vmax.xlane.f32.xlu0 %v1168_v33  ;;  %v6831_v3 = vpop.permute.xlu0 %2712  ;;  %4952 = vmatmul.msk.bf16.gmra.mxu3 %vm1017_vm1, %v6741_v49 }
 0x31c   :  { %2180 = vmatpush.bf16.xpose.msra.mxu2 %v2162_v56  ;;  %v1068_v60 = vpop.f32.mrf.mxu3 }
 0x31d   :  { %v6842_v31 = vadd.f32 %v1068_v60, %v6834_v15 }
 0x31f   :  { %v1186_v1 = vsel %vm1164_vm4, %v6842_v31, -inf }
 0x320   :  { %1187 = vmax.xlane.f32.xlu1 %v1186_v1 }
 0x321   :  { %2208 = vrot.lane.b32.xlu2 %v6741_v49, %s6034_s1  ;;  %v1640_v49 = vpop.permute.xlu1 %1639 }
 0x322   :  { %1178 = vmax.xlane.f32.xlu0 %v1177_v20  ;;  %v1630_v52 = vpop.permute.xlu0 %1629  ;;  %v1661_v18 = vsel %vm1017_vm1, %v1640_v49, 0 }
 0x323   :  { %4963 = vmatmul.msk.bf16.gmra.mxu2 %vm1017_vm1, %v6655_v2 }
 0x324   :  { %2750 = vmatpush.bf16.xpose.msrb.mxu2 %v2744_v22 }
 0x329   :  { %v1632_v2 = vpop.permute.xlu1 %1631 }
 0x32a   :  { %v2213_v21 = vpop.permute.xlu0 %2212 }
 0x32b   :  { %v1990_v41 = vpop.permute.xlu2 %1989 }
 0x32c   :  { %2751 = vmatpush.bf16.xpose.msrb.mxu2 %v2741_v37  ;;  %2011 = vmatpush.bf16.msra.mxu1 %v1990_v41 }
 0x330   :  { %2012 = vmatpush.bf16.msra.mxu1 %v1988_v29 }
 0x332   :  { %v6862_v25 = vpop.permute.xlu0 %2204 }
 0x333   :  { %4964 = vmatmul.msk.bf16.gmra.mxu2 %vm1017_vm1, %v1567_v24  ;;  %v6869_v4 = vpop.permute.xlu2 %2562  ;;  %v1642_v24 = vpop.permute.xlu1 %1641 }
 0x334   :  { %2752 = vmatpush.bf16.xpose.msrb.mxu2 %v2738_v28  ;;  %2013 = vmatpush.bf16.msra.mxu1 %v6721_v59  ;;  %v1664_v59 = vsel %vm1017_vm1, %v1642_v24, 0 }
 0x338   :  { %2014 = vmatpush.bf16.msra.mxu1 %v6681_v8  ;;  %v1171_v8 = vsel %vm1164_vm4, %v6876_v6, -inf }
 0x33a   :  { %v6867_v36 = vpop.permute.xlu0 %2777 }
 0x33b   :  { %v1638_v29 = vpop.permute.xlu2 %1637  ;;  %v2215_v33 = vpop.permute.xlu1 %2214 }
 0x33c   :  { %2753 = vmatpush.bf16.xpose.msrb.mxu2 %v2735_v42  ;;  %v1658_v37 = vsel %vm1017_vm1, %v1638_v29, 0  ;;  %v2234_v42 = vsel %vm1017_vm1, %v2213_v21, 0 }
 0x342   :  { %v1644_v9 = vpop.permute.xlu0 %1643 }
 0x343   :  { %v1667_v35 = vsel %vm1017_vm1, %v1644_v9, 0  ;;  %4977 = vmatmul.msk.bf16.vlgmr.msra.gmra.mxu2 %vm1017_vm1, %v6550_v43  ;;  %v1183_v43 = vsel %vm1164_vm4, %v6882_v16, -inf  ;;  %v2211_v22 = vpop.permute.xlu2 %2210  ;;  %v2788_v20 = vpop.permute.xlu1 %2787 }
 0x344   :  { %1673 = vmatpush.bf16.xpose.msrb.mxu3 %v1667_v35  ;;  %v2231_v24 = vsel %vm1017_vm1, %v2211_v22, 0 }
 0x34a   :  { %1172 = vmax.xlane.f32.xlu2 %v1171_v8  ;;  %v6884_v56 = vpop.permute.xlu0 %2558 }
 0x34b   :  { %v6893_v1 = vpop.permute.xlu2 %2202  ;;  %v6899_v41 = vpop.permute.xlu1 %3058 }
 0x34c   :  { %1674 = vmatpush.bf16.xpose.msrb.mxu3 %v1664_v59  ;;  %8424 = vst [vmem:[#allocation32_spill] sm:$0xff] %v6899_v41 }
 0x352   :  { %1184 = vmax.xlane.f32.xlu2 %v1183_v43  ;;  %v2217_v60 = vpop.permute.xlu0 %2216 }
 0x353   :  { %4978 = vmatmul.msk.bf16.gmra.mxu2 %vm1017_vm1, %v6711_v44  ;;  %v2240_v26 = vsel %vm1017_vm1, %v2217_v60, 0  ;;  %v2237_v44 = vsel %vm1017_vm1, %v2215_v33, 0  ;;  %v2786_v28 = vpop.permute.xlu2 %2785  ;;  %v6911_v8 = vpop.permute.xlu1 %2556 }
 0x354   :  { %1675 = vmatpush.bf16.xpose.msrb.mxu3 %v1661_v18 }
 0x35c   :  { %1676 = vmatpush.bf16.xpose.msrb.mxu3 %v1658_v37 }
 0x363   :  { %4965 = vmatmul.msk.bf16.vlgmr.msrb.gmra.mxu3 %vm1017_vm1, %v1630_v52  ;;  %4979 = vmatmul.msk.bf16.gmra.mxu2 %vm1017_vm1, %v6663_v7  ;;  %v2790_v52 = vpop.permute.xlu0 %2789  ;;  %v1634_v7 = vpop.permute.xlu2 %1633 }
 0x364   :  { %2246 = vmatpush.bf16.xpose.msra.mxu3 %v2240_v26  ;;  %v2813_v21 = vsel %vm1017_vm1, %v2790_v52, 0 }
 0x36b   :  { %v6920_v18 = vpop.permute.xlu2 %2206 }
 0x36c   :  { %2247 = vmatpush.bf16.xpose.msra.mxu3 %v2237_v44  ;;  %v2807_v44 = vsel %vm1017_vm1, %v2786_v28, 0 }
 0x36d   :  { %v1144_v49 = vpop.f32.mrf.mxu3 }
 0x36e   :  { %v6903_v9 = vadd.f32 %v1144_v49, %v6724_v27 }
 0x370   :  { %v1189_v35 = vsel %vm1164_vm4, %v6903_v9, -inf }
 0x371   :  { %1190 = vmax.xlane.f32.xlu2 %v1189_v35 }
 0x373   :  { %4966 = vmatmul.msk.bf16.gmra.mxu3 %vm1017_vm1, %v1632_v2  ;;  %4980 = vmatmul.msk.bf16.gmra.mxu2 %vm1017_vm1, %v6667_v19  ;;  %v1167_v2 = vpop.xlane.xlu1 %1166  ;;  %v2810_v19 = vsel %vm1017_vm1, %v2788_v20, 0 }
 0x374   :  { %2248 = vmatpush.bf16.xpose.msra.mxu3 %v2234_v42  ;;  %v1213_v60 = vsub.f32 %v6729_v10, %v1167_v2  ;;  %v6935_v10 = vpop.permute.xlu2 %2779 }
 0x375   :  { %v1146_v59 = vpop.f32.mrf.mxu3 }
 0x376   :  { %v6915_v29 = vadd.f32 %v1146_v59, %v6804_v48  ;;  %v1229_v26 = vmul.f32 1.442695, %v1213_v60 }
 0x378   :  { %v1192_v43 = vsel %vm1164_vm4, %v6915_v29, -inf  ;;  %5500 = vpow2.f32 %v1229_v26 }
 0x379   :  { %1193 = vmax.xlane.f32.xlu0 %v1192_v43 }
 0x37b   :  { %v1176_v20 = vpop.xlane.xlu1 %1175 }
 0x37c   :  { %2249 = vmatpush.bf16.xpose.msra.mxu3 %v2231_v24  ;;  %v1216_v52 = vsub.f32 %v6775_v63, %v1176_v20  ;;  %v2804_v24 = vsel %vm1017_vm1, %v6848_v39, 0 }
 0x37d   :  { %v1149_v22 = vpop.f32.mrf.mxu3 }
 0x37e   :  { %v6923_v33 = vadd.f32 %v1149_v22, %v6704_v47  ;;  %v6942_v28 = vpop.eup %5500  ;;  %v6951_v22 = vpop.permute.xlu0 %2781 }
 0x37f   :  { %v1261_v63 = vsel %vm1164_vm4, %v6942_v28, 0.0 }
 0x380   :  { %v1195_v37 = vsel %vm1164_vm4, %v6923_v33, -inf }
 0x381   :  { %1196 = vmax.xlane.f32.xlu2 %v1195_v37 }
 0x383   :  { %4967 = vmatmul.msk.bf16.gmra.mxu3 %vm1017_vm1, %v1634_v7  ;;  %4993 = vmatmul.msk.bf16.vlgmr.msrb.gmra.mxu2 %vm1017_vm1, %v6570_v45  ;;  %v1235_v45 = vmul.f32 1.442695, %v1216_v52 }
 0x384   :  { %2819 = vmatpush.bf16.xpose.msrb.mxu3 %v2813_v21 }
 0x385   :  { %v1151_v49 = vpop.f32.mrf.mxu3  ;;  %5502 = vpow2.f32 %v1235_v45 }
 0x386   :  { %v1609_v42 = vpop.f32.mrf.mxu2  ;;  %v6933_v35 = vadd.f32 %v1151_v49, %v6767_v50 }
 0x388   :  { %v1198_v7 = vsel %vm1164_vm4, %v6933_v35, -inf }
 0x389   :  { %1199 = vmax.xlane.f32.xlu0 %v1198_v7 }
 0x38b   :  { %v6956_v39 = vpop.eup %5502 }
 0x38c   :  { %2820 = vmatpush.bf16.xpose.msrb.mxu3 %v2810_v19  ;;  %v1636_v19 = vpop.permute.xlu2 %1635  ;;  %v1270_v20 = vsel %vm1164_vm4, %v6956_v39, 0.0 }
 0x38d   :  { %v1154_v59 = vpop.f32.mrf.mxu3  ;;  %v1170_v49 = vpop.xlane.xlu0 %1169 }
 0x38e   :  { %v1611_v21 = vpop.f32.mrf.mxu2  ;;  %v6945_v43 = vadd.f32 %v1154_v59, %v6827_v32 }
 0x390   :  { %v1201_v2 = vsel %vm1164_vm4, %v6945_v43, -inf }
 0x391   :  { %1262 = vadd.xlane.f32.xlu0 %v1261_v63  ;;  %1202 = vmax.xlane.f32.xlu2 %v1201_v2  ;;  %v6980_v63 = vadd.f32 %v1609_v42, %v6724_v27  ;;  %v7000_v42 = vadd.f32 %v1611_v21, %v6804_v48 }
 0x393   :  { %4968 = vmatmul.msk.bf16.gmra.mxu3 %vm1017_vm1, %v1636_v19  ;;  %4994 = vmatmul.msk.bf16.gmra.mxu2 %vm1017_vm1, %v6636_v58 }
 0x394   :  { %2821 = vmatpush.bf16.xpose.msrb.mxu3 %v2807_v44 }
 0x395   :  { %v1156_v37 = vpop.f32.mrf.mxu3  ;;  %v1179_v2 = vpop.xlane.xlu0 %1178 }
 0x396   :  { %v1614_v60 = vpop.f32.mrf.mxu2  ;;  %v6959_v26 = vadd.f32 %v1156_v37, %v6788_v14  ;;  %v1217_v37 = vsub.f32 %v6839_v54, %v1179_v2  ;;  %v2209_v2 = vpop.permute.xlu2 %2208 }
 0x398   :  { %v1204_v44 = vsel %vm1164_vm4, %v6959_v26, -inf }
 0x399   :  { %1271 = vadd.xlane.f32.xlu0 %v1270_v20  ;;  %1205 = vmax.xlane.f32.xlu2 %v1204_v44  ;;  %v1698_v20 = vsel %vm1164_vm4, %v6980_v63, -inf }
 0x39c   :  { %2822 = vmatpush.bf16.xpose.msrb.mxu3 %v2804_v24 }
 0x39d   :  { %v1159_v7 = vpop.f32.mrf.mxu3 }
 0x39e   :  { %v1616_v52 = vpop.f32.mrf.mxu2  ;;  %v6969_v45 = vadd.f32 %v1159_v7, %v6755_v17 }
 0x39f   :  { %v6966_v58 = vadd.f32 %v1616_v52, %v6767_v50  ;;  %v1237_v52 = vmul.f32 1.442695, %v1217_v37 }
 0x3a0   :  { %v1207_v24 = vsel %vm1164_vm4, %v6969_v45, -inf }
 0x3a1   :  { %v1707_v59 = vsel %vm1164_vm4, %v6966_v58, -inf  ;;  %1208 = vmax.xlane.f32.xlu1 %v1207_v24  ;;  %5504 = vpow2.f32 %v1237_v52  ;;  %v1701_v52 = vsel %vm1164_vm4, %v7000_v42, -inf }
 0x3a2   :  { %1708 = vmax.xlane.f32.xlu2 %v1707_v59 }
 0x3a3   :  { %4981 = vmatmul.msk.bf16.vlgmr.msra.gmra.mxu3 %vm1017_vm1, %v6893_v1  ;;  %4995 = vmatmul.msk.bf16.gmra.mxu2 %vm1017_vm1, %v6620_v46 }
 0x3a5   :  { %v1161_v44 = vpop.f32.mrf.mxu3 }
 0x3a6   :  { %v1619_v19 = vpop.f32.mrf.mxu2  ;;  %v6986_v7 = vadd.f32 %v1161_v44, %v6834_v15 }
 0x3a7   :  { %v7002_v59 = vpop.eup %5504 }
 0x3a8   :  { %v1210_v54 = vsel %vm1164_vm4, %v6986_v7, -inf  ;;  %v1273_v44 = vsel %vm1164_vm4, %v7002_v59, 0.0 }
 0x3a9   :  { %1699 = vmax.xlane.f32.xlu1 %v1698_v20  ;;  %v1214_v20 = vsub.f32 %v6818_v38, %v1170_v49 }
 0x3ae   :  { %v1621_v1 = vpop.f32.mrf.mxu2 }
 0x3af   :  { %v6989_v24 = vadd.f32 %v1621_v1, %v6788_v14 }
 0x3b1   :  { %v1713_v46 = vsel %vm1164_vm4, %v6989_v24, -inf  ;;  %1211 = vmax.xlane.f32.xlu1 %v1210_v54 }
 0x3b2   :  { %1714 = vmax.xlane.f32.xlu0 %v1713_v46 }
 0x3b3   :  { %4982 = vmatmul.msk.bf16.gmra.mxu3 %vm1017_vm1, %v6862_v25  ;;  %4996 = vmatmul.msk.bf16.gmra.mxu2 %vm1017_vm1, %v6831_v3  ;;  %v1231_v25 = vmul.f32 1.442695, %v1214_v20  ;;  %v7010_v3 = vadd.f32 %v1614_v60, %v6704_v47  ;;  %v1182_v20 = vpop.xlane.xlu1 %1181 }
 0x3b4   :  { %v1218_v60 = vsub.f32 %v6798_v40, %v1182_v20 }
 0x3b5   :  { %5506 = vpow2.f32 %v1231_v25  ;;  %v1704_v38 = vsel %vm1164_vm4, %v7010_v3, -inf }
 0x3b6   :  { %v1624_v37 = vpop.f32.mrf.mxu2 }
 0x3b9   :  { %1702 = vmax.xlane.f32.xlu1 %v1701_v52 }
 0x3ba   :  { %1274 = vadd.xlane.f32.xlu0 %v1273_v44 }
 0x3bb   :  { %v7017_v49 = vpop.eup %5506 }
 0x3bd   :  { %v1173_v21 = vpop.xlane.xlu2 %1172 }
 0x3be   :  { %v1215_v1 = vsub.f32 %v6876_v6, %v1173_v21  ;;  %v1626_v46 = vpop.f32.mrf.mxu2  ;;  %v1264_v6 = vsel %vm1164_vm4, %v7017_v49, 0.0  ;;  %v1239_v21 = vmul.f32 1.442695, %v1218_v60 }
 0x3bf   :  { %v7043_v13 = vadd.f32 %v1626_v46, %v6834_v15 }
 0x3c0   :  { %v1233_v54 = vmul.f32 1.442695, %v1215_v1  ;;  %v7027_v1 = vadd.f32 %v1624_v37, %v6755_v17 }
 0x3c1   :  { %1705 = vmax.xlane.f32.xlu1 %v1704_v38 }
 0x3c2   :  { %5508 = vpow2.f32 %v1233_v54  ;;  %v1716_v40 = vsel %vm1164_vm4, %v7027_v1, -inf }
 0x3c3   :  { %4983 = vmatmul.msk.bf16.gmra.mxu3 %vm1017_vm1, %v6920_v18  ;;  %v7030_v18 = vadd.f32 %v1619_v19, %v6827_v32  ;;  %5510 = vpow2.f32 %v1239_v21 }
 0x3c5   :  { %v1710_v54 = vsel %vm1164_vm4, %v7030_v18, -inf  ;;  %v1185_v20 = vpop.xlane.xlu2 %1184 }
 0x3c6   :  { %v2182_v52 = vpop.f32.mrf.mxu2  ;;  %v1219_v37 = vsub.f32 %v6882_v16, %v1185_v20 }
 0x3c8   :  { %v7019_v44 = vpop.eup %5508 }
 0x3c9   :  { %v1267_v25 = vsel %vm1164_vm4, %v7019_v44, 0.0  ;;  %1265 = vadd.xlane.f32.xlu1 %v1264_v6  ;;  %v7037_v60 = vpop.eup %5510  ;;  %v1188_v6 = vpop.xlane.xlu1 %1187 }
 0x3ca   :  { %1268 = vadd.xlane.f32.xlu2 %v1267_v25  ;;  %v1276_v19 = vsel %vm1164_vm4, %v7037_v60, 0.0  ;;  %v1241_v25 = vmul.f32 1.442695, %v1219_v37 }
 0x3cc   :  { %5512 = vpow2.f32 %v1241_v25 }
 0x3ce   :  { %v2184_v38 = vpop.f32.mrf.mxu2 }
 0x3d1   :  { %1717 = vmax.xlane.f32.xlu1 %v1716_v40  ;;  %v1220_v40 = vsub.f32 %v6842_v31, %v1188_v6 }
 0x3d2   :  { %1711 = vmax.xlane.f32.xlu2 %v1710_v54  ;;  %v7050_v20 = vpop.eup %5512 }
 0x3d3   :  { %4984 = vmatmul.msk.bf16.gmra.mxu3 %vm1017_vm1, %v2209_v2  ;;  %v1719_v2 = vsel %vm1164_vm4, %v7043_v13, -inf  ;;  %v1243_v16 = vmul.f32 1.442695, %v1220_v40  ;;  %v1279_v46 = vsel %vm1164_vm4, %v7050_v20, 0.0 }
 0x3d5   :  { %5514 = vpow2.f32 %v1243_v16 }
 0x3d6   :  { %v2187_v21 = vpop.f32.mrf.mxu2 }
 0x3da   :  { %1277 = vadd.xlane.f32.xlu2 %v1276_v19 }
 0x3db   :  { %v7059_v25 = vpop.eup %5514 }
 0x3de   :  { %v2189_v19 = vpop.f32.mrf.mxu2 }
 0x3e2   :  { %1720 = vmax.xlane.f32.xlu2 %v1719_v2 }
 0x3e3   :  { %4997 = vmatmul.msk.bf16.vlgmr.msrb.gmra.mxu3 %vm1017_vm1, %v6858_v11  ;;  %v7062_v11 = vadd.f32 %v2182_v52, %v6724_v27 }
 0x3e4   :  { %v1191_v6 = vpop.xlane.xlu2 %1190 }
 0x3e5   :  { %v1221_v16 = vsub.f32 %v6903_v9, %v1191_v6  ;;  %v2271_v52 = vsel %vm1164_vm4, %v7062_v11, -inf  ;;  %v7080_v6 = vadd.f32 %v2184_v38, %v6804_v48 }
 0x3e6   :  { %v1678_v54 = vpop.f32.mrf.mxu3  ;;  %v7068_v61 = vpop.f32.mrf.mxu2 }
 0x3e7   :  { %v7053_v37 = vadd.f32 %v1678_v54, %v6724_v27  ;;  %v1245_v9 = vmul.f32 1.442695, %v1221_v16 }
 0x3e9   :  { %v1722_v31 = vsel %vm1164_vm4, %v7053_v37, -inf  ;;  %5516 = vpow2.f32 %v1245_v9 }
 0x3ea   :  { %1723 = vmax.xlane.f32.xlu1 %v1722_v31  ;;  %1280 = vadd.xlane.f32.xlu2 %v1279_v46  ;;  %v1282_v46 = vsel %vm1164_vm4, %v7059_v25, 0.0 }
 0x3ec   :  { %v1194_v2 = vpop.xlane.xlu0 %1193 }
 0x3ed   :  { %v1222_v31 = vsub.f32 %v6915_v29, %v1194_v2 }
 0x3ee   :  { %v1680_v40 = vpop.f32.mrf.mxu3 }
 0x3ef   :  { %v7065_v54 = vadd.f32 %v1680_v40, %v6804_v48  ;;  %v1247_v29 = vmul.f32 1.442695, %v1222_v31 }
 0x3f1   :  { %v1725_v30 = vsel %vm1164_vm4, %v7065_v54, -inf  ;;  %5518 = vpow2.f32 %v1247_v29 }
 0x3f2   :  { %1283 = vadd.xlane.f32.xlu1 %v1282_v46  ;;  %1726 = vmax.xlane.f32.xlu0 %v1725_v30  ;;  %v2274_v30 = vsel %vm1164_vm4, %v7080_v6, -inf }
 0x3f3   :  { %2272 = vmax.xlane.f32.xlu2 %v2271_v52  ;;  %4998 = vmatmul.msk.bf16.gmra.mxu3 %vm1017_vm1, %v6867_v36  ;;  %v2194_v36 = vpop.f32.mrf.mxu2  ;;  %v7089_v52 = vpop.eup %5516 }
 0x3f4   :  { %v1197_v16 = vpop.xlane.xlu2 %1196  ;;  %v1285_v12 = vsel %vm1164_vm4, %v7089_v52, 0.0  ;;  %v7112_v41 = vadd.f32 %v2194_v36, %v6788_v14 }
 0x3f5   :  { %v1223_v9 = vsub.f32 %v6923_v33, %v1197_v16  ;;  %v7109_v33 = vadd.f32 %v2189_v19, %v6767_v50 }
 0x3f6   :  { %v1683_v40 = vpop.f32.mrf.mxu3  ;;  %8425 = vst [vmem:[#allocation33_spill] sm:$0xff] %v7112_v41 }
 0x3f7   :  { %v7083_v2 = vadd.f32 %v1683_v40, %v6704_v47  ;;  %v7091_v31 = vpop.eup %5518 }
 0x3f9   :  { %v1728_v46 = vsel %vm1164_vm4, %v7083_v2, -inf }
 0x3fa   :  { %2275 = vmax.xlane.f32.xlu1 %v2274_v30  ;;  %1729 = vmax.xlane.f32.xlu0 %v1728_v46  ;;  %v1288_v30 = vsel %vm1164_vm4, %v7091_v31, 0.0  ;;  %v1249_v46 = vmul.f32 1.442695, %v1223_v9 }
 0x3fb   :  { %v2197_v16 = vpop.f32.mrf.mxu2 }
 0x3fc   :  { %5520 = vpow2.f32 %v1249_v46 }
 0x3fe   :  { %v1685_v38 = vpop.f32.mrf.mxu3 }
 0x3ff   :  { %v7094_v40 = vadd.f32 %v1685_v38, %v6767_v50  ;;  %v7106_v38 = vadd.f32 %v2187_v21, %v6704_v47  ;;  %v2286_v21 = vsel %vm1164_vm4, %v7112_v41, -inf  ;;  %v7135_v41 = vadd.f32 %v2197_v16, %v6755_v17 }
 0x401   :  { %v1731_v29 = vsel %vm1164_vm4, %v7094_v40, -inf }
 0x402   :  { %1732 = vmax.xlane.f32.xlu2 %v1731_v29  ;;  %1286 = vadd.xlane.f32.xlu1 %v1285_v12  ;;  %v2280_v29 = vsel %vm1164_vm4, %v7109_v33, -inf  ;;  %v7120_v9 = vpop.eup %5520 }
 0x403   :  { %1289 = vadd.xlane.f32.xlu0 %v1288_v30  ;;  %4999 = vmatmul.msk.bf16.gmra.mxu3 %vm1017_vm1, %v6935_v10  ;;  %v2277_v10 = vsel %vm1164_vm4, %v7106_v38, -inf  ;;  %8426 = vst [vmem:[#allocation34_spill] sm:$0xff] %v7120_v9  ;;  %v7122_v36 = vpop.f32.mrf.mxu2 }
 0x404   :  { %v1203_v0 = vpop.xlane.xlu2 %1202 }
 0x406   :  { %v1688_v12 = vpop.f32.mrf.mxu3 }
 0x40a   :  { %2281 = vmax.xlane.f32.xlu2 %v2280_v29  ;;  %2278 = vmax.xlane.f32.xlu1 %v2277_v10  ;;  %v1291_v29 = vsel %vm1164_vm4, %v7120_v9, 0.0  ;;  %v1200_v10 = vpop.xlane.xlu0 %1199 }
 0x40b   :  { %2287 = vmax.xlane.f32.xlu0 %v2286_v21  ;;  %v1224_v55 = vsub.f32 %v6933_v35, %v1200_v10 }
 0x40c   :  { %v1206_v19 = vpop.xlane.xlu2 %1205 }
 0x40d   :  { %v1226_v51 = vsub.f32 %v6959_v26, %v1206_v19  ;;  %v1251_v16 = vmul.f32 1.442695, %v1224_v55 }
 0x40e   :  { %v1690_v30 = vpop.f32.mrf.mxu3 }
 0x40f   :  { %v7125_v46 = vadd.f32 %v1690_v30, %v6788_v14  ;;  %v1255_v21 = vmul.f32 1.442695, %v1226_v51  ;;  %v7138_v30 = vadd.f32 %v1688_v12, %v6827_v32 }
 0x411   :  { %v1737_v34 = vsel %vm1164_vm4, %v7125_v46, -inf  ;;  %8427 = vst [vmem:[#allocation35_spill] sm:$0xff] %v7138_v30  ;;  %5522 = vpow2.f32 %v1255_v21  ;;  %v1734_v51 = vsel %vm1164_vm4, %v7138_v30, -inf }
 0x412   :  { %1738 = vmax.xlane.f32.xlu2 %v1737_v34  ;;  %1292 = vadd.xlane.f32.xlu1 %v1291_v29  ;;  %v7142_v34 = vpop.f32.mrf.mxu2  ;;  %v7150_v29 = vadd.f32 %v7068_v61, %v6827_v32  ;;  %5524 = vpow2.f32 %v1251_v16 }
 0x413   :  { %5000 = vmatmul.msk.bf16.gmra.mxu3 %vm1017_vm1, %v6951_v22  ;;  %v2289_v22 = vsel %vm1164_vm4, %v7135_v41, -inf }
 0x414   :  { %v1209_v26 = vpop.xlane.xlu1 %1208  ;;  %8428 = vst [vmem:[#allocation36_spill] sm:$0xff] %v7150_v29  ;;  %v2283_v55 = vsel %vm1164_vm4, %v7150_v29, -inf }
 0x415   :  { %v1227_v9 = vsub.f32 %v6969_v45, %v1209_v26  ;;  %v1225_v26 = vsub.f32 %v6945_v43, %v1203_v0 }
 0x416   :  { %v1693_v19 = vpop.f32.mrf.mxu3 }
 0x417   :  { %v1257_v12 = vmul.f32 1.442695, %v1227_v9  ;;  %v7152_v10 = vpop.eup %5522 }
 0x418   :  { %8429 = vst [vmem:[#allocation37_spill] sm:$0xff] %v7152_v10  ;;  %v7164_v16 = vpop.eup %5524 }
 0x419   :  { %5526 = vpow2.f32 %v1257_v12  ;;  %8431 = vst [vmem:[#allocation39_spill] sm:$0xff] %v7164_v16 }
 0x41a   :  { %2290 = vmax.xlane.f32.xlu2 %v2289_v22  ;;  %1735 = vmax.xlane.f32.xlu1 %v1734_v51  ;;  %v1300_v22 = vsel %vm1164_vm4, %v7152_v10, 0.0  ;;  %v2757_v9 = vpop.f32.mrf.mxu2  ;;  %v1253_v51 = vmul.f32 1.442695, %v1225_v26  ;;  %v1294_v10 = vsel %vm1164_vm4, %v7164_v16, 0.0 }
 0x41c   :  { %v1700_v35 = vpop.xlane.xlu1 %1699  ;;  %5528 = vpow2.f32 %v1253_v51 }
 0x41e   :  { %v1695_v45 = vpop.f32.mrf.mxu3 }
 0x41f   :  { %v7155_v21 = vadd.f32 %v1695_v45, %v6834_v15  ;;  %v7168_v0 = vpop.eup %5526 }
 0x420   :  { %8432 = vst [vmem:[#allocation40_spill] sm:$0xff] %v7168_v0  ;;  %v1303_v12 = vsel %vm1164_vm4, %v7168_v0, 0.0 }
 0x421   :  { %8430 = vst [vmem:[#allocation38_spill] sm:$0xff] %v7155_v21  ;;  %v1743_v61 = vsel %vm1164_vm4, %v7155_v21, -inf }
 0x422   :  { %1301 = vadd.xlane.f32.xlu2 %v1300_v22  ;;  %2284 = vmax.xlane.f32.xlu1 %v2283_v55  ;;  %v2760_v22 = vpop.f32.mrf.mxu2 }
 0x423   :  { %1744 = vmax.xlane.f32.xlu0 %v1743_v61  ;;  %v7177_v61 = vpop.eup %5528 }
 0x424   :  { %v7166_v45 = vpop.xlane.xlu1 %1211  ;;  %8434 = vst [vmem:[#allocation42_spill] sm:$0xff] %v7177_v61  ;;  %v1297_v0 = vsel %vm1164_vm4, %v7177_v61, 0.0 }
 0x426   :  { %v2251_v43 = vpop.f32.mrf.mxu3 }
 0x427   :  { %v7175_v55 = vadd.f32 %v2251_v43, %v6724_v27  ;;  %v7185_v43 = vadd.f32 %v2757_v9, %v6804_v48 }
 0x429   :  { %8433 = vst [vmem:[#allocation41_spill] sm:$0xff] %v7175_v55  ;;  %v2295_v51 = vsel %vm1164_vm4, %v7175_v55, -inf  ;;  %v2847_v9 = vsel %vm1164_vm4, %v7185_v43, -inf }
 0x42a   :  { %1304 = vadd.xlane.f32.xlu2 %v1303_v12  ;;  %1295 = vadd.xlane.f32.xlu1 %v1294_v10  ;;  %v1263_v10 = vpop.xlane.xlu0 %1262  ;;  %8435 = vst [vmem:[#allocation43_spill] sm:$0xff] %v7185_v43  ;;  %v7188_v12 = vadd.f32 %v1693_v19, %v6755_v17  ;;  %v7195_v55 = vpop.f32.mrf.mxu2 }
 0x42c   :  { %v1703_v26 = vpop.xlane.xlu1 %1702  ;;  %8436 = vst [vmem:[#allocation44_spill] sm:$0xff] %v7188_v12  ;;  %v1740_v19 = vsel %vm1164_vm4, %v7188_v12, -inf }
 0x42d   :  { %v1747_v21 = vsub.f32 %v7000_v42, %v1703_v26  ;;  %v7190_v42 = vpop.xlane.xlu2 %1708 }
 0x42e   :  { %v2253_v29 = vpop.f32.mrf.mxu3 }
 0x42f   :  { %v1764_v30 = vmul.f32 1.442695, %v1747_v21 }
 0x431   :  { %5530 = vpow2.f32 %v1764_v30 }
 0x432   :  { %2296 = vmax.xlane.f32.xlu2 %v2295_v51  ;;  %1298 = vadd.xlane.f32.xlu1 %v1297_v0  ;;  %5532 = vrcp.f32 %v1263_v10  ;;  %v1746_v0 = vsub.f32 %v6980_v63, %v1700_v35  ;;  %v7208_v10 = vadd.f32 %v7122_v36, %v6834_v15  ;;  %v7211_v35 = vadd.f32 %v2253_v29, %v6804_v48 }
 0x434   :  { %v1706_v16 = vpop.xlane.xlu1 %1705  ;;  %8438 = vst [vmem:[#allocation46_spill] sm:$0xff] %v7208_v10  ;;  %v2298_v29 = vsel %vm1164_vm4, %v7211_v35, -inf }
 0x435   :  { %v1748_v21 = vsub.f32 %v7010_v3, %v1706_v16  ;;  %v1762_v3 = vmul.f32 1.442695, %v1746_v0  ;;  %8439 = vst [vmem:[#allocation47_spill] sm:$0xff] %v7211_v35  ;;  %v1272_v0 = vpop.xlane.xlu0 %1271 }
 0x436   :  { %v7193_v26 = vpop.f32.mrf.mxu3 }
 0x437   :  { %v7197_v30 = vpop.eup %5530  ;;  %v1766_v51 = vmul.f32 1.442695, %v1748_v21 }
 0x438   :  { %8437 = vst [vmem:[#allocation45_spill] sm:$0xff] %v7197_v30  ;;  %v1797_v61 = vsel %vm1164_vm4, %v7197_v30, 0.0  ;;  %v5533_v16 = vpop.eup %5532 }
 0x439   :  { %5534 = vpow2.f32 %v1766_v51  ;;  %1798 = vadd.xlane.f32.xlu0 %v1797_v61  ;;  %v1325_v51 = vmul.f32 %v5533_v16, %v6942_v28  ;;  %v2292_v61 = vsel %vm1164_vm4, %v7208_v10, -inf  ;;  %v7225_v28 = vadd.f32 %v2760_v22, %v6704_v47 }
 0x43a   :  { %2848 = vmax.xlane.f32.xlu2 %v2847_v9  ;;  %1741 = vmax.xlane.f32.xlu1 %v1740_v19  ;;  %v7216_v9 = vpop.f32.mrf.mxu2 }
 0x43b   :  { %v2850_v22 = vsel %vm1164_vm4, %v7225_v28, -inf }
 0x43c   :  { %v1266_v63 = vpop.xlane.xlu1 %1265 }
 0x43d   :  { %v1269_v21 = vpop.xlane.xlu2 %1268  ;;  %5536 = vrcp.f32 %v1266_v63  ;;  %v1341_v63 = vpack.c.bf16 %v1325_v51, %v1325_v51  ;;  %v1228_v51 = vsub.f32 %v6986_v7, %v7166_v45 }
 0x43e   :  { %v2258_v43 = vpop.f32.mrf.mxu3  ;;  %5538 = vpow2.f32 %v1762_v3 }
 0x43f   :  { %v7213_v12 = vpop.eup %5534  ;;  %5540 = vrcp.f32 %v1269_v21  ;;  %v1259_v45 = vmul.f32 1.442695, %v1228_v51 }
 0x440   :  { %8440 = vst [vmem:[#allocation48_spill] sm:$0xff] %v7213_v12  ;;  %v1800_v36 = vsel %vm1164_vm4, %v7213_v12, 0.0  ;;  %5542 = vrcp.f32 %v1272_v0 }
 0x441   :  { %2299 = vmax.xlane.f32.xlu0 %v2298_v29  ;;  %v1365_v29 = vunpack.c.l.b16 %v1341_v63  ;;  %v7246_v63 = vadd.f32 %v7142_v34, %v6724_v27  ;;  %5544 = vpow2.f32 %v1259_v45 }
 0x442   :  { %2293 = vmax.xlane.f32.xlu1 %v2292_v61  ;;  %1801 = vadd.xlane.f32.xlu2 %v1800_v36  ;;  %v2767_v0 = vpop.f32.mrf.mxu2 }
 0x443   :  { %v5537_v19 = vpop.eup %5536 }
 0x444   :  { %v1326_v3 = vmul.f32 %v5537_v19, %v7017_v49  ;;  %v1718_v16 = vpop.xlane.xlu1 %1717  ;;  %v7228_v30 = vpop.eup %5538 }
 0x445   :  { %8441 = vst [vmem:[#allocation49_spill] sm:$0xff] %v7228_v30  ;;  %v7230_v10 = vpop.xlane.xlu2 %1711  ;;  %v1752_v49 = vsub.f32 %v7027_v1, %v1718_v16  ;;  %v1794_v21 = vsel %vm1164_vm4, %v7228_v30, 0.0  ;;  %v5541_v7 = vpop.eup %5540  ;;  %v7250_v30 = vadd.f32 %v2767_v0, %v6788_v14 }
 0x446   :  { %v2261_v61 = vpop.f32.mrf.mxu3  ;;  %v1342_v36 = vpack.c.bf16 %v1326_v3, %v1326_v3  ;;  %v5543_v16 = vpop.eup %5542  ;;  %v1327_v51 = vmul.f32 %v5541_v7, %v7019_v44  ;;  %v1749_v7 = vsub.f32 %v6966_v58, %v7190_v42 }
 0x447   :  { %v7233_v12 = vadd.f32 %v2261_v61, %v6827_v32  ;;  %v1715_v61 = vpop.xlane.xlu0 %1714  ;;  %v1774_v1 = vmul.f32 1.442695, %v1752_v49 }
 0x448   :  { %v1366_v3 = vunpack.c.l.b16 %v1342_v36  ;;  %v7253_v36 = vadd.f32 %v2258_v43, %v6767_v50  ;;  %v1751_v34 = vsub.f32 %v6989_v24, %v1715_v61  ;;  %v1343_v44 = vpack.c.bf16 %v1327_v51, %v1327_v51 }
 0x449   :  { %v2307_v19 = vsel %vm1164_vm4, %v7233_v12, -inf  ;;  %5546 = vpow2.f32 %v1774_v1  ;;  %v1768_v42 = vmul.f32 1.442695, %v1749_v7  ;;  %v7290_v51 = vadd.f32 %v7193_v26, %v6704_v47 }
 0x44a   :  { %1795 = vadd.xlane.f32.xlu1 %v1794_v21  ;;  %2851 = vmax.xlane.f32.xlu2 %v2850_v22  ;;  %v1373_v35 = vpack.c.b16 %v1366_v3, %v1365_v29  ;;  %v1328_v29 = vmul.f32 %v5543_v16, %v6956_v39  ;;  %v2304_v43 = vsel %vm1164_vm4, %v7253_v36, -inf  ;;  %v1772_v49 = vmul.f32 1.442695, %v1751_v34  ;;  %v7268_v3 = vpop.eup %5544 }
 0x44b   :  { %2308 = vmax.xlane.f32.xlu0 %v2307_v19  ;;  %v7272_v39 = vadd.f32 %v7195_v55, %v6767_v50  ;;  %v1367_v0 = vunpack.c.l.b16 %v1343_v44  ;;  %v1306_v1 = vsel %vm1164_vm4, %v7268_v3, 0.0 }
 0x44c   :  { %4953 = vmatmul.msk.bf16.vlgmr.msrb.gmra.mxu0 %vm1164_vm4, %v1373_v35  ;;  %v2844_v35 = vsel %vm1164_vm4, %v7246_v63, -inf  ;;  %v1344_v19 = vpack.c.bf16 %v1328_v29, %v1328_v29 }
 0x44d   :  { %v1278_v22 = vpop.xlane.xlu2 %1277  ;;  %2511 = vmatpush.bf16.msrb.mxu0 %v6793_v5  ;;  %v2859_v5 = vsel %vm1164_vm4, %v7250_v30, -inf  ;;  %v2853_v55 = vsel %vm1164_vm4, %v7272_v39, -inf }
 0x44e   :  { %v7255_v21 = vpop.f32.mrf.mxu3  ;;  %5548 = vrcp.f32 %v1278_v22  ;;  %v1368_v16 = vunpack.c.l.b16 %v1344_v19 }
 0x44f   :  { %v1275_v24 = vpop.xlane.xlu0 %1274  ;;  %v7277_v61 = vpop.eup %5546 }
 0x450   :  { %5550 = vrcp.f32 %v1275_v24  ;;  %v1374_v22 = vpack.c.b16 %v1368_v16, %v1367_v0  ;;  %v2301_v24 = vsel %vm1164_vm4, %v7290_v51, -inf }
 0x451   :  { %2512 = vmatpush.bf16.msrb.mxu0 %v6634_v57  ;;  %5552 = vpow2.f32 %v1772_v49 }
 0x452   :  { %2845 = vmax.xlane.f32.xlu1 %v2844_v35  ;;  %2305 = vmax.xlane.f32.xlu2 %v2304_v43  ;;  %5554 = vpow2.f32 %v1768_v42 }
 0x453   :  { %2860 = vmax.xlane.f32.xlu0 %v2859_v5  ;;  %v1750_v5 = vsub.f32 %v7030_v18, %v7230_v10 }
 0x454   :  { %v5549_v58 = vpop.eup %5548 }
 0x455   :  { %2513 = vmatpush.bf16.msrb.mxu0 %v6646_v62  ;;  %v1721_v45 = vpop.xlane.xlu2 %1720  ;;  %v1812_v62 = vsel %vm1164_vm4, %v7277_v61, 0.0  ;;  %v1330_v49 = vmul.f32 %v5549_v58, %v7037_v60  ;;  %v1770_v10 = vmul.f32 1.442695, %v1750_v5 }
 0x456   :  { %v7274_v57 = vpop.f32.mrf.mxu3  ;;  %v5551_v35 = vpop.eup %5550  ;;  %v1753_v58 = vsub.f32 %v7043_v13, %v1721_v45 }
 0x457   :  { %v7294_v43 = vpop.eup %5552  ;;  %v1346_v60 = vpack.c.bf16 %v1330_v49, %v1330_v49 }
 0x458   :  { %v1809_v18 = vsel %vm1164_vm4, %v7294_v43, 0.0  ;;  %v1776_v13 = vmul.f32 1.442695, %v1753_v58 }
 0x459   :  { %2514 = vmatpush.bf16.msrb.mxu0 %v6612_v53 }
 0x45a   :  { %1307 = vadd.xlane.f32.xlu1 %v1306_v1  ;;  %2854 = vmax.xlane.f32.xlu2 %v2853_v55  ;;  %v7311_v55 = vpop.eup %5554 }
 0x45b   :  { %1813 = vadd.xlane.f32.xlu0 %v1812_v62  ;;  %v7315_v62 = vadd.f32 %v7255_v21, %v6788_v14  ;;  %v1803_v42 = vsel %vm1164_vm4, %v7311_v55, 0.0 }
 0x45c   :  { %4954 = vmatmul.msk.bf16.gmra.mxu0 %vm1164_vm4, %v1374_v22 }
 0x45d   :  { %v1724_v34 = vpop.xlane.xlu1 %1723  ;;  %v1281_v0 = vpop.xlane.xlu2 %1280  ;;  %v2310_v21 = vsel %vm1164_vm4, %v7315_v62, -inf }
 0x45e   :  { %v1754_v53 = vsub.f32 %v7053_v37, %v1724_v34  ;;  %v2268_v29 = vpop.f32.mrf.mxu3  ;;  %v1329_v37 = vmul.f32 %v5551_v35, %v7002_v59  ;;  %v1370_v59 = vunpack.c.l.b16 %v1346_v60 }
 0x45f   :  { %v7299_v44 = vadd.f32 %v2268_v29, %v6834_v15 }
 0x460   :  { %v1778_v26 = vmul.f32 1.442695, %v1754_v53  ;;  %v1345_v16 = vpack.c.bf16 %v1329_v37, %v1329_v37  ;;  %v2770_v53 = vpop.f32.mrf.mxu2 }
 0x461   :  { %v2316_v19 = vsel %vm1164_vm4, %v7299_v44, -inf  ;;  %v7334_v37 = vadd.f32 %v2770_v53, %v6755_v17 }
 0x462   :  { %5556 = vpow2.f32 %v1778_v26  ;;  %2302 = vmax.xlane.f32.xlu1 %v2301_v24  ;;  %1810 = vadd.xlane.f32.xlu2 %v1809_v18  ;;  %v1369_v35 = vunpack.c.l.b16 %v1345_v16 }
 0x463   :  { %2317 = vmax.xlane.f32.xlu0 %v2316_v19 }
 0x464   :  { %v1375_v29 = vpack.c.b16 %v1370_v59, %v1369_v35  ;;  %v2862_v59 = vsel %vm1164_vm4, %v7334_v37, -inf }
 0x465   :  { %v1284_v7 = vpop.xlane.xlu1 %1283  ;;  %v7309_v1 = vpop.xlane.xlu0 %1726 }
 0x466   :  { %5558 = vrcp.f32 %v1284_v7  ;;  %v7326_v49 = vpop.xlane.xlu2 %2272 }
 0x467   :  { %5560 = vpow2.f32 %v1770_v10  ;;  %v2824_v10 = vpop.f32.mrf.mxu3 }
 0x468   :  { %v7317_v22 = vpop.eup %5556  ;;  %5562 = vrcp.f32 %v1281_v0 }
 0x469   :  { %v1818_v34 = vsel %vm1164_vm4, %v7317_v22, 0.0  ;;  %5564 = vpow2.f32 %v1776_v13  ;;  %v1755_v13 = vsub.f32 %v7065_v54, %v7309_v1 }
 0x46a   :  { %1804 = vadd.xlane.f32.xlu1 %v1803_v42  ;;  %2311 = vmax.xlane.f32.xlu2 %v2310_v21 }
 0x46b   :  { %1819 = vadd.xlane.f32.xlu0 %v1818_v34 }
 0x46c   :  { %v5559_v5 = vpop.eup %5558  ;;  %4955 = vmatmul.msk.bf16.gmra.mxu0 %vm1164_vm4, %v1375_v29 }
 0x46d   :  { %v7328_v26 = vpop.eup %5560  ;;  %v2276_v45 = vpop.xlane.xlu1 %2275  ;;  %v1332_v18 = vmul.f32 %v5559_v5, %v7059_v25 }
 0x46e   :  { %v7330_v24 = vpop.xlane.xlu0 %1729  ;;  %v5563_v19 = vpop.eup %5562  ;;  %v2320_v0 = vsub.f32 %v7080_v6, %v2276_v45  ;;  %v1806_v7 = vsel %vm1164_vm4, %v7328_v26, 0.0  ;;  %v7345_v6 = vadd.f32 %v7216_v9, %v6827_v32 }
 0x46f   :  { %v1331_v16 = vmul.f32 %v5563_v19, %v7050_v20  ;;  %v1348_v58 = vpack.c.bf16 %v1332_v18, %v1332_v18  ;;  %v7349_v21 = vpop.eup %5564  ;;  %v2826_v45 = vpop.f32.mrf.mxu3 }
 0x470   :  { %v2337_v60 = vmul.f32 1.442695, %v2320_v0  ;;  %v2856_v5 = vsel %vm1164_vm4, %v7345_v6, -inf  ;;  %v1815_v19 = vsel %vm1164_vm4, %v7349_v21, 0.0 }
 0x471   :  { %v1347_v34 = vpack.c.bf16 %v1331_v16, %v1331_v16  ;;  %v1372_v20 = vunpack.c.l.b16 %v1348_v58  ;;  %v7366_v16 = vadd.f32 %v2826_v45, %v6804_v48  ;;  %v1780_v58 = vmul.f32 1.442695, %v1755_v13  ;;  %v2772_v13 = vpop.f32.mrf.mxu2 }
 0x472   :  { %5566 = vpow2.f32 %v2337_v60  ;;  %1807 = vadd.xlane.f32.xlu1 %v1806_v7  ;;  %2863 = vmax.xlane.f32.xlu2 %v2862_v59  ;;  %v7363_v7 = vadd.f32 %v7274_v57, %v6755_v17  ;;  %v2319_v48 = vsub.f32 %v7062_v11, %v7326_v49 }
 0x473   :  { %v1371_v9 = vunpack.c.l.b16 %v1347_v34 }
 0x475   :  { %v7347_v25 = vpop.xlane.xlu2 %1732  ;;  %v1287_v42 = vpop.xlane.xlu1 %1286  ;;  %v1376_v0 = vpack.c.b16 %v1372_v20, %v1371_v9 }
 0x476   :  { %5568 = vrcp.f32 %v1287_v42  ;;  %v1290_v35 = vpop.xlane.xlu0 %1289  ;;  %v7373_v42 = vadd.f32 %v2824_v10, %v6724_v27  ;;  %v1756_v27 = vsub.f32 %v7083_v2, %v7330_v24  ;;  %v7388_v10 = vadd.f32 %v2772_v13, %v6834_v15 }
 0x477   :  { %5570 = vrcp.f32 %v1290_v35 }
 0x478   :  { %v7351_v53 = vpop.eup %5566  ;;  %5572 = vpow2.f32 %v1780_v58  ;;  %v2829_v58 = vpop.f32.mrf.mxu3 }
 0x479   :  { %v2370_v29 = vsel %vm1164_vm4, %v7351_v53, 0.0 }
 0x47a   :  { %2371 = vadd.xlane.f32.xlu0 %v2370_v29  ;;  %2857 = vmax.xlane.f32.xlu1 %v2856_v5  ;;  %v2313_v5 = vsel %vm1164_vm4, %v7363_v7, -inf }
 0x47b   :  { %1816 = vadd.xlane.f32.xlu2 %v1815_v19 }
 0x47c   :  { %v5569_v18 = vpop.eup %5568  ;;  %4956 = vmatmul.msk.bf16.gmra.mxu0 %vm1164_vm4, %v1376_v0  ;;  %v1782_v0 = vmul.f32 1.442695, %v1756_v27 }
 0x47d   :  { %v5571_v60 = vpop.eup %5570  ;;  %v1333_v59 = vmul.f32 %v5569_v18, %v7089_v52  ;;  %v7369_v54 = vpop.xlane.xlu2 %2281  ;;  %v2871_v52 = vsel %vm1164_vm4, %v7366_v16, -inf }
 0x47e   :  { %v2279_v1 = vpop.xlane.xlu1 %2278  ;;  %v1334_v34 = vmul.f32 %v5571_v60, %v7091_v31  ;;  %v2868_v31 = vsel %vm1164_vm4, %v7373_v42, -inf  ;;  %v7392_v2 = vpop.eup %5572  ;;  %v2865_v60 = vsel %vm1164_vm4, %v7388_v10, -inf }
 0x47f   :  { %v2321_v35 = vsub.f32 %v7106_v38, %v2279_v1  ;;  %v1349_v57 = vpack.c.bf16 %v1333_v59, %v1333_v59  ;;  %v2335_v38 = vmul.f32 1.442695, %v2319_v48  ;;  %v1757_v59 = vsub.f32 %v7094_v40, %v7347_v25 }
 0x480   :  { %v1350_v20 = vpack.c.bf16 %v1334_v34, %v1334_v34  ;;  %v7409_v40 = vadd.f32 %v2829_v58, %v6704_v47  ;;  %v2831_v58 = vpop.f32.mrf.mxu3 }
 0x481   :  { %v2339_v29 = vmul.f32 1.442695, %v2321_v35  ;;  %v1450_v9 = vunpack.c.l.b16 %v1349_v57  ;;  %v1784_v48 = vmul.f32 1.442695, %v1757_v59 }
 0x482   :  { %2872 = vmax.xlane.f32.xlu0 %v2871_v52  ;;  %2314 = vmax.xlane.f32.xlu1 %v2313_v5  ;;  %v1451_v11 = vunpack.c.l.b16 %v1350_v20  ;;  %v2874_v52 = vsel %vm1164_vm4, %v7409_v40, -inf }
 0x483   :  { %5574 = vpow2.f32 %v2339_v29  ;;  %2869 = vmax.xlane.f32.xlu2 %v2868_v31  ;;  %v2322_v29 = vsub.f32 %v7109_v33, %v7369_v54 }
 0x484   :  { %v1458_v49 = vpack.c.b16 %v1451_v11, %v1450_v9  ;;  %5576 = vpow2.f32 %v2335_v38  ;;  %v7434_v38 = vpop.xlane.xlu0 %2287 }
 0x485   :  { %v1739_v45 = vpop.xlane.xlu2 %1738  ;;  %5578 = vpow2.f32 %v1782_v0  ;;  %v2341_v9 = vmul.f32 1.442695, %v2322_v29 }
 0x486   :  { %v1293_v19 = vpop.xlane.xlu1 %1292  ;;  %4957 = vmatmul.msk.bf16.vlgmr.msrb.gmra.mxu1 %vm1164_vm4, %v1458_v49  ;;  %v1759_v18 = vsub.f32 %v7125_v46, %v1739_v45 }
 0x487   :  { %2584 = vmatpush.bf16.msrb.mxu1 %v6869_v4  ;;  %v1821_v4 = vsel %vm1164_vm4, %v7392_v2, 0.0 }
 0x488   :  { %v1788_v46 = vmul.f32 1.442695, %v1759_v18 }
 0x489   :  { %v7394_v24 = vpop.eup %5574 }
 0x48a   :  { %v2373_v1 = vsel %vm1164_vm4, %v7394_v24, 0.0  ;;  %2866 = vmax.xlane.f32.xlu1 %v2865_v60  ;;  %v7406_v57 = vpop.eup %5576  ;;  %5580 = vpow2.f32 %v1788_v46  ;;  %v8443_v60 = vld [vmem:[#allocation34_spill] sm:$0xff] }
 0x48b   :  { %2585 = vmatpush.bf16.msrb.mxu1 %v6807_v23  ;;  %2374 = vadd.xlane.f32.xlu0 %v2373_v1  ;;  %v7412_v25 = vpop.eup %5578  ;;  %v2367_v20 = vsel %vm1164_vm4, %v7406_v57, 0.0  ;;  %5582 = vpow2.f32 %v1784_v48 }
 0x48c   :  { %1822 = vadd.xlane.f32.xlu2 %v1821_v4  ;;  %v1824_v47 = vsel %vm1164_vm4, %v7412_v25, 0.0  ;;  %5584 = vrcp.f32 %v1293_v19  ;;  %v8442_v19 = vld [vmem:[#allocation35_spill] sm:$0xff] }
 0x48d   :  { %v2291_v34 = vpop.xlane.xlu2 %2290 }
 0x48e   :  { %v1736_v35 = vpop.xlane.xlu1 %1735  ;;  %v2325_v23 = vsub.f32 %v7135_v41, %v2291_v34 }
 0x48f   :  { %2586 = vmatpush.bf16.msrb.mxu1 %v6884_v56  ;;  %v1758_v0 = vsub.f32 %v8442_v19, %v1736_v35  ;;  %v8445_v35 = vld [vmem:[#allocation39_spill] sm:$0xff] }
 0x490   :  { %v2347_v56 = vmul.f32 1.442695, %v2325_v23  ;;  %v7424_v13 = vpop.eup %5580 }
 0x491   :  { %v7426_v27 = vpop.eup %5582  ;;  %v1833_v33 = vsel %vm1164_vm4, %v7424_v13, 0.0  ;;  %v1786_v4 = vmul.f32 1.442695, %v1758_v0  ;;  %v8447_v0 = vld [vmem:[#allocation25_spill] sm:$0xff] }
 0x492   :  { %2368 = vadd.xlane.f32.xlu1 %v2367_v20  ;;  %5586 = vpow2.f32 %v2347_v56  ;;  %v5585_v11 = vpop.eup %5584  ;;  %v8444_v20 = vld [vmem:[#allocation41_spill] sm:$0xff]  ;;  %v7451_v56 = vadd.f32 %v2831_v58, %v6767_v50 }
 0x493   :  { %2587 = vmatpush.bf16.msrb.mxu1 %v6911_v8  ;;  %2875 = vmax.xlane.f32.xlu0 %v2874_v52  ;;  %5588 = vpow2.f32 %v2341_v9  ;;  %v1827_v8 = vsel %vm1164_vm4, %v7426_v27, 0.0  ;;  %v1335_v59 = vmul.f32 %v5585_v11, %v8443_v60 }
 0x494   :  { %1825 = vadd.xlane.f32.xlu2 %v1824_v47 }
 0x495   :  { %v1302_v41 = vpop.xlane.xlu2 %1301  ;;  %v1351_v47 = vpack.c.bf16 %v1335_v59, %v1335_v59 }
 0x496   :  { %v2285_v5 = vpop.xlane.xlu1 %2284  ;;  %v7446_v23 = vpop.xlane.xlu0 %1744 }
 0x497   :  { %v1452_v11 = vunpack.c.l.b16 %v1351_v47  ;;  %v8450_v47 = vld [vmem:[#allocation37_spill] sm:$0xff] }
 0x498   :  { %v7436_v49 = vpop.eup %5586 }
 0x499   :  { %v7438_v45 = vpop.eup %5588  ;;  %v2385_v18 = vsel %vm1164_vm4, %v7436_v49, 0.0 }
 0x49a   :  { %v2376_v1 = vsel %vm1164_vm4, %v7438_v45, 0.0 }
 0x49b   :  { %1834 = vadd.xlane.f32.xlu0 %v1833_v33 }
 0x49c   :  { %1828 = vadd.xlane.f32.xlu2 %v1827_v8  ;;  %v8446_v8 = vld [vmem:[#allocation36_spill] sm:$0xff] }
 0x49d   :  { %v7432_v54 = vpop.xlane.xlu2 %1304 }
 0x49e   :  { %v1296_v31 = vpop.xlane.xlu1 %1295 }
 0x49f   :  { %5590 = vrcp.f32 %v1296_v31  ;;  %v2323_v31 = vsub.f32 %v8446_v8, %v2285_v5 }
 0x4a1   :  { %v2343_v59 = vmul.f32 1.442695, %v2323_v31 }
 0x4a3   :  { %2386 = vadd.xlane.f32.xlu0 %v2385_v18  ;;  %v2877_v18 = vsel %vm1164_vm4, %v7451_v56, -inf }
 0x4a4   :  { %2377 = vadd.xlane.f32.xlu2 %v2376_v1 }
 0x4a5   :  { %v5591_v46 = vpop.eup %5590  ;;  %v2297_v34 = vpop.xlane.xlu2 %2296 }
 0x4a6   :  { %v1299_v48 = vpop.xlane.xlu1 %1298  ;;  %v2327_v29 = vsub.f32 %v8444_v20, %v2297_v34  ;;  %v1336_v52 = vmul.f32 %v5591_v46, %v8445_v35 }
 0x4a7   :  { %5592 = vrcp.f32 %v1299_v48 }
 0x4a8   :  { %5594 = vpow2.f32 %v1786_v4  ;;  %v2351_v9 = vmul.f32 1.442695, %v2327_v29  ;;  %v1352_v33 = vpack.c.bf16 %v1336_v52, %v1336_v52  ;;  %v8449_v29 = vld [vmem:[#allocation42_spill] sm:$0xff] }
 0x4a9   :  { %5596 = vrcp.f32 %v1302_v41  ;;  %v8448_v41 = vld [vmem:[#allocation43_spill] sm:$0xff] }
 0x4aa   :  { %5598 = vpow2.f32 %v2351_v9  ;;  %v1453_v19 = vunpack.c.l.b16 %v1352_v33 }
 0x4ab   :  { %3056 = vrot.lane.b32.xlu1 %v8447_v0, %s6048_s26  ;;  %5600 = vpow2.f32 %v2343_v59 }
 0x4ac   :  { %2878 = vmax.xlane.f32.xlu2 %v2877_v18  ;;  %v1459_v60 = vpack.c.b16 %v1453_v19, %v1452_v11  ;;  %v1799_v5 = vpop.xlane.xlu0 %1798 }
 0x4ad   :  { %v5593_v50 = vpop.eup %5592  ;;  %v2849_v1 = vpop.xlane.xlu2 %2848 }
 0x4ae   :  { %v1742_v58 = vpop.xlane.xlu1 %1741  ;;  %v7458_v4 = vpop.eup %5594  ;;  %v2893_v46 = vsub.f32 %v8448_v41, %v2849_v1  ;;  %4958 = vmatmul.msk.bf16.gmra.mxu1 %vm1164_vm4, %v1459_v60  ;;  %v1337_v35 = vmul.f32 %v5593_v50, %v8449_v29  ;;  %v8451_v1 = vld [vmem:[#allocation44_spill] sm:$0xff] }
 0x4af   :  { %v5597_v34 = vpop.eup %5596  ;;  %v1830_v33 = vsel %vm1164_vm4, %v7458_v4, 0.0  ;;  %v2834_v50 = vpop.f32.mrf.mxu3  ;;  %v1760_v41 = vsub.f32 %v8451_v1, %v1742_v58  ;;  %v8452_v1 = vld [vmem:[#allocation45_spill] sm:$0xff] }
 0x4b0   :  { %v7462_v48 = vpop.eup %5598  ;;  %v2910_v20 = vmul.f32 1.442695, %v2893_v46  ;;  %v1338_v9 = vmul.f32 %v5597_v34, %v8450_v47  ;;  %v1353_v8 = vpack.c.bf16 %v1337_v35, %v1337_v35 }
 0x4b1   :  { %v2391_v52 = vsel %vm1164_vm4, %v7462_v48, 0.0  ;;  %v7476_v18 = vpop.eup %5600  ;;  %v1790_v35 = vmul.f32 1.442695, %v1760_v41  ;;  %v8453_v41 = vld [vmem:[#allocation33_spill] sm:$0xff] }
 0x4b2   :  { %5602 = vpow2.f32 %v2910_v20  ;;  %2392 = vadd.xlane.f32.xlu0 %v2391_v52  ;;  %v1354_v0 = vpack.c.bf16 %v1338_v9, %v1338_v9  ;;  %v1454_v59 = vunpack.c.l.b16 %v1353_v8  ;;  %v2379_v20 = vsel %vm1164_vm4, %v7476_v18, 0.0 }
 0x4b3   :  { %5604 = vrcp.f32 %v1799_v5 }
 0x4b4   :  { %1831 = vadd.xlane.f32.xlu2 %v1830_v33  ;;  %v7474_v19 = vpop.xlane.xlu0 %2299  ;;  %v1455_v34 = vunpack.c.l.b16 %v1354_v0  ;;  %v7488_v33 = vadd.f32 %v2834_v50, %v6827_v32  ;;  %v8454_v50 = vld [vmem:[#allocation49_spill] sm:$0xff] }
 0x4b5   :  { %v7472_v11 = vpop.xlane.xlu2 %1801 }
 0x4b6   :  { %v7470_v31 = vpop.xlane.xlu1 %2293  ;;  %v1460_v29 = vpack.c.b16 %v1455_v34, %v1454_v59  ;;  %v2324_v34 = vsub.f32 %v8453_v41, %v7434_v38  ;;  %v8455_v41 = vld [vmem:[#allocation46_spill] sm:$0xff] }
 0x4b7   :  { %v7492_v59 = vpop.f32.mrf.mxu3 }
 0x4b8   :  { %v7478_v60 = vpop.eup %5602 }
 0x4b9   :  { %v2943_v46 = vsel %vm1164_vm4, %v7478_v60, 0.0  ;;  %v5605_v9 = vpop.eup %5604 }
 0x4ba   :  { %2944 = vadd.xlane.f32.xlu0 %v2943_v46  ;;  %v1859_v46 = vmul.f32 %v5605_v9, %v8452_v1 }
 0x4bc   :  { %2380 = vadd.xlane.f32.xlu2 %v2379_v20  ;;  %v2880_v20 = vsel %vm1164_vm4, %v7488_v33, -inf  ;;  %v1875_v32 = vpack.c.bf16 %v1859_v46, %v1859_v46 }
 0x4bd   :  { %v2852_v47 = vpop.xlane.xlu2 %2851 }
 0x4be   :  { %v1796_v52 = vpop.xlane.xlu1 %1795  ;;  %4959 = vmatmul.msk.bf16.gmra.mxu1 %vm1164_vm4, %v1460_v29  ;;  %v2894_v5 = vsub.f32 %v7225_v28, %v2852_v47  ;;  %v2309_v58 = vpop.xlane.xlu0 %2308 }
 0x4bf   :  { %5606 = vrcp.f32 %v1796_v52  ;;  %v2331_v0 = vsub.f32 %v7233_v12, %v2309_v58 }
 0x4c0   :  { %v2912_v8 = vmul.f32 1.442695, %v2894_v5  ;;  %5608 = vpow2.f32 %v1790_v35  ;;  %v2345_v5 = vmul.f32 1.442695, %v2324_v34 }
 0x4c1   :  { %v2359_v29 = vmul.f32 1.442695, %v2331_v0  ;;  %v1899_v0 = vunpack.c.l.b16 %v1875_v32 }
 0x4c2   :  { %5610 = vpow2.f32 %v2912_v8 }
 0x4c3   :  { %5612 = vrcp.f32 %v7432_v54 }
 0x4c4   :  { %2881 = vmax.xlane.f32.xlu2 %v2880_v20  ;;  %5614 = vpow2.f32 %v2359_v29  ;;  %v2326_v20 = vsub.f32 %v8455_v41, %v7470_v31  ;;  %v2839_v29 = vpop.f32.mrf.mxu3  ;;  %v8458_v41 = vld [vmem:[#allocation40_spill] sm:$0xff] }
 0x4c5   :  { %v5607_v28 = vpop.eup %5606  ;;  %v7501_v12 = vpop.xlane.xlu2 %2305  ;;  %5616 = vpow2.f32 %v2345_v5 }
 0x4c6   :  { %v1858_v52 = vmul.f32 %v5607_v28, %v8454_v50  ;;  %v7499_v47 = vpop.xlane.xlu1 %2845  ;;  %v2861_v35 = vpop.xlane.xlu0 %2860  ;;  %v2349_v31 = vmul.f32 1.442695, %v2326_v20  ;;  %v8459_v20 = vld [vmem:[#allocation47_spill] sm:$0xff] }
 0x4c7   :  { %v7503_v9 = vpop.eup %5608  ;;  %v2897_v8 = vsub.f32 %v7250_v30, %v2861_v35 }
 0x4c8   :  { %v1874_v38 = vpack.c.bf16 %v1858_v52, %v1858_v52  ;;  %v7506_v58 = vpop.eup %5610  ;;  %v1836_v50 = vsel %vm1164_vm4, %v7503_v9, 0.0 }
 0x4c9   :  { %v2946_v46 = vsel %vm1164_vm4, %v7506_v58, 0.0  ;;  %v1422_v28 = vpop.f32.mrf.mxu0  ;;  %v2918_v52 = vmul.f32 1.442695, %v2897_v8  ;;  %v5613_v30 = vpop.eup %5612 }
 0x4ca   :  { %v1898_v1 = vunpack.c.l.b16 %v1874_v38  ;;  %2947 = vadd.xlane.f32.xlu0 %v2946_v46  ;;  %v1527_v54 = vpack.c.bf16 %v1422_v28, %v1422_v28  ;;  %v7517_v35 = vpop.eup %5614  ;;  %v8457_v38 = vld [vmem:[#allocation31_spill] sm:$0xff]  ;;  %v1339_v28 = vmul.f32 %v5613_v30, %v8458_v41 }
 0x4cb   :  { %8456 = vst [vmem:[#allocation35_spill] sm:$0xff] %v7517_v35  ;;  %v7525_v8 = vpop.eup %5616  ;;  %v2403_v46 = vsel %vm1164_vm4, %v7517_v35, 0.0  ;;  %v7552_v35 = vadd.f32 %v7492_v59, %v6788_v14 }
 0x4cc   :  { %v1906_v34 = vpack.c.b16 %v1899_v0, %v1898_v1  ;;  %1837 = vadd.xlane.f32.xlu2 %v1836_v50  ;;  %1544 = vst.msk [vmem:[#allocation2] sm:$0xf] %vm1543_vm11, %v1527_v54  ;;  %v7523_v0 = vadd.f32 %v2839_v29, %v6755_v17  ;;  %v8460_v54 = vld [vmem:[#allocation28_spill] sm:$0xff]  ;;  %v8461_v17 = vld [vmem:[#allocation38_spill] sm:$0xff]  ;;  %v2382_v30 = vsel %vm1164_vm4, %v7525_v8, 0.0 }
 0x4cd   :  { %v7520_v5 = vpop.xlane.xlu2 %2854  ;;  %v1761_v29 = vsub.f32 %v8461_v17, %v7446_v23 }
 0x4ce   :  { %v1308_v32 = vpop.xlane.xlu1 %1307  ;;  %4969 = vmatmul.msk.bf16.vlgmr.msra.gmra.mxu0 %vm1164_vm4, %v1906_v34  ;;  %v7527_v1 = vpop.xlane.xlu0 %1813  ;;  %v2328_v34 = vsub.f32 %v8459_v20, %v7474_v19  ;;  %v8462_v20 = vld [vmem:[#allocation32_spill] sm:$0xff] }
 0x4cf   :  { %5618 = vrcp.f32 %v1308_v32  ;;  %3084 = vmatpush.bf16.msra.mxu0 %v8457_v38  ;;  %v2886_v32 = vsel %vm1164_vm4, %v7523_v0, -inf }
 0x4d0   :  { %5620 = vpow2.f32 %v2918_v52  ;;  %v2353_v23 = vmul.f32 1.442695, %v2328_v34  ;;  %v2330_v34 = vsub.f32 %v7253_v36, %v7501_v12 }
 0x4d1   :  { %5622 = vpow2.f32 %v2349_v31  ;;  %v1424_v50 = vpop.f32.mrf.mxu0 }
 0x4d2   :  { %2404 = vadd.xlane.f32.xlu0 %v2403_v46  ;;  %v1528_v52 = vpack.c.bf16 %v1424_v50, %v1424_v50  ;;  %v1355_v46 = vpack.c.bf16 %v1339_v28, %v1339_v28  ;;  %v1792_v50 = vmul.f32 1.442695, %v1761_v29  ;;  %5624 = vrcp.f32 %v7472_v11 }
 0x4d3   :  { %3085 = vmatpush.bf16.msra.mxu0 %v8460_v54  ;;  %5626 = vpow2.f32 %v2353_v23  ;;  %v2883_v11 = vsel %vm1164_vm4, %v7552_v35, -inf  ;;  %v2357_v12 = vmul.f32 1.442695, %v2330_v34 }
 0x4d4   :  { %2887 = vmax.xlane.f32.xlu2 %v2886_v32  ;;  %1545 = vst.msk [vmem:[#allocation2 + $0x4] sm:$0xf] %vm1543_vm11, %v1528_v52  ;;  %v1456_v28 = vunpack.c.l.b16 %v1355_v46  ;;  %5628 = vpow2.f32 %v1792_v50  ;;  %v8463_v50 = vld [vmem:[#allocation48_spill] sm:$0xff] }
 0x4d5   :  { %v5619_v38 = vpop.eup %5618  ;;  %2383 = vadd.xlane.f32.xlu1 %v2382_v30  ;;  %v1811_v54 = vpop.xlane.xlu2 %1810 }
 0x4d6   :  { %v7542_v31 = vpop.xlane.xlu1 %2302  ;;  %v1340_v19 = vmul.f32 %v5619_v38, %v7268_v3  ;;  %v7545_v41 = vpop.eup %5620 }
 0x4d7   :  { %3086 = vmatpush.bf16.msra.mxu0 %v8462_v20  ;;  %v7548_v32 = vpop.eup %5622  ;;  %v2955_v3 = vsel %vm1164_vm4, %v7545_v41, 0.0  ;;  %v7559_v29 = vpop.xlane.xlu0 %2317 }
 0x4d8   :  { %v1356_v17 = vpack.c.bf16 %v1340_v19, %v1340_v19  ;;  %v2388_v14 = vsel %vm1164_vm4, %v7548_v32, 0.0  ;;  %v5625_v36 = vpop.eup %5624 }
 0x4d9   :  { %v1427_v38 = vpop.f32.mrf.mxu0  ;;  %v7567_v23 = vpop.eup %5626 }
 0x4da   :  { %v1457_v52 = vunpack.c.l.b16 %v1356_v17  ;;  %2956 = vadd.xlane.f32.xlu0 %v2955_v3  ;;  %v1529_v30 = vpack.c.bf16 %v1427_v38, %v1427_v38  ;;  %v7569_v20 = vpop.eup %5628  ;;  %v1860_v17 = vmul.f32 %v5625_v36, %v8463_v50  ;;  %v2895_v3 = vsub.f32 %v7272_v39, %v7520_v5 }
 0x4db   :  { %v2394_v34 = vsel %vm1164_vm4, %v7567_v23, 0.0 }
 0x4dc   :  { %v1461_v59 = vpack.c.b16 %v1457_v52, %v1456_v28  ;;  %2389 = vadd.xlane.f32.xlu2 %v2388_v14  ;;  %1546 = vst.msk [vmem:[#allocation2 + $0x8] sm:$0xf] %vm1543_vm11, %v1529_v30  ;;  %v2892_v52 = vsub.f32 %v7246_v63, %v7499_v47  ;;  %v2841_v14 = vpop.f32.mrf.mxu3  ;;  %v2914_v63 = vmul.f32 1.442695, %v2895_v3 }
 0x4dd   :  { %2884 = vmax.xlane.f32.xlu1 %v2883_v11  ;;  %v2312_v46 = vpop.xlane.xlu2 %2311  ;;  %v1876_v11 = vpack.c.bf16 %v1860_v17, %v1860_v17 }
 0x4de   :  { %v1805_v19 = vpop.xlane.xlu1 %1804  ;;  %4960 = vmatmul.msk.bf16.gmra.mxu1 %vm1164_vm4, %v1461_v59  ;;  %v1839_v59 = vsel %vm1164_vm4, %v7569_v20, 0.0  ;;  %v2908_v5 = vmul.f32 1.442695, %v2892_v52 }
 0x4df   :  { %5630 = vrcp.f32 %v1805_v19  ;;  %v7581_v36 = vpop.xlane.xlu0 %1819 }
 0x4e0   :  { %5632 = vpow2.f32 %v2357_v12 }
 0x4e1   :  { %v1429_v28 = vpop.f32.mrf.mxu0 }
 0x4e2   :  { %v1530_v38 = vpack.c.bf16 %v1429_v28, %v1429_v28  ;;  %v7589_v28 = vadd.f32 %v2841_v14, %v6834_v15 }
 0x4e4   :  { %2395 = vadd.xlane.f32.xlu2 %v2394_v34  ;;  %1547 = vst.msk [vmem:[#allocation2 + $0xc] sm:$0xf] %vm1543_vm11, %v1530_v38  ;;  %v1900_v34 = vunpack.c.l.b16 %v1876_v11  ;;  %v2332_v38 = vsub.f32 %v7315_v62, %v2312_v46  ;;  %v2889_v15 = vsel %vm1164_vm4, %v7589_v28, -inf }
 0x4e5   :  { %v5631_v30 = vpop.eup %5630  ;;  %1840 = vadd.xlane.f32.xlu1 %v1839_v59  ;;  %v7584_v47 = vpop.xlane.xlu2 %2863 }
 0x4e6   :  { %v1861_v19 = vmul.f32 %v5631_v30, %v7311_v55  ;;  %v1808_v39 = vpop.xlane.xlu1 %1807  ;;  %v7586_v50 = vpop.eup %5632  ;;  %v2329_v55 = vsub.f32 %v7290_v51, %v7542_v31  ;;  %v2361_v46 = vmul.f32 1.442695, %v2332_v38 }
 0x4e7   :  { %5634 = vrcp.f32 %v1808_v39  ;;  %v2400_v52 = vsel %vm1164_vm4, %v7586_v50, 0.0 }
 0x4e8   :  { %v1877_v12 = vpack.c.bf16 %v1861_v19, %v1861_v19  ;;  %5636 = vrcp.f32 %v1811_v54  ;;  %v2355_v54 = vmul.f32 1.442695, %v2329_v55 }
 0x4e9   :  { %5638 = vpow2.f32 %v2914_v63  ;;  %v1432_v3 = vpop.f32.mrf.mxu0  ;;  %v2334_v63 = vsub.f32 %v7299_v44, %v7559_v29 }
 0x4ea   :  { %v1901_v17 = vunpack.c.l.b16 %v1877_v12  ;;  %5640 = vpow2.f32 %v2908_v5  ;;  %v1531_v30 = vpack.c.bf16 %v1432_v3, %v1432_v3 }
 0x4eb   :  { %5642 = vpow2.f32 %v2355_v54 }
 0x4ec   :  { %v1907_v59 = vpack.c.b16 %v1901_v17, %v1900_v34  ;;  %2401 = vadd.xlane.f32.xlu2 %v2400_v52  ;;  %1548 = vst.msk [vmem:[#allocation2 + $0x10] sm:$0xf] %vm1543_vm11, %v1531_v30  ;;  %5644 = vpow2.f32 %v2361_v46  ;;  %v2898_v46 = vsub.f32 %v7334_v37, %v7584_v47 }
 0x4ed   :  { %v5635_v19 = vpop.eup %5634  ;;  %2890 = vmax.xlane.f32.xlu1 %v2889_v15  ;;  %v7600_v62 = vpop.xlane.xlu0 %2371 }
 0x4ee   :  { %v2858_v51 = vpop.xlane.xlu1 %2857  ;;  %4970 = vmatmul.msk.bf16.gmra.mxu0 %vm1164_vm4, %v1907_v59  ;;  %v5637_v31 = vpop.eup %5636  ;;  %v1862_v11 = vmul.f32 %v5635_v19, %v7328_v26  ;;  %v2365_v26 = vmul.f32 1.442695, %v2334_v63 }
 0x4ef   :  { %v1817_v14 = vpop.xlane.xlu2 %1816  ;;  %v7603_v39 = vpop.eup %5638  ;;  %v1863_v12 = vmul.f32 %v5637_v31, %v7294_v43  ;;  %v2896_v34 = vsub.f32 %v7345_v6, %v2858_v51 }
 0x4f0   :  { %v7607_v5 = vpop.eup %5640  ;;  %v1878_v17 = vpack.c.bf16 %v1862_v11, %v1862_v11  ;;  %v2949_v38 = vsel %vm1164_vm4, %v7603_v39, 0.0  ;;  %5646 = vrcp.f32 %v1817_v14 }
 0x4f1   :  { %v1434_v55 = vpop.f32.mrf.mxu0  ;;  %v2940_v30 = vsel %vm1164_vm4, %v7607_v5, 0.0  ;;  %v1879_v44 = vpack.c.bf16 %v1863_v12, %v1863_v12  ;;  %v7619_v6 = vpop.eup %5642  ;;  %5648 = vrcp.f32 %v7527_v1  ;;  %v2916_v19 = vmul.f32 1.442695, %v2896_v34 }
 0x4f2   :  { %v1532_v3 = vpack.c.bf16 %v1434_v55, %v1434_v55  ;;  %v1902_v59 = vunpack.c.l.b16 %v1878_v17  ;;  %v7622_v54 = vpop.eup %5644  ;;  %5650 = vpow2.f32 %v2365_v26  ;;  %v2397_v55 = vsel %vm1164_vm4, %v7619_v6, 0.0 }
 0x4f3   :  { %5652 = vrcp.f32 %v7581_v36  ;;  %v1903_v31 = vunpack.c.l.b16 %v1879_v44  ;;  %v2406_v1 = vsel %vm1164_vm4, %v7622_v54, 0.0  ;;  %v2920_v34 = vmul.f32 1.442695, %v2898_v46 }
 0x4f4   :  { %2950 = vadd.xlane.f32.xlu2 %v2949_v38  ;;  %1549 = vst.msk [vmem:[#allocation2 + $0x14] sm:$0xf] %vm1543_vm11, %v1532_v3 }
 0x4f5   :  { %2941 = vadd.xlane.f32.xlu1 %v2940_v30  ;;  %v2873_v15 = vpop.xlane.xlu0 %2872  ;;  %v1908_v63 = vpack.c.b16 %v1903_v31, %v1902_v59 }
 0x4f6   :  { %v2315_v29 = vpop.xlane.xlu1 %2314  ;;  %v5647_v12 = vpop.eup %5646 }
 0x4f7   :  { %v2333_v43 = vsub.f32 %v7363_v7, %v2315_v29  ;;  %v7617_v52 = vpop.xlane.xlu2 %2869  ;;  %v2901_v7 = vsub.f32 %v7366_v16, %v2873_v15  ;;  %v5649_v36 = vpop.eup %5648  ;;  %v1865_v3 = vmul.f32 %v5647_v12, %v7349_v21 }
 0x4f8   :  { %v7636_v37 = vpop.eup %5650  ;;  %v1864_v44 = vmul.f32 %v5649_v36, %v7277_v61 }
 0x4f9   :  { %v2363_v51 = vmul.f32 1.442695, %v2333_v43  ;;  %v1437_v14 = vpop.f32.mrf.mxu0  ;;  %v2926_v16 = vmul.f32 1.442695, %v2901_v7  ;;  %v5653_v47 = vpop.eup %5652  ;;  %v2412_v59 = vsel %vm1164_vm4, %v7636_v37, 0.0  ;;  %v1881_v21 = vpack.c.bf16 %v1865_v3, %v1865_v3 }
 0x4fa   :  { %v1533_v11 = vpack.c.bf16 %v1437_v14, %v1437_v14  ;;  %v1880_v46 = vpack.c.bf16 %v1864_v44, %v1864_v44 }
 0x4fb   :  { %5654 = vpow2.f32 %v2363_v51 }
 0x4fc   :  { %5656 = vpow2.f32 %v2916_v19  ;;  %2407 = vadd.xlane.f32.xlu2 %v2406_v1  ;;  %1550 = vst.msk [vmem:[#allocation2 + $0x18] sm:$0xf] %vm1543_vm11, %v1533_v11  ;;  %v1866_v19 = vmul.f32 %v5653_v47, %v7317_v22  ;;  %v1905_v22 = vunpack.c.l.b16 %v1881_v21  ;;  %v1904_v36 = vunpack.c.l.b16 %v1880_v46 }
 0x4fd   :  { %2398 = vadd.xlane.f32.xlu1 %v2397_v55 }
 0x4fe   :  { %v7633_v17 = vpop.xlane.xlu1 %2866  ;;  %4971 = vmatmul.msk.bf16.gmra.mxu0 %vm1164_vm4, %v1908_v63  ;;  %v1882_v11 = vpack.c.bf16 %v1866_v19, %v1866_v19 }
 0x4ff   :  { %v1823_v38 = vpop.xlane.xlu2 %1822 }
 0x500   :  { %5658 = vrcp.f32 %v1823_v38  ;;  %v1971_v47 = vunpack.c.l.b16 %v1882_v11 }
 0x501   :  { %v7639_v26 = vpop.eup %5654  ;;  %5660 = vpow2.f32 %v2926_v16  ;;  %v1439_v43 = vpop.f32.mrf.mxu0 }
 0x502   :  { %v7641_v30 = vpop.eup %5656  ;;  %v2409_v29 = vsel %vm1164_vm4, %v7639_v26, 0.0  ;;  %5662 = vpow2.f32 %v2920_v34  ;;  %v1534_v51 = vpack.c.bf16 %v1439_v43, %v1439_v43  ;;  %v2375_v34 = vpop.xlane.xlu0 %2374 }
 0x503   :  { %2410 = vadd.xlane.f32.xlu0 %v2409_v29  ;;  %v1507_v15 = vpop.f32.mrf.mxu1  ;;  %v2952_v61 = vsel %vm1164_vm4, %v7641_v30, 0.0  ;;  %v1909_v29 = vpack.c.b16 %v1905_v22, %v1904_v36  ;;  %v8464_v22 = vld [vmem:[#allocation29_spill] sm:$0xff] }
 0x504   :  { %v1535_v31 = vpack.c.bf16 %v1507_v15, %v1507_v15  ;;  %2413 = vadd.xlane.f32.xlu2 %v2412_v59  ;;  %1551 = vst.msk [vmem:[#allocation2 + $0x1c] sm:$0xf] %vm1543_vm11, %v1534_v51 }
 0x505   :  { %2953 = vadd.xlane.f32.xlu1 %v2952_v61 }
 0x506   :  { %v2369_v7 = vpop.xlane.xlu1 %2368  ;;  %v5659_v14 = vpop.eup %5658  ;;  %1552 = vst.msk [vmem:[#allocation2 + $0x20] sm:$0xf] %vm1543_vm11, %v1535_v31 }
 0x507   :  { %5664 = vrcp.f32 %v2369_v7  ;;  %v1867_v1 = vmul.f32 %v5659_v14, %v7392_v2  ;;  %v1826_v63 = vpop.xlane.xlu2 %1825  ;;  %v7654_v12 = vpop.eup %5660 }
 0x508   :  { %5666 = vrcp.f32 %v7600_v62  ;;  %v7657_v55 = vpop.eup %5662  ;;  %v2967_v44 = vsel %vm1164_vm4, %v7654_v12, 0.0 }
 0x509   :  { %v1883_v16 = vpack.c.bf16 %v1867_v1, %v1867_v1  ;;  %5668 = vrcp.f32 %v1826_v63  ;;  %v2958_v59 = vsel %vm1164_vm4, %v7657_v55, 0.0 }
 0x50a   :  { %v7669_v14 = vpop.xlane.xlu0 %2875 }
 0x50b   :  { %v1972_v3 = vunpack.c.l.b16 %v1883_v16  ;;  %v1509_v38 = vpop.f32.mrf.mxu1 }
 0x50c   :  { %v1536_v2 = vpack.c.bf16 %v1509_v38, %v1509_v38  ;;  %2968 = vadd.xlane.f32.xlu2 %v2967_v44 }
 0x50d   :  { %v5665_v43 = vpop.eup %5664  ;;  %v1979_v62 = vpack.c.b16 %v1972_v3, %v1971_v47  ;;  %2959 = vadd.xlane.f32.xlu1 %v2958_v59 }
 0x50e   :  { %4972 = vmatmul.msk.bf16.gmra.mxu0 %vm1164_vm4, %v1909_v29  ;;  %v5667_v19 = vpop.eup %5666  ;;  %1553 = vst.msk [vmem:[#allocation2 + $0x24] sm:$0xf] %vm1543_vm11, %v1536_v2  ;;  %v2431_v21 = vmul.f32 %v5665_v43, %v7406_v57 }
 0x50f   :  { %v1829_v15 = vpop.xlane.xlu2 %1828  ;;  %4973 = vmatmul.msk.bf16.vlgmr.msra.gmra.mxu1 %vm1164_vm4, %v1979_v62  ;;  %v5669_v51 = vpop.eup %5668  ;;  %v2432_v31 = vmul.f32 %v5667_v19, %v7351_v53  ;;  %v8465_v19 = vld [vmem:[#allocation27_spill] sm:$0xff] }
 0x510   :  { %5670 = vrcp.f32 %v1829_v15  ;;  %v2447_v61 = vpack.c.bf16 %v2431_v21, %v2431_v21  ;;  %v1868_v46 = vmul.f32 %v5669_v51, %v7412_v25  ;;  %v8466_v15 = vld [vmem:[#allocation30_spill] sm:$0xff] }
 0x511   :  { %v2448_v7 = vpack.c.bf16 %v2432_v31, %v2432_v31  ;;  %5672 = vrcp.f32 %v2375_v34 }
 0x512   :  { %v2471_v1 = vunpack.c.l.b16 %v2447_v61  ;;  %v1884_v57 = vpack.c.bf16 %v1868_v46, %v1868_v46  ;;  %v1835_v2 = vpop.xlane.xlu0 %1834 }
 0x513   :  { %v2472_v16 = vunpack.c.l.b16 %v2448_v7 }
 0x514   :  { %v1973_v3 = vunpack.c.l.b16 %v1884_v57 }
 0x515   :  { %v2479_v53 = vpack.c.b16 %v2472_v16, %v2471_v1  ;;  %v2899_v1 = vsub.f32 %v7388_v10, %v7633_v17 }
 0x516   :  { %v5671_v11 = vpop.eup %5670 }
 0x517   :  { %3133 = vrot.lane.b32.xlu0 %v8464_v22, %s6048_s26  ;;  %v1869_v63 = vmul.f32 %v5671_v11, %v7426_v27  ;;  %v2378_v36 = vpop.xlane.xlu2 %2377  ;;  %v5673_v25 = vpop.eup %5672 }
 0x518   :  { %5674 = vrcp.f32 %v2378_v36  ;;  %v2433_v27 = vmul.f32 %v5673_v25, %v7394_v24 }
 0x519   :  { %v1885_v47 = vpack.c.bf16 %v1869_v63, %v1869_v63  ;;  %5676 = vrcp.f32 %v1835_v2 }
 0x51a   :  { %v2449_v21 = vpack.c.bf16 %v2433_v27, %v2433_v27 }
 0x51b   :  { %v1974_v38 = vunpack.c.l.b16 %v1885_v47  ;;  %v2922_v47 = vmul.f32 1.442695, %v2899_v1 }
 0x51c   :  { %v2473_v46 = vunpack.c.l.b16 %v2449_v21 }
 0x51d   :  { %v3057_v44 = vpop.permute.xlu1 %3056  ;;  %v1980_v29 = vpack.c.b16 %v1974_v38, %v1973_v3 }
 0x51e   :  { %4985 = vmatmul.msk.bf16.vlgmr.msrb.gmra.mxu0 %vm1164_vm4, %v2479_v53  ;;  %v5675_v43 = vpop.eup %5674 }
 0x51f   :  { %3087 = vmatpush.bf16.msra.mxu0 %v3057_v44  ;;  %v2434_v34 = vmul.f32 %v5675_v43, %v7438_v45  ;;  %v2879_v59 = vpop.xlane.xlu2 %2878  ;;  %4974 = vmatmul.msk.bf16.gmra.mxu1 %vm1164_vm4, %v1980_v29  ;;  %v5677_v61 = vpop.eup %5676  ;;  %v2900_v44 = vsub.f32 %v7373_v42, %v7617_v52 }
 0x520   :  { %v1871_v45 = vmul.f32 %v5677_v61, %v7424_v13 }
 0x521   :  { %v2450_v62 = vpack.c.bf16 %v2434_v34, %v2434_v34  ;;  %v2924_v17 = vmul.f32 1.442695, %v2900_v44  ;;  %v2902_v34 = vsub.f32 %v7409_v40, %v7669_v14 }
 0x522   :  { %v1887_v57 = vpack.c.bf16 %v1871_v45, %v1871_v45 }
 0x523   :  { %v2474_v51 = vunpack.c.l.b16 %v2450_v62  ;;  %v2928_v62 = vmul.f32 1.442695, %v2902_v34 }
 0x524   :  { %3131 = vrot.lane.b32.xlu2 %v8465_v19, %s6048_s26  ;;  %v1976_v53 = vunpack.c.l.b16 %v1887_v57 }
 0x525   :  { %v2480_v11 = vpack.c.b16 %v2474_v51, %v2473_v46 }
 0x526   :  { %3135 = vrot.lane.b32.xlu1 %v8466_v15, %s6048_s26 }
 0x527   :  { %v1832_v31 = vpop.xlane.xlu2 %1831 }
 0x528   :  { %5678 = vrcp.f32 %v1832_v31 }
 0x529   :  { %5680 = vpow2.f32 %v2922_v47 }
 0x52a   :  { %5682 = vpow2.f32 %v2924_v17 }
 0x52b   :  { %v1512_v7 = vpop.f32.mrf.mxu1 }
 0x52c   :  { %v1537_v22 = vpack.c.bf16 %v1512_v7, %v1512_v7 }
 0x52e   :  { %4986 = vmatmul.msk.bf16.gmra.mxu0 %vm1164_vm4, %v2480_v11  ;;  %v5679_v24 = vpop.eup %5678  ;;  %1554 = vst.msk [vmem:[#allocation2 + $0x28] sm:$0xf] %vm1543_vm11, %v1537_v22  ;;  %v2387_v11 = vpop.xlane.xlu0 %2386 }
 0x52f   :  { %v1870_v63 = vmul.f32 %v5679_v24, %v7458_v4  ;;  %v2381_v36 = vpop.xlane.xlu2 %2380  ;;  %v2903_v4 = vsub.f32 %v7451_v56, %v2879_v59  ;;  %v7695_v43 = vpop.eup %5680 }
 0x530   :  { %v2961_v52 = vsel %vm1164_vm4, %v7695_v43, 0.0  ;;  %v7702_v59 = vpop.eup %5682 }
 0x531   :  { %v1886_v16 = vpack.c.bf16 %v1870_v63, %v1870_v63  ;;  %v2930_v27 = vmul.f32 1.442695, %v2903_v4  ;;  %v2964_v40 = vsel %vm1164_vm4, %v7702_v59, 0.0 }
 0x533   :  { %v1975_v3 = vunpack.c.l.b16 %v1886_v16  ;;  %v1514_v13 = vpop.f32.mrf.mxu1  ;;  %5684 = vpow2.f32 %v2930_v27 }
 0x534   :  { %v1538_v38 = vpack.c.bf16 %v1514_v13, %v1514_v13  ;;  %5686 = vrcp.f32 %v2381_v36 }
 0x535   :  { %v1981_v25 = vpack.c.b16 %v1976_v53, %v1975_v3  ;;  %5688 = vpow2.f32 %v2928_v62 }
 0x536   :  { %1555 = vst.msk [vmem:[#allocation2 + $0x2c] sm:$0xf] %vm1543_vm11, %v1538_v38  ;;  %v2393_v38 = vpop.xlane.xlu0 %2392 }
 0x537   :  { %v7691_v10 = vpop.xlane.xlu2 %2881  ;;  %4975 = vmatmul.msk.bf16.gmra.mxu1 %vm1164_vm4, %v1981_v25 }
 0x539   :  { %v7707_v14 = vpop.eup %5684 }
 0x53a   :  { %v5687_v31 = vpop.eup %5686  ;;  %v2973_v7 = vsel %vm1164_vm4, %v7707_v14, 0.0 }
 0x53b   :  { %v1517_v29 = vpop.f32.mrf.mxu1  ;;  %v7710_v46 = vpop.eup %5688  ;;  %v2435_v45 = vmul.f32 %v5687_v31, %v7476_v18 }
 0x53c   :  { %v1539_v2 = vpack.c.bf16 %v1517_v29, %v1517_v29 }
 0x53d   :  { %v2451_v1 = vpack.c.bf16 %v2435_v45, %v2435_v45 }
 0x53e   :  { %1556 = vst.msk [vmem:[#allocation2 + $0x30] sm:$0xf] %vm1543_vm11, %v1539_v2 }
 0x53f   :  { %v1838_v42 = vpop.xlane.xlu2 %1837  ;;  %v2475_v3 = vunpack.c.l.b16 %v2451_v1 }
 0x541   :  { %2962 = vadd.xlane.f32.xlu0 %v2961_v52 }
 0x543   :  { %v1519_v56 = vpop.f32.mrf.mxu1 }
 0x544   :  { %v1540_v19 = vpack.c.bf16 %v1519_v56, %v1519_v56  ;;  %v8467_v56 = vld [vmem:[#allocation26_spill] sm:$0xff] }
 0x546   :  { %1557 = vst.msk [vmem:[#allocation2 + $0x34] sm:$0xf] %vm1543_vm11, %v1540_v19 }
 0x547   :  { %v2888_v21 = vpop.xlane.xlu2 %2887 }
 0x548   :  { %v2906_v15 = vsub.f32 %v7523_v0, %v2888_v21  ;;  %v2384_v51 = vpop.xlane.xlu1 %2383  ;;  %v2970_v0 = vsel %vm1164_vm4, %v7710_v46, 0.0 }
 0x549   :  { %2965 = vadd.xlane.f32.xlu0 %v2964_v40  ;;  %5690 = vrcp.f32 %v2384_v51 }
 0x54a   :  { %v2936_v61 = vmul.f32 1.442695, %v2906_v15  ;;  %v2945_v15 = vpop.xlane.xlu0 %2944 }
 0x54b   :  { %v7723_v17 = vpop.f32.mrf.mxu0 }
 0x54c   :  { %5692 = vpow2.f32 %v2936_v61 }
 0x54d   :  { %2974 = vadd.xlane.f32.xlu2 %v2973_v7 }
 0x54f   :  { %v5691_v22 = vpop.eup %5690  ;;  %v2390_v24 = vpop.xlane.xlu2 %2389 }
 0x550   :  { %v2436_v57 = vmul.f32 %v5691_v22, %v7525_v8  ;;  %v2885_v63 = vpop.xlane.xlu1 %2884  ;;  %2971 = vadd.xlane.f32.xlu1 %v2970_v0  ;;  %5694 = vrcp.f32 %v2390_v24 }
 0x551   :  { %v2905_v36 = vsub.f32 %v7552_v35, %v2885_v63  ;;  %5696 = vrcp.f32 %v2387_v11 }
 0x552   :  { %v7719_v18 = vpop.eup %5692  ;;  %v2452_v16 = vpack.c.bf16 %v2436_v57, %v2436_v57  ;;  %5698 = vrcp.f32 %v1838_v42 }
 0x553   :  { %v2934_v47 = vmul.f32 1.442695, %v2905_v36  ;;  %v2982_v53 = vsel %vm1164_vm4, %v7719_v18, 0.0 }
 0x554   :  { %v2476_v13 = vunpack.c.l.b16 %v2452_v16 }
 0x555   :  { %5700 = vpow2.f32 %v2934_v47  ;;  %2983 = vadd.xlane.f32.xlu2 %v2982_v53 }
 0x556   :  { %v2481_v8 = vpack.c.b16 %v2476_v13, %v2475_v3  ;;  %v5695_v25 = vpop.eup %5694 }
 0x557   :  { %v5697_v44 = vpop.eup %5696  ;;  %v2396_v29 = vpop.xlane.xlu2 %2395  ;;  %v2438_v2 = vmul.f32 %v5695_v25, %v7548_v32 }
 0x558   :  { %v1841_v35 = vpop.xlane.xlu1 %1840  ;;  %4987 = vmatmul.msk.bf16.gmra.mxu0 %vm1164_vm4, %v2481_v8  ;;  %v5699_v4 = vpop.eup %5698  ;;  %v2437_v52 = vmul.f32 %v5697_v44, %v7436_v49 }
 0x559   :  { %5702 = vrcp.f32 %v1841_v35  ;;  %v1872_v62 = vmul.f32 %v5699_v4, %v7503_v9  ;;  %v2454_v21 = vpack.c.bf16 %v2438_v2, %v2438_v2  ;;  %v1945_v9 = vpop.f32.mrf.mxu0  ;;  %v2948_v25 = vpop.xlane.xlu0 %2947 }
 0x55a   :  { %v2453_v32 = vpack.c.bf16 %v2437_v52, %v2437_v52  ;;  %5704 = vrcp.f32 %v2396_v29 }
 0x55b   :  { %v1522_v34 = vpop.f32.mrf.mxu1  ;;  %v7727_v27 = vpop.eup %5700  ;;  %v1888_v51 = vpack.c.bf16 %v1872_v62, %v1872_v62  ;;  %5706 = vrcp.f32 %v2393_v38  ;;  %v2478_v49 = vunpack.c.l.b16 %v2454_v21  ;;  %v2037_v38 = vpack.c.bf16 %v1945_v9, %v1945_v9 }
 0x55c   :  { %v1541_v42 = vpack.c.bf16 %v1522_v34, %v1522_v34  ;;  %v2979_v19 = vsel %vm1164_vm4, %v7727_v27, 0.0  ;;  %5708 = vrcp.f32 %v2945_v15  ;;  %v2477_v24 = vunpack.c.l.b16 %v2453_v32 }
 0x55d   :  { %3129 = vrot.lane.b32.xlu0 %v8467_v56, %s6048_s26  ;;  %2980 = vadd.xlane.f32.xlu1 %v2979_v19  ;;  %v1977_v0 = vunpack.c.l.b16 %v1888_v51  ;;  %v2904_v56 = vsub.f32 %v7488_v33, %v7691_v10  ;;  %v2036_v19 = vpack.c.bf16 %v7723_v17, %v7723_v17 }
 0x55e   :  { %1558 = vst.msk [vmem:[#allocation2 + $0x38] sm:$0xf] %vm1543_vm11, %v1541_v42  ;;  %v2482_v63 = vpack.c.b16 %v2478_v49, %v2477_v24 }
 0x55f   :  { %v5703_v40 = vpop.eup %5702  ;;  %v2402_v11 = vpop.xlane.xlu2 %2401  ;;  %v2932_v49 = vmul.f32 1.442695, %v2904_v56 }
 0x560   :  { %v1873_v31 = vmul.f32 %v5703_v40, %v7569_v20  ;;  %v7737_v61 = vpop.xlane.xlu1 %2890  ;;  %v5705_v36 = vpop.eup %5704 }
 0x561   :  { %v5707_v20 = vpop.eup %5706  ;;  %v2440_v53 = vmul.f32 %v5705_v36, %v7567_v23  ;;  %v2405_v32 = vpop.xlane.xlu0 %2404 }
 0x562   :  { %v1889_v45 = vpack.c.bf16 %v1873_v31, %v1873_v31  ;;  %v5709_v47 = vpop.eup %5708  ;;  %v2439_v13 = vmul.f32 %v5707_v20, %v7462_v48 }
 0x563   :  { %v1524_v7 = vpop.f32.mrf.mxu1  ;;  %v3005_v8 = vmul.f32 %v5709_v47, %v7478_v60  ;;  %v2456_v35 = vpack.c.bf16 %v2440_v53, %v2440_v53 }
 0x564   :  { %v1542_v22 = vpack.c.bf16 %v1524_v7, %v1524_v7  ;;  %v1978_v1 = vunpack.c.l.b16 %v1889_v45  ;;  %v2455_v29 = vpack.c.bf16 %v2439_v13, %v2439_v13 }
 0x565   :  { %v3021_v2 = vpack.c.bf16 %v3005_v8, %v3005_v8  ;;  %v2545_v23 = vunpack.c.l.b16 %v2456_v35 }
 0x566   :  { %1559 = vst.msk [vmem:[#allocation2 + $0x3c] sm:$0xf] %vm1543_vm11, %v1542_v22  ;;  %v1982_v57 = vpack.c.b16 %v1978_v1, %v1977_v0  ;;  %v2544_v62 = vunpack.c.l.b16 %v2455_v29 }
 0x567   :  { %v2951_v44 = vpop.xlane.xlu2 %2950  ;;  %v3045_v60 = vunpack.c.l.b16 %v3021_v2  ;;  %v8468_v2 = vld [vmem:[#allocation35_spill] sm:$0xff] }
 0x568   :  { %v2942_v16 = vpop.xlane.xlu1 %2941  ;;  %4976 = vmatmul.msk.bf16.gmra.mxu1 %vm1164_vm4, %v1982_v57  ;;  %4988 = vmatmul.msk.bf16.gmra.mxu0 %vm1164_vm4, %v2482_v63 }
 0x569   :  { %5710 = vrcp.f32 %v2942_v16  ;;  %v2957_v63 = vpop.xlane.xlu0 %2956 }
 0x56a   :  { %5712 = vrcp.f32 %v2951_v44 }
 0x56b   :  { %v7743_v3 = vpop.f32.mrf.mxu0 }
 0x56d   :  { %2070 = vrot.lane.b32.xlu2 %v2037_v38, %s6048_s26 }
 0x56f   :  { %v5711_v4 = vpop.eup %5710  ;;  %v2408_v22 = vpop.xlane.xlu2 %2407 }
 0x570   :  { %v3004_v34 = vmul.f32 %v5711_v4, %v7607_v5  ;;  %v2399_v42 = vpop.xlane.xlu1 %2398  ;;  %v5713_v40 = vpop.eup %5712  ;;  %v2552_v5 = vpack.c.b16 %v2545_v23, %v2544_v62 }
 0x571   :  { %5714 = vrcp.f32 %v2399_v42  ;;  %v3007_v33 = vmul.f32 %v5713_v40, %v7603_v39 }
 0x572   :  { %5716 = vrcp.f32 %v2948_v25  ;;  %v3020_v52 = vpack.c.bf16 %v3004_v34, %v3004_v34 }
 0x573   :  { %v7749_v48 = vpop.f32.mrf.mxu0  ;;  %5718 = vrcp.f32 %v2402_v11  ;;  %v2907_v11 = vsub.f32 %v7589_v28, %v7737_v61  ;;  %v3023_v24 = vpack.c.bf16 %v3007_v33, %v3007_v33 }
 0x574   :  { %v3044_v21 = vunpack.c.l.b16 %v3020_v52  ;;  %5720 = vpow2.f32 %v2932_v49 }
 0x575   :  { %v2938_v39 = vmul.f32 1.442695, %v2907_v11  ;;  %5722 = vrcp.f32 %v2408_v22  ;;  %v3047_v20 = vunpack.c.l.b16 %v3023_v24 }
 0x576   :  { %v3052_v15 = vpack.c.b16 %v3045_v60, %v3044_v21  ;;  %2068 = vrot.lane.b32.xlu1 %v2036_v19, %s6048_s26  ;;  %v2411_v52 = vpop.xlane.xlu0 %2410 }
 0x577   :  { %v5715_v51 = vpop.eup %5714  ;;  %v2414_v23 = vpop.xlane.xlu2 %2413 }
 0x578   :  { %v5717_v31 = vpop.eup %5716  ;;  %4989 = vmatmul.msk.bf16.vlgmr.msrb.gmra.mxu1 %vm1164_vm4, %v2552_v5  ;;  %5001 = vmatmul.msk.bf16.vlgmr.msra.gmra.mxu0 %vm1164_vm4, %v3052_v15  ;;  %v2441_v10 = vmul.f32 %v5715_v51, %v7619_v6  ;;  %v2954_v1 = vpop.xlane.xlu1 %2953 }
 0x579   :  { %v5719_v9 = vpop.eup %5718  ;;  %v3006_v45 = vmul.f32 %v5717_v31, %v7506_v58  ;;  %5724 = vrcp.f32 %v2954_v1 }
 0x57a   :  { %v2442_v7 = vmul.f32 %v5719_v9, %v7586_v50  ;;  %v2457_v0 = vpack.c.bf16 %v2441_v10, %v2441_v10  ;;  %v7766_v6 = vpop.eup %5720  ;;  %5726 = vrcp.f32 %v2405_v32 }
 0x57b   :  { %v7760_v17 = vpop.f32.mrf.mxu0  ;;  %v3022_v57 = vpack.c.bf16 %v3006_v45, %v3006_v45  ;;  %5728 = vrcp.f32 %v2957_v63  ;;  %v2976_v61 = vsel %vm1164_vm4, %v7766_v6, 0.0  ;;  %v5723_v47 = vpop.eup %5722 }
 0x57c   :  { %v2458_v36 = vpack.c.bf16 %v2442_v7, %v2442_v7  ;;  %v2546_v58 = vunpack.c.l.b16 %v2457_v0  ;;  %5730 = vpow2.f32 %v2938_v39  ;;  %v2444_v35 = vmul.f32 %v5723_v47, %v7622_v54 }
 0x57d   :  { %v3046_v50 = vunpack.c.l.b16 %v3022_v57  ;;  %5732 = vrcp.f32 %v2411_v52 }
 0x57e   :  { %v2547_v28 = vunpack.c.l.b16 %v2458_v36  ;;  %v2460_v60 = vpack.c.bf16 %v2444_v35, %v2444_v35  ;;  %5734 = vrcp.f32 %v2414_v23 }
 0x57f   :  { %v3053_v13 = vpack.c.b16 %v3047_v20, %v3046_v50  ;;  %v5725_v38 = vpop.eup %5724  ;;  %v2969_v51 = vpop.xlane.xlu2 %2968 }
 0x580   :  { %v2553_v53 = vpack.c.b16 %v2547_v28, %v2546_v58  ;;  %v5727_v8 = vpop.eup %5726  ;;  %v3008_v4 = vmul.f32 %v5725_v38, %v7641_v30  ;;  %v2960_v54 = vpop.xlane.xlu1 %2959  ;;  %v2549_v30 = vunpack.c.l.b16 %v2460_v60 }
 0x581   :  { %v5729_v25 = vpop.eup %5728  ;;  %v2443_v34 = vmul.f32 %v5727_v8, %v8468_v2  ;;  %5736 = vrcp.f32 %v2960_v54 }
 0x582   :  { %v7774_v44 = vpop.eup %5730  ;;  %v3009_v42 = vmul.f32 %v5729_v25, %v7545_v41  ;;  %v3024_v56 = vpack.c.bf16 %v3008_v4, %v3008_v4 }
 0x583   :  { %v7768_v16 = vpop.f32.mrf.mxu0  ;;  %v2985_v62 = vsel %vm1164_vm4, %v7774_v44, 0.0  ;;  %v2459_v19 = vpack.c.bf16 %v2443_v34, %v2443_v34  ;;  %v5733_v41 = vpop.eup %5732 }
 0x584   :  { %v3025_v21 = vpack.c.bf16 %v3009_v42, %v3009_v42  ;;  %v3048_v40 = vunpack.c.l.b16 %v3024_v56  ;;  %v5735_v9 = vpop.eup %5734  ;;  %v2445_v10 = vmul.f32 %v5733_v41, %v7639_v26  ;;  %v2038_v26 = vpack.c.bf16 %v7743_v3, %v7743_v3 }
 0x585   :  { %v2548_v5 = vunpack.c.l.b16 %v2459_v19  ;;  %v2446_v45 = vmul.f32 %v5735_v9, %v7636_v37  ;;  %v2040_v3 = vpack.c.bf16 %v7760_v17, %v7760_v17 }
 0x586   :  { %v3049_v15 = vunpack.c.l.b16 %v3025_v21  ;;  %v2461_v22 = vpack.c.bf16 %v2445_v10, %v2445_v10 }
 0x587   :  { %2977 = vadd.xlane.f32.xlu0 %v2976_v61  ;;  %v2554_v31 = vpack.c.b16 %v2549_v30, %v2548_v5  ;;  %v2462_v24 = vpack.c.bf16 %v2446_v45, %v2446_v45  ;;  %v3132_v0 = vpop.permute.xlu2 %3131  ;;  %v5737_v47 = vpop.eup %5736 }
 0x588   :  { %4990 = vmatmul.msk.bf16.gmra.mxu1 %vm1164_vm4, %v2553_v53  ;;  %5002 = vmatmul.msk.bf16.gmra.mxu0 %vm1164_vm4, %v3053_v13  ;;  %v3054_v49 = vpack.c.b16 %v3049_v15, %v3048_v40  ;;  %v2550_v57 = vunpack.c.l.b16 %v2461_v22  ;;  %v3010_v53 = vmul.f32 %v5737_v47, %v7657_v55 }
 0x589   :  { %v3134_v11 = vpop.permute.xlu0 %3133  ;;  %v2551_v63 = vunpack.c.l.b16 %v2462_v24 }
 0x58a   :  { %v3026_v8 = vpack.c.bf16 %v3010_v53, %v3010_v53 }
 0x58b   :  { %v7778_v29 = vpop.f32.mrf.mxu0  ;;  %v2555_v20 = vpack.c.b16 %v2551_v63, %v2550_v57 }
 0x58c   :  { %v7797_v58 = vpop.f32.mrf.mxu1  ;;  %v3050_v2 = vunpack.c.l.b16 %v3026_v8  ;;  %v2039_v8 = vpack.c.bf16 %v7749_v48, %v7749_v48 }
 0x58f   :  { %2986 = vadd.xlane.f32.xlu0 %v2985_v62 }
 0x593   :  { %v7784_v32 = vpop.f32.mrf.mxu0 }
 0x594   :  { %v7802_v13 = vpop.f32.mrf.mxu1 }
 0x598   :  { %v3136_v33 = vpop.permute.xlu1 %3135  ;;  %4991 = vmatmul.msk.bf16.gmra.mxu1 %vm1164_vm4, %v2554_v31  ;;  %5003 = vmatmul.msk.bf16.gmra.mxu0 %vm1164_vm4, %v3054_v49 }
 0x599   :  { %3157 = vmatpush.bf16.msra.mxu1 %v3136_v33 }
 0x59b   :  { %v2516_v7 = vpop.f32.mrf.mxu0 }
 0x59c   :  { %v2609_v1 = vpack.c.bf16 %v2516_v7, %v2516_v7  ;;  %v7808_v23 = vpop.f32.mrf.mxu1 }
 0x59d   :  { %3158 = vmatpush.bf16.msra.mxu1 %v3134_v11 }
 0x5a1   :  { %3159 = vmatpush.bf16.msra.mxu1 %v3132_v0 }
 0x5a3   :  { %2641 = vrot.lane.b32.xlu0 %v2609_v1, %s6034_s1  ;;  %v2518_v36 = vpop.f32.mrf.mxu0 }
 0x5a4   :  { %v2610_v39 = vpack.c.bf16 %v2518_v36, %v2518_v36  ;;  %v7815_v54 = vpop.f32.mrf.mxu1 }
 0x5a6   :  { %2643 = vrot.lane.b32.xlu1 %v2610_v39, %s6034_s1 }
 0x5a8   :  { %4992 = vmatmul.msk.bf16.gmra.mxu1 %vm1164_vm4, %v2555_v20 }
 0x5ab   :  { %v7793_v37 = vpop.f32.mrf.mxu0 }
 0x5ae   :  { %2072 = vrot.lane.b32.xlu1 %v2038_v26, %s6048_s26 }
 0x5b3   :  { %v2523_v50 = vpop.f32.mrf.mxu0 }
 0x5b4   :  { %v2612_v28 = vpack.c.bf16 %v2523_v50, %v2523_v50  ;;  %v2963_v61 = vpop.xlane.xlu0 %2962 }
 0x5b5   :  { %5738 = vrcp.f32 %v2963_v61 }
 0x5b6   :  { %2647 = vrot.lane.b32.xlu1 %v2612_v28, %s6034_s1  ;;  %v2044_v28 = vpack.c.bf16 %v7797_v58, %v7797_v58 }
 0x5bb   :  { %v5739_v38 = vpop.eup %5738 }
 0x5bc   :  { %v3011_v25 = vmul.f32 %v5739_v38, %v7695_v43  ;;  %v2966_v35 = vpop.xlane.xlu0 %2965 }
 0x5bd   :  { %5740 = vrcp.f32 %v2966_v35 }
 0x5be   :  { %5742 = vrcp.f32 %v2969_v51  ;;  %v3027_v4 = vpack.c.bf16 %v3011_v25, %v3011_v25  ;;  %2076 = vrot.lane.b32.xlu1 %v2040_v3, %s6048_s26 }
 0x5c0   :  { %v3051_v34 = vunpack.c.l.b16 %v3027_v4  ;;  %v2975_v42 = vpop.xlane.xlu2 %2974 }
 0x5c2   :  { %v3055_v55 = vpack.c.b16 %v3051_v34, %v3050_v2 }
 0x5c3   :  { %v5741_v52 = vpop.eup %5740  ;;  %v2972_v56 = vpop.xlane.xlu1 %2971 }
 0x5c4   :  { %v5743_v62 = vpop.eup %5742  ;;  %5004 = vmatmul.msk.bf16.gmra.mxu0 %vm1164_vm4, %v3055_v55  ;;  %v3012_v17 = vmul.f32 %v5741_v52, %v7702_v59  ;;  %5744 = vrcp.f32 %v2972_v56  ;;  %v7819_v59 = vpop.f32.mrf.mxu1 }
 0x5c5   :  { %v3013_v43 = vmul.f32 %v5743_v62, %v7654_v12  ;;  %5746 = vrcp.f32 %v2975_v42  ;;  %v2046_v62 = vpack.c.bf16 %v7808_v23, %v7808_v23 }
 0x5c6   :  { %v3028_v60 = vpack.c.bf16 %v3012_v17, %v3012_v17 }
 0x5c7   :  { %v3029_v21 = vpack.c.bf16 %v3013_v43, %v3013_v43  ;;  %v2611_v43 = vpack.c.bf16 %v7793_v37, %v7793_v37  ;;  %v2041_v37 = vpack.c.bf16 %v7768_v16, %v7768_v16  ;;  %v2048_v16 = vpack.c.bf16 %v7819_v59, %v7819_v59 }
 0x5c8   :  { %v7813_v19 = vpop.xlane.xlu2 %2983  ;;  %v3117_v30 = vunpack.c.l.b16 %v3028_v60  ;;  %v2043_v59 = vpack.c.bf16 %v7784_v32, %v7784_v32 }
 0x5c9   :  { %v3118_v40 = vunpack.c.l.b16 %v3029_v21 }
 0x5ca   :  { %v5745_v51 = vpop.eup %5744 }
 0x5cb   :  { %v3125_v15 = vpack.c.b16 %v3118_v40, %v3117_v30  ;;  %v5747_v12 = vpop.eup %5746  ;;  %v3014_v31 = vmul.f32 %v5745_v51, %v7710_v46 }
 0x5cc   :  { %v3015_v9 = vmul.f32 %v5747_v12, %v7707_v14  ;;  %v7825_v7 = vpop.f32.mrf.mxu1  ;;  %v2042_v14 = vpack.c.bf16 %v7778_v29, %v7778_v29 }
 0x5cd   :  { %v3030_v33 = vpack.c.bf16 %v3014_v31, %v3014_v31 }
 0x5ce   :  { %v3031_v10 = vpack.c.bf16 %v3015_v9, %v3015_v9 }
 0x5cf   :  { %v3130_v5 = vpop.permute.xlu0 %3129  ;;  %v3119_v45 = vunpack.c.l.b16 %v3030_v33 }
 0x5d0   :  { %3160 = vmatpush.bf16.msra.mxu1 %v3130_v5  ;;  %v2071_v41 = vpop.permute.xlu2 %2070  ;;  %v3120_v22 = vunpack.c.l.b16 %v3031_v10  ;;  %v2981_v0 = vpop.xlane.xlu1 %2980 }
 0x5d1   :  { %2118 = vst.msk [vmem:[#allocation2 + $0x4] sm:$0xf] %vm2116_vm12, %v2071_v41  ;;  %5748 = vrcp.f32 %v2981_v0 }
 0x5d2   :  { %v3126_v1 = vpack.c.b16 %v3120_v22, %v3119_v45 }
 0x5d3   :  { %5005 = vmatmul.msk.bf16.vlgmr.msra.gmra.mxu1 %vm1164_vm4, %v3125_v15 }
 0x5d5   :  { %v7822_v49 = vpop.f32.mrf.mxu0 }
 0x5d6   :  { %v2613_v33 = vpack.c.bf16 %v7822_v49, %v7822_v49 }
 0x5d7   :  { %v5749_v47 = vpop.eup %5748 }
 0x5d8   :  { %v3017_v53 = vmul.f32 %v5749_v47, %v7727_v27 }
 0x5da   :  { %v3033_v58 = vpack.c.bf16 %v3017_v53, %v3017_v53  ;;  %v5364_v53 = vld [vmem:[#allocation12 + $0x18] sm:$0xff] }
 0x5dc   :  { %v3122_v42 = vunpack.c.l.b16 %v3033_v58 }
 0x5dd   :  { %v2528_v11 = vpop.f32.mrf.mxu0 }
 0x5de   :  { %v2614_v24 = vpack.c.bf16 %v2528_v11, %v2528_v11 }
 0x5e0   :  { %2651 = vrot.lane.b32.xlu1 %v2614_v24, %s6034_s1 }
 0x5e3   :  { %5006 = vmatmul.msk.bf16.gmra.mxu1 %vm1164_vm4, %v3126_v1 }
 0x5e5   :  { %v7829_v57 = vpop.f32.mrf.mxu1  ;;  %v7831_v46 = vpop.f32.mrf.mxu0 }
 0x5e8   :  { %2080 = vrot.lane.b32.xlu1 %v2042_v14, %s6048_s26  ;;  %v2069_v63 = vpop.permute.xlu1 %2068  ;;  %v2050_v14 = vpack.c.bf16 %v7829_v57, %v7829_v57  ;;  %v5366_v57 = vld [vmem:[#allocation12 + $0x28] sm:$0xff] }
 0x5e9   :  { %2117 = vst.msk [vmem:[#allocation2] sm:$0xf] %vm2116_vm12, %v2069_v63  ;;  %v2615_v63 = vpack.c.bf16 %v7831_v46, %v7831_v46 }
 0x5ed   :  { %v7837_v36 = vpop.f32.mrf.mxu1  ;;  %v2533_v39 = vpop.f32.mrf.mxu0 }
 0x5ee   :  { %v2616_v20 = vpack.c.bf16 %v2533_v39, %v2533_v39 }
 0x5f0   :  { %2655 = vrot.lane.b32.xlu1 %v2616_v20, %s6034_s1 }
 0x5f5   :  { %v7840_v26 = vpop.f32.mrf.mxu1  ;;  %v3089_v50 = vpop.f32.mrf.mxu0 }
 0x5f6   :  { %v3182_v61 = vpack.c.bf16 %v3089_v50, %v3089_v50 }
 0x5f8   :  { %2084 = vrot.lane.b32.xlu1 %v2044_v28, %s6048_s26  ;;  %3214 = vrot.lane.b32.xlu0 %v3182_v61, %s6047_s2  ;;  %v5368_v28 = vld [vmem:[#allocation12 + $0x38] sm:$0xff]  ;;  %v5367_v61 = vld [vmem:[#allocation12 + $0x30] sm:$0xff] }
 0x5f9   :  { %3411 = vmatpush.bf16.msra.mxu2 %v5368_v28 }
 0x5fa   :  { %v2978_v29 = vpop.xlane.xlu0 %2977 }
 0x5fb   :  { %5750 = vrcp.f32 %v2978_v29  ;;  %v5365_v29 = vld [vmem:[#allocation12 + $0x20] sm:$0xff] }
 0x5fd   :  { %v2591_v38 = vpop.f32.mrf.mxu1  ;;  %v3091_v3 = vpop.f32.mrf.mxu0  ;;  %3412 = vmatpush.bf16.msra.mxu2 %v5367_v61 }
 0x5fe   :  { %v2618_v25 = vpack.c.bf16 %v2591_v38, %v2591_v38  ;;  %v3183_v35 = vpack.c.bf16 %v3091_v3, %v3091_v3  ;;  %v5363_v3 = vld [vmem:[#allocation12 + $0x10] sm:$0xff] }
 0x600   :  { %2659 = vrot.lane.b32.xlu1 %v2618_v25, %s6034_s1  ;;  %2074 = vrot.lane.b32.xlu0 %v2039_v8, %s6048_s26  ;;  %v2045_v8 = vpack.c.bf16 %v7802_v13, %v7802_v13 }
 0x601   :  { %v5751_v4 = vpop.eup %5750  ;;  %3216 = vrot.lane.b32.xlu2 %v3183_v35, %s6047_s2  ;;  %3413 = vmatpush.bf16.msra.mxu2 %v5366_v57  ;;  %v5362_v35 = vld [vmem:[#allocation12 + $0x8] sm:$0xff] }
 0x602   :  { %v3016_v2 = vmul.f32 %v5751_v4, %v7766_v6  ;;  %v2987_v34 = vpop.xlane.xlu0 %2986  ;;  %v5361_v4 = vld [vmem:[#allocation12] sm:$0xff] }
 0x603   :  { %5752 = vrcp.f32 %v2987_v34  ;;  %v2617_v34 = vpack.c.bf16 %v7840_v26, %v7840_v26 }
 0x604   :  { %v3032_v27 = vpack.c.bf16 %v3016_v2, %v3016_v2  ;;  %5754 = vrcp.f32 %v7813_v19 }
 0x605   :  { %v7854_v48 = vpop.f32.mrf.mxu1  ;;  %v3094_v52 = vpop.f32.mrf.mxu0  ;;  %3414 = vmatpush.bf16.msra.mxu2 %v5365_v29 }
 0x606   :  { %v3121_v55 = vunpack.c.l.b16 %v3032_v27  ;;  %v3184_v17 = vpack.c.bf16 %v3094_v52, %v3094_v52 }
 0x608   :  { %v3127_v6 = vpack.c.b16 %v3122_v42, %v3121_v55  ;;  %2088 = vrot.lane.b32.xlu1 %v2046_v62, %s6048_s26  ;;  %3218 = vrot.lane.b32.xlu0 %v3184_v17, %s6047_s2  ;;  %v2047_v55 = vpack.c.bf16 %v7815_v54, %v7815_v54 }
 0x609   :  { %v5753_v60 = vpop.eup %5752  ;;  %2645 = vrot.lane.b32.xlu2 %v2611_v43, %s6034_s1  ;;  %3415 = vmatpush.bf16.msra.mxu2 %v5364_v53  ;;  %v2619_v43 = vpack.c.bf16 %v7854_v48, %v7854_v48 }
 0x60a   :  { %5007 = vmatmul.msk.bf16.gmra.mxu1 %vm1164_vm4, %v3127_v6  ;;  %v5755_v56 = vpop.eup %5754  ;;  %v3019_v19 = vmul.f32 %v5753_v60, %v7774_v44 }
 0x60b   :  { %v3018_v21 = vmul.f32 %v5755_v56, %v7719_v18 }
 0x60c   :  { %v3035_v15 = vpack.c.bf16 %v3019_v19, %v3019_v19  ;;  %v2049_v19 = vpack.c.bf16 %v7825_v7, %v7825_v7 }
 0x60d   :  { %v2596_v23 = vpop.f32.mrf.mxu1  ;;  %v3096_v30 = vpop.f32.mrf.mxu0  ;;  %v3034_v41 = vpack.c.bf16 %v3018_v21, %v3018_v21  ;;  %3416 = vmatpush.bf16.msra.mxu2 %v5363_v3 }
 0x60e   :  { %v2620_v40 = vpack.c.bf16 %v2596_v23, %v2596_v23  ;;  %v3185_v5 = vpack.c.bf16 %v3096_v30, %v3096_v30  ;;  %v3124_v51 = vunpack.c.l.b16 %v3035_v15 }
 0x60f   :  { %v3123_v12 = vunpack.c.l.b16 %v3034_v41 }
 0x610   :  { %2663 = vrot.lane.b32.xlu1 %v2620_v40, %s6034_s1  ;;  %2078 = vrot.lane.b32.xlu0 %v2041_v37, %s6048_s26 }
 0x611   :  { %3220 = vrot.lane.b32.xlu2 %v3185_v5, %s6047_s2  ;;  %v3128_v45 = vpack.c.b16 %v3124_v51, %v3123_v12  ;;  %3417 = vmatpush.bf16.msra.mxu2 %v5362_v35 }
 0x615   :  { %v2642_v44 = vpop.permute.xlu0 %2641  ;;  %v7872_v18 = vpop.f32.mrf.mxu1  ;;  %3418 = vmatpush.bf16.msra.mxu2 %v5361_v4 }
 0x616   :  { %2690 = vst.msk [vmem:[#allocation2] sm:$0xf] %vm2689_vm13, %v2642_v44  ;;  %v3099_v31 = vpop.f32.mrf.mxu0  ;;  %v2621_v48 = vpack.c.bf16 %v7872_v18, %v7872_v18 }
 0x617   :  { %v3186_v9 = vpack.c.bf16 %v3099_v31, %v3099_v31 }
 0x618   :  { %v2644_v10 = vpop.permute.xlu1 %2643  ;;  %2092 = vrot.lane.b32.xlu1 %v2048_v16, %s6048_s26 }
 0x619   :  { %2691 = vst.msk [vmem:[#allocation2 + $0x4] sm:$0xf] %vm2689_vm13, %v2644_v10  ;;  %3222 = vrot.lane.b32.xlu0 %v3186_v9, %s6047_s2  ;;  %2649 = vrot.lane.b32.xlu2 %v2613_v33, %s6034_s1 }
 0x61a   :  { %5008 = vmatmul.msk.bf16.gmra.mxu1 %vm1164_vm4, %v3128_v45 }
 0x61d   :  { %v2601_v11 = vpop.f32.mrf.mxu1 }
 0x61e   :  { %v3101_v22 = vpop.f32.mrf.mxu0  ;;  %v2622_v24 = vpack.c.bf16 %v2601_v11, %v2601_v11  ;;  %v2051_v11 = vpack.c.bf16 %v7837_v36, %v7837_v36 }
 0x61f   :  { %v3187_v0 = vpack.c.bf16 %v3101_v22, %v3101_v22 }
 0x620   :  { %v2073_v49 = vpop.permute.xlu1 %2072  ;;  %2667 = vrot.lane.b32.xlu1 %v2622_v24, %s6034_s1 }
 0x621   :  { %2119 = vst.msk [vmem:[#allocation2 + $0x8] sm:$0xf] %vm2116_vm12, %v2073_v49  ;;  %2082 = vrot.lane.b32.xlu0 %v2043_v59, %s6048_s26  ;;  %3224 = vrot.lane.b32.xlu2 %v3187_v0, %s6047_s2 }
 0x625   :  { %v7889_v1 = vpop.f32.mrf.mxu1 }
 0x628   :  { %v7895_v32 = vpop.permute.xlu1 %2647  ;;  %2096 = vrot.lane.b32.xlu1 %v2050_v14, %s6048_s26  ;;  %v2623_v14 = vpack.c.bf16 %v7889_v1, %v7889_v1 }
 0x629   :  { %2653 = vrot.lane.b32.xlu2 %v2615_v63, %s6034_s1 }
 0x62d   :  { %v2606_v39 = vpop.f32.mrf.mxu1 }
 0x62e   :  { %v2624_v20 = vpack.c.bf16 %v2606_v39, %v2606_v39 }
 0x630   :  { %v2077_v50 = vpop.permute.xlu1 %2076  ;;  %2671 = vrot.lane.b32.xlu1 %v2624_v20, %s6034_s1 }
 0x631   :  { %2121 = vst.msk [vmem:[#allocation2 + $0x10] sm:$0xf] %vm2116_vm12, %v2077_v50 }
 0x641   :  { %v3104_v46 = vpop.f32.mrf.mxu0 }
 0x642   :  { %v3188_v47 = vpack.c.bf16 %v3104_v46, %v3104_v46 }
 0x644   :  { %3226 = vrot.lane.b32.xlu0 %v3188_v47, %s6047_s2 }
 0x649   :  { %v3106_v38 = vpop.f32.mrf.mxu0 }
 0x64a   :  { %v3189_v25 = vpack.c.bf16 %v3106_v38, %v3106_v38 }
 0x64c   :  { %2086 = vrot.lane.b32.xlu0 %v2045_v8, %s6048_s26  ;;  %3228 = vrot.lane.b32.xlu2 %v3189_v25, %s6047_s2 }
 0x650   :  { %v3162_v58 = vpop.f32.mrf.mxu1 }
 0x651   :  { %v3190_v2 = vpack.c.bf16 %v3162_v58, %v3162_v58 }
 0x652   :  { %v2652_v27 = vpop.permute.xlu1 %2651 }
 0x654   :  { %2657 = vrot.lane.b32.xlu2 %v2617_v34, %s6034_s1  ;;  %3230 = vrot.lane.b32.xlu0 %v3190_v2, %s6047_s2  ;;  %v7979_v2 = vld [vmem:[%s8369_s7] ss:$0 sm:$0xff] }
 0x658   :  { %v3164_v13 = vpop.f32.mrf.mxu1 }
 0x659   :  { %v3191_v42 = vpack.c.bf16 %v3164_v13, %v3164_v13  ;;  %v5788_v13 = vld [vmem:[#allocation3] sm:$0xff] }
 0x65a   :  { %v2081_v52 = vpop.permute.xlu1 %2080 }
 0x65b   :  { %2123 = vst.msk [vmem:[#allocation2 + $0x18] sm:$0xf] %vm2116_vm12, %v2081_v52  ;;  %v3217_v62 = vpop.permute.xlu2 %3216 }
 0x65c   :  { %2090 = vrot.lane.b32.xlu0 %v2047_v55, %s6048_s26  ;;  %3232 = vrot.lane.b32.xlu2 %v3191_v42, %s6047_s2  ;;  %3264 = vst.msk [vmem:[#allocation2 + $0x4] sm:$0xf] %vm3262_vm14, %v3217_v62 }
 0x660   :  { %v3167_v26 = vpop.f32.mrf.mxu1 }
 0x661   :  { %v3192_v17 = vpack.c.bf16 %v3167_v26, %v3167_v26  ;;  %v5789_v26 = vld [vmem:[#allocation3 + $0x8] sm:$0xff] }
 0x662   :  { %v2656_v6 = vpop.permute.xlu1 %2655 }
 0x663   :  { %v2646_v60 = vpop.permute.xlu2 %2645 }
 0x664   :  { %2661 = vrot.lane.b32.xlu2 %v2619_v43, %s6034_s1  ;;  %3234 = vrot.lane.b32.xlu0 %v3192_v17, %s6047_s2  ;;  %2692 = vst.msk [vmem:[#allocation2 + $0x8] sm:$0xf] %vm2689_vm13, %v2646_v60 }
 0x668   :  { %v3169_v54 = vpop.f32.mrf.mxu1 }
 0x669   :  { %v3193_v56 = vpack.c.bf16 %v3169_v54, %v3169_v54 }
 0x66a   :  { %v2085_v21 = vpop.permute.xlu1 %2084  ;;  %v3215_v23 = vpop.permute.xlu0 %3214 }
 0x66b   :  { %2125 = vst.msk [vmem:[#allocation2 + $0x20] sm:$0xf] %vm2116_vm12, %v2085_v21  ;;  %v3221_v30 = vpop.permute.xlu2 %3220  ;;  %v5790_v21 = vld [vmem:[#allocation3 + $0x10] sm:$0xff] }
 0x66c   :  { %2094 = vrot.lane.b32.xlu0 %v2049_v19, %s6048_s26  ;;  %3236 = vrot.lane.b32.xlu2 %v3193_v56, %s6047_s2  ;;  %3263 = vst.msk [vmem:[#allocation2] sm:$0xf] %vm3262_vm14, %v3215_v23 }
 0x672   :  { %v7929_v37 = vpop.permute.xlu1 %2659  ;;  %v2075_v40 = vpop.permute.xlu0 %2074 }
 0x673   :  { %v2650_v5 = vpop.permute.xlu2 %2649  ;;  %2120 = vst.msk [vmem:[#allocation2 + $0xc] sm:$0xf] %vm2116_vm12, %v2075_v40  ;;  %v5353_v7 = vld [vmem:[#allocation2] sm:$0xff]  ;;  %v5791_v40 = vld [vmem:[#allocation3 + $0x18] sm:$0xff] }
 0x674   :  { %2665 = vrot.lane.b32.xlu2 %v2621_v48, %s6034_s1  ;;  %2694 = vst.msk [vmem:[#allocation2 + $0x10] sm:$0xf] %vm2689_vm13, %v2650_v5  ;;  %3419 = vmatmul.bf16.vlgmr.msra.gmra.mxu2 %v5353_v7 }
 0x675   :  { %2693 = vst.msk [vmem:[#allocation2 + $0xc] sm:$0xf] %vm2689_vm13, %v7895_v32 }
 0x676   :  { %3266 = vst.msk [vmem:[#allocation2 + $0xc] sm:$0xf] %vm3262_vm14, %v3221_v30 }
 0x67a   :  { %v2089_v15 = vpop.permute.xlu1 %2088  ;;  %v3219_v41 = vpop.permute.xlu0 %3218 }
 0x67b   :  { %2127 = vst.msk [vmem:[#allocation2 + $0x28] sm:$0xf] %vm2116_vm12, %v2089_v15  ;;  %v3225_v51 = vpop.permute.xlu2 %3224 }
 0x67c   :  { %3265 = vst.msk [vmem:[#allocation2 + $0x8] sm:$0xf] %vm3262_vm14, %v3219_v41 }
 0x682   :  { %v2664_v44 = vpop.permute.xlu1 %2663  ;;  %v2079_v12 = vpop.permute.xlu0 %2078 }
 0x683   :  { %v2654_v18 = vpop.permute.xlu2 %2653  ;;  %2122 = vst.msk [vmem:[#allocation2 + $0x14] sm:$0xf] %vm2116_vm12, %v2079_v12  ;;  %v5354_v31 = vld [vmem:[#allocation2 + $0x8] sm:$0xff] }
 0x684   :  { %2696 = vst.msk [vmem:[#allocation2 + $0x18] sm:$0xf] %vm2689_vm13, %v2654_v18  ;;  %3424 = vmatmul.bf16.gmra.mxu2 %v5354_v31  ;;  %v5793_v31 = vld [vmem:[#allocation3 + $0x28] sm:$0xff] }
 0x685   :  { %2695 = vst.msk [vmem:[#allocation2 + $0x14] sm:$0xf] %vm2689_vm13, %v2652_v27 }
 0x686   :  { %3268 = vst.msk [vmem:[#allocation2 + $0x14] sm:$0xf] %vm3262_vm14, %v3225_v51  ;;  %v5792_v51 = vld [vmem:[#allocation3 + $0x20] sm:$0xff] }
 0x687   :  { %v3172_v16 = vpop.f32.mrf.mxu1 }
 0x688   :  { %v3194_v9 = vpack.c.bf16 %v3172_v16, %v3172_v16 }
 0x68a   :  { %3238 = vrot.lane.b32.xlu0 %v3194_v9, %s6047_s2  ;;  %v2093_v33 = vpop.permute.xlu1 %2092 }
 0x68b   :  { %v3223_v10 = vpop.permute.xlu0 %3222  ;;  %2129 = vst.msk [vmem:[#allocation2 + $0x30] sm:$0xf] %vm2116_vm12, %v2093_v33 }
 0x68c   :  { %3267 = vst.msk [vmem:[#allocation2 + $0x10] sm:$0xf] %vm3262_vm14, %v3223_v10  ;;  %v5794_v10 = vld [vmem:[#allocation3 + $0x30] sm:$0xff] }
 0x68f   :  { %v3174_v45 = vpop.f32.mrf.mxu1 }
 0x690   :  { %v3195_v22 = vpack.c.bf16 %v3174_v45, %v3174_v45 }
 0x692   :  { %2098 = vrot.lane.b32.xlu0 %v2051_v11, %s6048_s26  ;;  %3240 = vrot.lane.b32.xlu2 %v3195_v22, %s6047_s2  ;;  %v2668_v59 = vpop.permute.xlu1 %2667 }
 0x693   :  { %v2083_v24 = vpop.permute.xlu0 %2082  ;;  %v5355_v0 = vld [vmem:[#allocation2 + $0x10] sm:$0xff] }
 0x694   :  { %2124 = vst.msk [vmem:[#allocation2 + $0x1c] sm:$0xf] %vm2116_vm12, %v2083_v24  ;;  %3429 = vmatmul.bf16.gmra.mxu2 %v5355_v0 }
 0x695   :  { %2697 = vst.msk [vmem:[#allocation2 + $0x1c] sm:$0xf] %vm2689_vm13, %v2656_v6 }
 0x697   :  { %v3177_v49 = vpop.f32.mrf.mxu1 }
 0x698   :  { %v3196_v63 = vpack.c.bf16 %v3177_v49, %v3177_v49 }
 0x69a   :  { %2669 = vrot.lane.b32.xlu2 %v2623_v14, %s6034_s1  ;;  %3242 = vrot.lane.b32.xlu0 %v3196_v63, %s6047_s2  ;;  %v2097_v36 = vpop.permute.xlu1 %2096 }
 0x69b   :  { %2131 = vst.msk [vmem:[#allocation2 + $0x38] sm:$0xf] %vm2116_vm12, %v2097_v36 }
 0x69f   :  { %v3179_v32 = vpop.f32.mrf.mxu1 }
 0x6a0   :  { %v3197_v39 = vpack.c.bf16 %v3179_v32, %v3179_v32 }
 0x6a2   :  { %3244 = vrot.lane.b32.xlu2 %v3197_v39, %s6047_s2  ;;  %v2672_v60 = vpop.permute.xlu1 %2671 }
 0x6a6   :  { %v3229_v20 = vpop.permute.xlu2 %3228 }
 0x6a7   :  { %3270 = vst.msk [vmem:[#allocation2 + $0x1c] sm:$0xf] %vm3262_vm14, %v3229_v20  ;;  %v5795_v20 = vld [vmem:[#allocation3 + $0x38] sm:$0xff] }
 0x6ae   :  { %v2658_v50 = vpop.permute.xlu2 %2657 }
 0x6af   :  { %2698 = vst.msk [vmem:[#allocation2 + $0x20] sm:$0xf] %vm2689_vm13, %v2658_v50 }
 0x6b6   :  { %v3233_v28 = vpop.permute.xlu2 %3232  ;;  %v3227_v1 = vpop.permute.xlu0 %3226 }
 0x6b7   :  { %3269 = vst.msk [vmem:[#allocation2 + $0x18] sm:$0xf] %vm3262_vm14, %v3227_v1 }
 0x6be   :  { %v2662_v61 = vpop.permute.xlu2 %2661  ;;  %v2087_v57 = vpop.permute.xlu0 %2086  ;;  %v5356_v46 = vld [vmem:[#allocation2 + $0x18] sm:$0xff] }
 0x6bf   :  { %2700 = vst.msk [vmem:[#allocation2 + $0x28] sm:$0xf] %vm2689_vm13, %v2662_v61  ;;  %3434 = vmatmul.bf16.gmra.mxu2 %v5356_v46 }
 0x6c0   :  { %2126 = vst.msk [vmem:[#allocation2 + $0x24] sm:$0xf] %vm2116_vm12, %v2087_v57 }
 0x6c1   :  { %2699 = vst.msk [vmem:[#allocation2 + $0x24] sm:$0xf] %vm2689_vm13, %v7929_v37 }
 0x6c2   :  { %3272 = vst.msk [vmem:[#allocation2 + $0x24] sm:$0xf] %vm3262_vm14, %v3233_v28 }
 0x6c6   :  { %v3237_v29 = vpop.permute.xlu2 %3236  ;;  %v3231_v47 = vpop.permute.xlu0 %3230 }
 0x6c7   :  { %3271 = vst.msk [vmem:[#allocation2 + $0x20] sm:$0xf] %vm3262_vm14, %v3231_v47  ;;  %v5796_v47 = vld [vmem:[#allocation3 + $0x40] sm:$0xff] }
 0x6ce   :  { %v2666_v53 = vpop.permute.xlu2 %2665  ;;  %v2091_v38 = vpop.permute.xlu0 %2090  ;;  %v5357_v3 = vld [vmem:[#allocation2 + $0x20] sm:$0xff] }
 0x6cf   :  { %2702 = vst.msk [vmem:[#allocation2 + $0x30] sm:$0xf] %vm2689_vm13, %v2666_v53  ;;  %3439 = vmatmul.bf16.gmra.mxu2 %v5357_v3 }
 0x6d0   :  { %2128 = vst.msk [vmem:[#allocation2 + $0x2c] sm:$0xf] %vm2116_vm12, %v2091_v38 }
 0x6d1   :  { %2701 = vst.msk [vmem:[#allocation2 + $0x2c] sm:$0xf] %vm2689_vm13, %v2664_v44 }
 0x6d2   :  { %3274 = vst.msk [vmem:[#allocation2 + $0x2c] sm:$0xf] %vm3262_vm14, %v3237_v29 }
 0x6d6   :  { %v3235_v8 = vpop.permute.xlu0 %3234 }
 0x6d7   :  { %3273 = vst.msk [vmem:[#allocation2 + $0x28] sm:$0xf] %vm3262_vm14, %v3235_v8 }
 0x6de   :  { %v2095_v25 = vpop.permute.xlu0 %2094  ;;  %v5358_v35 = vld [vmem:[#allocation2 + $0x28] sm:$0xff] }
 0x6df   :  { %2130 = vst.msk [vmem:[#allocation2 + $0x34] sm:$0xf] %vm2116_vm12, %v2095_v25  ;;  %3444 = vmatmul.bf16.gmra.mxu2 %v5358_v35 }
 0x6e0   :  { %2703 = vst.msk [vmem:[#allocation2 + $0x34] sm:$0xf] %vm2689_vm13, %v2668_v59  ;;  %v8469_v59 = vld [vmem:[#allocation24_spill] sm:$0xff] }
 0x6ec   :  { %v3241_v4 = vpop.permute.xlu2 %3240 }
 0x6ed   :  { %3276 = vst.msk [vmem:[#allocation2 + $0x34] sm:$0xf] %vm3262_vm14, %v3241_v4 }
 0x6f4   :  { %v2670_v58 = vpop.permute.xlu2 %2669 }
 0x6f5   :  { %2704 = vst.msk [vmem:[#allocation2 + $0x38] sm:$0xf] %vm2689_vm13, %v2670_v58  ;;  %v5797_v58 = vld [vmem:[#allocation3 + $0x48] sm:$0xff] }
 0x6f7   :  { %v3420_v34 = vpop.f32.mrf.mxu2 }
 0x6f8   :  { %v3421_v27 = vadd.f32 %v7979_v2, %v3420_v34 }
 0x6fa   :  { %v7982_v42 = vadd.f32 %v5788_v13, %v3421_v27 }
 0x6fc   :  { %v3239_v55 = vpop.permute.xlu0 %3238  ;;  %3478 = vadd.xlane.f32.xlu1 %v7982_v42  ;;  %v3245_v54 = vpop.permute.xlu2 %3244 }
 0x6fd   :  { %3275 = vst.msk [vmem:[#allocation2 + $0x30] sm:$0xf] %vm3262_vm14, %v3239_v55 }
 0x6ff   :  { %v3422_v52 = vpop.f32.mrf.mxu2 }
 0x700   :  { %v3423_v62 = vadd.f32 %v7979_v2, %v3422_v52 }
 0x702   :  { %v7987_v17 = vadd.f32 %v5789_v26, %v3423_v62  ;;  %v5798_v26 = vld [vmem:[#allocation3 + $0x50] sm:$0xff] }
 0x704   :  { %v2099_v43 = vpop.permute.xlu0 %2098  ;;  %v5359_v6 = vld [vmem:[#allocation2 + $0x30] sm:$0xff]  ;;  %3480 = vadd.xlane.f32.xlu0 %v7987_v17 }
 0x705   :  { %2132 = vst.msk [vmem:[#allocation2 + $0x3c] sm:$0xf] %vm2116_vm12, %v2099_v43  ;;  %3449 = vmatmul.bf16.gmra.mxu2 %v5359_v6 }
 0x706   :  { %2705 = vst.msk [vmem:[#allocation2 + $0x3c] sm:$0xf] %vm2689_vm13, %v2672_v60 }
 0x707   :  { %3278 = vst.msk [vmem:[#allocation2 + $0x3c] sm:$0xf] %vm3262_vm14, %v3245_v54  ;;  %v3425_v56 = vpop.f32.mrf.mxu2 }
 0x708   :  { %v3426_v19 = vadd.f32 %v7979_v2, %v3425_v56 }
 0x70a   :  { %v7994_v23 = vadd.f32 %v5790_v21, %v3426_v19 }
 0x70c   :  { %v3243_v30 = vpop.permute.xlu0 %3242  ;;  %3482 = vadd.xlane.f32.xlu2 %v7994_v23 }
 0x70d   :  { %3277 = vst.msk [vmem:[#allocation2 + $0x38] sm:$0xf] %vm3262_vm14, %v3243_v30  ;;  %v5799_v30 = vld [vmem:[#allocation3 + $0x58] sm:$0xff] }
 0x70f   :  { %v3427_v48 = vpop.f32.mrf.mxu2 }
 0x710   :  { %v3428_v37 = vadd.f32 %v7979_v2, %v3427_v48 }
 0x712   :  { %v7999_v5 = vadd.f32 %v5791_v40, %v3428_v37 }
 0x714   :  { %v5360_v7 = vld [vmem:[#allocation2 + $0x38] sm:$0xff]  ;;  %3484 = vadd.xlane.f32.xlu1 %v7999_v5 }
 0x715   :  { %3454 = vmatmul.bf16.gmra.mxu2 %v5360_v7 }
 0x717   :  { %v3430_v15 = vpop.f32.mrf.mxu2 }
 0x718   :  { %v3431_v41 = vadd.f32 %v7979_v2, %v3430_v15  ;;  %v5800_v15 = vld [vmem:[#allocation3 + $0x60] sm:$0xff] }
 0x71a   :  { %v8003_v44 = vadd.f32 %v5792_v51, %v3431_v41 }
 0x71c   :  { %3486 = vadd.xlane.f32.xlu0 %v8003_v44 }
 0x71f   :  { %v3432_v12 = vpop.f32.mrf.mxu2 }
 0x720   :  { %v3433_v18 = vadd.f32 %v7979_v2, %v3432_v12 }
 0x722   :  { %v8007_v16 = vadd.f32 %v5793_v31, %v3433_v18 }
 0x724   :  { %3488 = vadd.xlane.f32.xlu2 %v8007_v16 }
 0x742   :  { %v3435_v9 = vpop.f32.mrf.mxu2 }
 0x743   :  { %v3436_v33 = vadd.f32 %v7979_v2, %v3435_v9 }
 0x745   :  { %v8011_v45 = vadd.f32 %v5794_v10, %v3436_v33  ;;  %v5801_v10 = vld [vmem:[#allocation3 + $0x68] sm:$0xff] }
 0x747   :  { %3490 = vadd.xlane.f32.xlu2 %v8011_v45 }
 0x74a   :  { %v3437_v11 = vpop.f32.mrf.mxu2 }
 0x74b   :  { %v3438_v36 = vadd.f32 %v7979_v2, %v3437_v11 }
 0x74d   :  { %v8025_v50 = vadd.f32 %v5795_v20, %v3438_v36  ;;  %v5399_v36 = vld [vmem:[#allocation14 + $0xec] sm:$0xf0] }
 0x752   :  { %v3440_v14 = vpop.f32.mrf.mxu2 }
 0x753   :  { %v3441_v61 = vadd.f32 %v7979_v2, %v3440_v14 }
 0x755   :  { %v8035_v53 = vadd.f32 %v5796_v47, %v3441_v61  ;;  %v5400_v61 = vld [vmem:[#allocation14 + $0xf4] sm:$0xf0]  ;;  %v5398_v47 = vld [vmem:[#allocation14 + $0xec] sm:$0xf] }
 0x75a   :  { %v3442_v46 = vpop.f32.mrf.mxu2 }
 0x75b   :  { %v3443_v8 = vadd.f32 %v7979_v2, %v3442_v46 }
 0x75d   :  { %v8045_v34 = vadd.f32 %v5797_v58, %v3443_v8  ;;  %v5171_v8 = vld [vmem:[#allocation14 + $0xc0] sm:$0xf] }
 0x762   :  { %v3445_v4 = vpop.f32.mrf.mxu2 }
 0x763   :  { %v3446_v55 = vadd.f32 %v7979_v2, %v3445_v4  ;;  %v5393_v4 = vld [vmem:[#allocation14 + $0xc4] sm:$0xf] }
 0x765   :  { %v8055_v43 = vadd.f32 %v5798_v26, %v3446_v55  ;;  %v5396_v55 = vld [vmem:[#allocation14 + $0xd4] sm:$0xf0] }
 0x76a   :  { %v3447_v60 = vpop.f32.mrf.mxu2 }
 0x76b   :  { %v3448_v56 = vadd.f32 %v7979_v2, %v3447_v60  ;;  %v5181_v60 = vld [vmem:[#allocation14 + $0xd8] sm:$0xf0] }
 0x76d   :  { %v8065_v48 = vadd.f32 %v5799_v30, %v3448_v56  ;;  %v5155_v56 = vld [vmem:[#allocation14 + $0xa0] sm:$0xf]  ;;  %v5389_v30 = vld [vmem:[#allocation14 + $0xa4] sm:$0xf] }
 0x76f   :  { %v3479_v22 = vpop.xlane.xlu1 %3478 }
 0x770   :  { %v3510_v24 = vmul.f32 %v3479_v22, %v8469_v59 }
 0x772   :  { %v8016_v0 = vsub.f32 %v7982_v42, %v3510_v24 }
 0x774   :  { %v3542_v49 = vmul.f32 %v8016_v0, %v8016_v0 }
 0x776   :  { %3558 = vadd.xlane.f32.xlu1 %v3542_v49  ;;  %v5802_v49 = vld [vmem:[#allocation3 + $0x70] sm:$0xff] }
 0x777   :  { %v3481_v63 = vpop.xlane.xlu0 %3480 }
 0x778   :  { %v3511_v32 = vmul.f32 %v3481_v63, %v8469_v59  ;;  %v5187_v63 = vld [vmem:[#allocation14 + $0xe0] sm:$0xf] }
 0x779   :  { %v5188_v20 = vor.u32 %v5399_v36, %v5187_v63  ;;  %v5141_v63 = vld [vmem:[#allocation14 + $0x90] sm:$0xf0]  ;;  %v5147_v36 = vld [vmem:[#allocation14 + $0x88] sm:$0xf] }
 0x77a   :  { %v8023_v39 = vsub.f32 %v7987_v17, %v3511_v32  ;;  %v5397_v32 = vld [vmem:[#allocation14 + $0xe4] sm:$0xf] }
 0x77b   :  { %4046 = vmatpush.bf16.msra.mxu3 %v5188_v20 }
 0x77c   :  { %v3543_v28 = vmul.f32 %v8023_v39, %v8023_v39 }
 0x77e   :  { %3492 = vadd.xlane.f32.xlu1 %v8025_v50  ;;  %3560 = vadd.xlane.f32.xlu0 %v3543_v28  ;;  %v5189_v28 = vld [vmem:[#allocation14 + $0xf0] sm:$0xf0] }
 0x77f   :  { %v3483_v1 = vpop.xlane.xlu2 %3482 }
 0x780   :  { %v3512_v57 = vmul.f32 %v3483_v1, %v8469_v59  ;;  %v5195_v1 = vld [vmem:[#allocation14 + $0xe8] sm:$0xf] }
 0x781   :  { %v5196_v46 = vor.u32 %v5400_v61, %v5195_v1  ;;  %v5386_v1 = vld [vmem:[#allocation14 + $0x8c] sm:$0xf]  ;;  %v5149_v61 = vld [vmem:[#allocation14 + $0x98] sm:$0xf0] }
 0x782   :  { %v8033_v29 = vsub.f32 %v7994_v23, %v3512_v57  ;;  %v5192_v57 = vor.u32 %v5397_v32, %v5189_v28  ;;  %v5388_v32 = vld [vmem:[#allocation14 + $0x94] sm:$0xf0] }
 0x783   :  { %4144 = vmatpush.bf16.msrb.mxu1 %v5196_v46  ;;  %v5148_v28 = vor.u32 %v5388_v32, %v5147_v36  ;;  %v5123_v46 = vld [vmem:[#allocation14 + $0x60] sm:$0xf]  ;;  %v5374_v32 = vld [vmem:[#allocation14 + $0x2c] sm:$0xf] }
 0x784   :  { %v3544_v38 = vmul.f32 %v8033_v29, %v8033_v29  ;;  %4095 = vmatpush.bf16.msrb.mxu0 %v5192_v57  ;;  %v5152_v57 = vor.u32 %v5386_v1, %v5149_v61  ;;  %v5075_v61 = vld [vmem:[#allocation14] sm:$0xf] }
 0x786   :  { %3494 = vadd.xlane.f32.xlu1 %v8035_v53  ;;  %3562 = vadd.xlane.f32.xlu0 %v3544_v38  ;;  %v5197_v38 = vld [vmem:[#allocation14 + $0xf8] sm:$0xf0] }
 0x787   :  { %v3485_v3 = vpop.xlane.xlu1 %3484 }
 0x788   :  { %v3513_v25 = vmul.f32 %v3485_v3, %v8469_v59  ;;  %v3450_v40 = vpop.f32.mrf.mxu2  ;;  %v5200_v3 = vor.u32 %v5398_v47, %v5197_v38  ;;  %v5383_v47 = vld [vmem:[#allocation14 + $0x6c] sm:$0xf0]  ;;  %v5381_v38 = vld [vmem:[#allocation14 + $0x64] sm:$0xf] }
 0x789   :  { %v3451_v7 = vadd.f32 %v7979_v2, %v3450_v40  ;;  %v5157_v40 = vld [vmem:[#allocation14 + $0xb0] sm:$0xf0] }
 0x78a   :  { %v8043_v35 = vsub.f32 %v7999_v5, %v3513_v25  ;;  %v5395_v25 = vld [vmem:[#allocation14 + $0xcc] sm:$0xf0]  ;;  %4193 = vmatpush.bf16.msrb.mxu2 %v5200_v3  ;;  %v5124_v3 = vor.u32 %v5383_v47, %v5123_v46  ;;  %v5369_v46 = vld [vmem:[#allocation14 + $0x4] sm:$0xf] }
 0x78b   :  { %v8071_v41 = vadd.f32 %v5800_v15, %v3451_v7  ;;  %v5172_v58 = vor.u32 %v5395_v25, %v5171_v8  ;;  %v5163_v7 = vld [vmem:[#allocation14 + $0xa8] sm:$0xf]  ;;  %v5392_v15 = vld [vmem:[#allocation14 + $0xb4] sm:$0xf0]  ;;  %v5125_v8 = vld [vmem:[#allocation14 + $0x70] sm:$0xf0] }
 0x78c   :  { %v3545_v27 = vmul.f32 %v8043_v35, %v8043_v35  ;;  %v5131_v25 = vld [vmem:[#allocation14 + $0x68] sm:$0xf] }
 0x78d   :  { %4047 = vmatpush.bf16.msra.mxu3 %v5172_v58  ;;  %v5128_v58 = vor.u32 %v5381_v38, %v5125_v8  ;;  %v5083_v8 = vld [vmem:[#allocation14 + $0x8] sm:$0xf] }
 0x78e   :  { %3564 = vadd.xlane.f32.xlu2 %v3545_v27  ;;  %3496 = vadd.xlane.f32.xlu0 %v8045_v34  ;;  %v5173_v27 = vld [vmem:[#allocation14 + $0xd0] sm:$0xf0] }
 0x78f   :  { %v3487_v13 = vpop.xlane.xlu0 %3486 }
 0x790   :  { %v3514_v52 = vmul.f32 %v3487_v13, %v8469_v59  ;;  %v3452_v31 = vpop.f32.mrf.mxu2  ;;  %v5179_v13 = vld [vmem:[#allocation14 + $0xc8] sm:$0xf] }
 0x791   :  { %v3453_v33 = vadd.f32 %v7979_v2, %v3452_v31  ;;  %v5180_v26 = vor.u32 %v5396_v55, %v5179_v13  ;;  %v5390_v31 = vld [vmem:[#allocation14 + $0xac] sm:$0xf]  ;;  %v5133_v55 = vld [vmem:[#allocation14 + $0x78] sm:$0xf0] }
 0x792   :  { %v8053_v62 = vsub.f32 %v8003_v44, %v3514_v52  ;;  %v5176_v52 = vor.u32 %v5393_v4, %v5173_v27  ;;  %v5384_v4 = vld [vmem:[#allocation14 + $0x74] sm:$0xf0]  ;;  %v5382_v13 = vld [vmem:[#allocation14 + $0x6c] sm:$0xf] }
 0x793   :  { %v8081_v11 = vadd.f32 %v5801_v10, %v3453_v33  ;;  %4145 = vmatpush.bf16.msrb.mxu1 %v5180_v26  ;;  %v5139_v10 = vld [vmem:[#allocation14 + $0x80] sm:$0xf]  ;;  %v5132_v27 = vor.u32 %v5384_v4, %v5131_v25  ;;  %v5372_v4 = vld [vmem:[#allocation14 + $0x14] sm:$0xf0] }
 0x794   :  { %v3546_v6 = vmul.f32 %v8053_v62, %v8053_v62  ;;  %4096 = vmatpush.bf16.msrb.mxu0 %v5176_v52  ;;  %v5136_v52 = vor.u32 %v5382_v13, %v5133_v55  ;;  %v5107_v26 = vld [vmem:[#allocation14 + $0x40] sm:$0xf]  ;;  %v5084_v13 = vor.u32 %v5372_v4, %v5083_v8 }
 0x796   :  { %3498 = vadd.xlane.f32.xlu0 %v8055_v43  ;;  %3566 = vadd.xlane.f32.xlu2 %v3546_v6  ;;  %v5394_v6 = vld [vmem:[#allocation14 + $0xcc] sm:$0xf] }
 0x797   :  { %v3489_v54 = vpop.xlane.xlu2 %3488 }
 0x798   :  { %v3515_v19 = vmul.f32 %v3489_v54, %v8469_v59  ;;  %v3455_v22 = vpop.f32.mrf.mxu2  ;;  %v5184_v54 = vor.u32 %v5394_v6, %v5181_v60  ;;  %v5379_v6 = vld [vmem:[#allocation14 + $0x4c] sm:$0xf0]  ;;  %v5377_v60 = vld [vmem:[#allocation14 + $0x44] sm:$0xf] }
 0x799   :  { %v3456_v24 = vadd.f32 %v7979_v2, %v3455_v22  ;;  %v5387_v22 = vld [vmem:[#allocation14 + $0x8c] sm:$0xf0] }
 0x79a   :  { %v8063_v21 = vsub.f32 %v8007_v16, %v3515_v19  ;;  %v5391_v19 = vld [vmem:[#allocation14 + $0xac] sm:$0xf0]  ;;  %4194 = vmatpush.bf16.msrb.mxu2 %v5184_v54  ;;  %v5108_v54 = vor.u32 %v5379_v6, %v5107_v26 }
 0x79b   :  { %v8085_v14 = vadd.f32 %v5802_v49, %v3456_v24  ;;  %v5385_v24 = vld [vmem:[#allocation14 + $0x84] sm:$0xf]  ;;  %v5140_v49 = vor.u32 %v5387_v22, %v5139_v10  ;;  %v5093_v10 = vld [vmem:[#allocation14 + $0x30] sm:$0xf0]  ;;  %v5099_v22 = vld [vmem:[#allocation14 + $0x28] sm:$0xf] }
 0x79c   :  { %v3547_v37 = vmul.f32 %v8063_v21, %v8063_v21  ;;  %v5144_v20 = vor.u32 %v5385_v24, %v5141_v63  ;;  %v5376_v24 = vld [vmem:[#allocation14 + $0x34] sm:$0xf0] }
 0x79d   :  { %v5100_v36 = vor.u32 %v5376_v24, %v5099_v22 }
 0x79e   :  { %3568 = vadd.xlane.f32.xlu1 %v3547_v37  ;;  %3500 = vadd.xlane.f32.xlu2 %v8065_v48  ;;  %v5156_v37 = vor.u32 %v5391_v19, %v5155_v56  ;;  %v5109_v56 = vld [vmem:[#allocation14 + $0x50] sm:$0xf0]  ;;  %v5115_v19 = vld [vmem:[#allocation14 + $0x48] sm:$0xf] }
 0x7a0   :  { %4048 = vmatpush.bf16.msra.mxu3 %v5156_v37  ;;  %v5112_v37 = vor.u32 %v5377_v60, %v5109_v56 }
 0x7a4   :  { %4049 = vmatpush.bf16.msra.mxu3 %v5140_v49 }
 0x7a6   :  { %3502 = vadd.xlane.f32.xlu2 %v8071_v41 }
 0x7a8   :  { %4050 = vmatpush.bf16.msra.mxu3 %v5124_v3  ;;  %v5077_v3 = vld [vmem:[#allocation14 + $0x10] sm:$0xf0] }
 0x7a9   :  { %v5080_v25 = vor.u32 %v5369_v46, %v5077_v3 }
 0x7ac   :  { %4051 = vmatpush.bf16.msra.mxu3 %v5108_v54 }
 0x7ba   :  { %v3491_v51 = vpop.xlane.xlu2 %3490 }
 0x7bb   :  { %v3516_v12 = vmul.f32 %v3491_v51, %v8469_v59  ;;  %v5160_v51 = vor.u32 %v5389_v30, %v5157_v40  ;;  %v5380_v30 = vld [vmem:[#allocation14 + $0x54] sm:$0xf0] }
 0x7bc   :  { %v5116_v40 = vor.u32 %v5380_v30, %v5115_v19 }
 0x7bd   :  { %v8076_v18 = vsub.f32 %v8011_v45, %v3516_v12  ;;  %v5164_v12 = vor.u32 %v5392_v15, %v5163_v7  ;;  %4097 = vmatpush.bf16.msrb.mxu0 %v5160_v51  ;;  %v5378_v7 = vld [vmem:[#allocation14 + $0x4c] sm:$0xf]  ;;  %v5117_v15 = vld [vmem:[#allocation14 + $0x58] sm:$0xf0] }
 0x7be   :  { %v5120_v51 = vor.u32 %v5378_v7, %v5117_v15 }
 0x7bf   :  { %v3548_v9 = vmul.f32 %v8076_v18, %v8076_v18  ;;  %4146 = vmatpush.bf16.msrb.mxu1 %v5164_v12  ;;  %v5091_v12 = vld [vmem:[#allocation14 + $0x20] sm:$0xf] }
 0x7c1   :  { %3570 = vadd.xlane.f32.xlu1 %v3548_v9  ;;  %v5165_v9 = vld [vmem:[#allocation14 + $0xb8] sm:$0xf0]  ;;  %4098 = vmatpush.bf16.msrb.mxu0 %v5144_v20 }
 0x7c2   :  { %v5168_v33 = vor.u32 %v5390_v31, %v5165_v9  ;;  %v5375_v31 = vld [vmem:[#allocation14 + $0x2c] sm:$0xf0]  ;;  %v5373_v9 = vld [vmem:[#allocation14 + $0x24] sm:$0xf]  ;;  %v5101_v20 = vld [vmem:[#allocation14 + $0x38] sm:$0xf0] }
 0x7c3   :  { %4147 = vmatpush.bf16.msrb.mxu1 %v5148_v28  ;;  %v5096_v63 = vor.u32 %v5373_v9, %v5093_v10  ;;  %v5104_v1 = vor.u32 %v5374_v32, %v5101_v20 }
 0x7c4   :  { %4195 = vmatpush.bf16.msrb.mxu2 %v5168_v33  ;;  %v5092_v33 = vor.u32 %v5375_v31, %v5091_v12 }
 0x7c5   :  { %4099 = vmatpush.bf16.msrb.mxu0 %v5128_v58  ;;  %v5370_v58 = vld [vmem:[#allocation14 + $0xc] sm:$0xf] }
 0x7c6   :  { %4052 = vmatpush.bf16.msra.mxu3 %v5092_v33 }
 0x7c7   :  { %4148 = vmatpush.bf16.msrb.mxu1 %v5132_v27  ;;  %v5085_v27 = vld [vmem:[#allocation14 + $0x18] sm:$0xf0] }
 0x7c8   :  { %4196 = vmatpush.bf16.msrb.mxu2 %v5152_v57  ;;  %v5371_v57 = vld [vmem:[#allocation14 + $0xc] sm:$0xf0]  ;;  %v5088_v55 = vor.u32 %v5370_v58, %v5085_v27 }
 0x7c9   :  { %3504 = vadd.xlane.f32.xlu1 %v8081_v11  ;;  %4100 = vmatpush.bf16.msrb.mxu0 %v5112_v37  ;;  %v5076_v38 = vor.u32 %v5371_v57, %v5075_v61 }
 0x7cb   :  { %4149 = vmatpush.bf16.msrb.mxu1 %v5116_v40  ;;  %4053 = vmatpush.bf16.msra.mxu3 %v5076_v38 }
 0x7cc   :  { %4197 = vmatpush.bf16.msrb.mxu2 %v5136_v52 }
 0x7cd   :  { %4101 = vmatpush.bf16.msrb.mxu0 %v5096_v63 }
 0x7cf   :  { %4150 = vmatpush.bf16.msrb.mxu1 %v5100_v36  ;;  %v3457_v36 = vpop.f32.mrf.mxu2 }
 0x7d0   :  { %4198 = vmatpush.bf16.msrb.mxu2 %v5120_v51  ;;  %v3458_v57 = vadd.f32 %v7979_v2, %v3457_v36 }
 0x7d1   :  { %3506 = vadd.xlane.f32.xlu1 %v8085_v14  ;;  %4102 = vmatpush.bf16.msrb.mxu0 %v5080_v25 }
 0x7d3   :  { %4151 = vmatpush.bf16.msrb.mxu1 %v5084_v13  ;;  %v5803_v13 = vld [vmem:[#allocation3 + $0x78] sm:$0xff] }
 0x7d4   :  { %4199 = vmatpush.bf16.msrb.mxu2 %v5104_v1 }
 0x7d8   :  { %4200 = vmatpush.bf16.msrb.mxu2 %v5088_v55  ;;  %v8115_v55 = vadd.f32 %v5803_v13, %v3458_v57 }
 0x7e9   :  { %v3559_v49 = vpop.xlane.xlu1 %3558 }
 0x7ea   :  { %v3590_v28 = vmul.f32 %v3559_v49, %v8469_v59 }
 0x7ec   :  { %v3606_v47 = vadd.f32 1e-05, %v3590_v28 }
 0x7ee   :  { %5756 = vrsqrt.f32 %v3606_v47  ;;  %vm3628_vm0 = vweird.f32 %v3606_v47 }
 0x7f1   :  { %v3493_v52 = vpop.xlane.xlu1 %3492  ;;  %v3561_v26 = vpop.xlane.xlu0 %3560 }
 0x7f2   :  { %v3517_v6 = vmul.f32 %v3493_v52, %v8469_v59  ;;  %v3591_v60 = vmul.f32 %v3561_v26, %v8469_v59 }
 0x7f4   :  { %v5757_v54 = vpop.eup %5756  ;;  %v8092_v56 = vsub.f32 %v8025_v50, %v3517_v6  ;;  %v3607_v19 = vadd.f32 1e-05, %v3591_v60 }
 0x7f5   :  { %v3623_v30 = vmul.f32 %v5757_v54, %v3606_v47  ;;  %vm3629_vm15 = vweird.f32 %v5757_v54  ;;  %v8109_v47 = vld [vmem:[%s8370_s8] ss:$0 sm:$0xff] }
 0x7f6   :  { %5758 = vrsqrt.f32 %v3607_v19  ;;  %v3549_v37 = vmul.f32 %v8092_v56, %v8092_v56  ;;  %vm3630_vm1 = vmor %vm3628_vm0, %vm3629_vm15  ;;  %vm3638_vm3 = vweird.f32 %v3607_v19 }
 0x7f7   :  { %v3624_v40 = vmul.f32 %v5757_v54, %v3623_v30 }
 0x7f8   :  { %3572 = vadd.xlane.f32.xlu0 %v3549_v37 }
 0x7f9   :  { %v3625_v7 = vmul.f32 0.5, %v3624_v40  ;;  %v3495_v15 = vpop.xlane.xlu1 %3494  ;;  %v3563_v51 = vpop.xlane.xlu0 %3562 }
 0x7fa   :  { %v3518_v12 = vmul.f32 %v3495_v15, %v8469_v59  ;;  %v3592_v31 = vmul.f32 %v3563_v51, %v8469_v59 }
 0x7fb   :  { %v3626_v9 = vsub.f32 1.5, %v3625_v7 }
 0x7fc   :  { %v5759_v33 = vpop.eup %5758  ;;  %v8099_v10 = vsub.f32 %v8035_v53, %v3518_v12  ;;  %v3608_v22 = vadd.f32 1e-05, %v3592_v31 }
 0x7fd   :  { %v3627_v24 = vmul.f32 %v5757_v54, %v3626_v9  ;;  %v3633_v49 = vmul.f32 %v5759_v33, %v3607_v19  ;;  %vm3639_vm2 = vweird.f32 %v5759_v33 }
 0x7fe   :  { %5760 = vrsqrt.f32 %v3608_v22  ;;  %v3550_v63 = vmul.f32 %v8099_v10, %v8099_v10  ;;  %vm3640_vm4 = vmor %vm3638_vm3, %vm3639_vm2  ;;  %vm3648_vm6 = vweird.f32 %v3608_v22 }
 0x7ff   :  { %v3634_v32 = vmul.f32 %v5759_v33, %v3633_v49  ;;  %v3631_v20 = vsel %vm3630_vm1, %v5757_v54, %v3627_v24 }
 0x800   :  { %3574 = vadd.xlane.f32.xlu0 %v3550_v63  ;;  %v3782_v25 = vmul.f32 %v3631_v20, %v8016_v0  ;;  %v8122_v0 = vld [vmem:[%s8371_s9] ss:$0 sm:$0xff] }
 0x801   :  { %v3635_v28 = vmul.f32 0.5, %v3634_v32  ;;  %v3565_v1 = vpop.xlane.xlu2 %3564  ;;  %v3497_v61 = vpop.xlane.xlu0 %3496 }
 0x802   :  { %v3593_v46 = vmul.f32 %v3565_v1, %v8469_v59  ;;  %v3519_v38 = vmul.f32 %v3497_v61, %v8469_v59  ;;  %v3801_v60 = vmul.f32 %v8109_v47, %v3782_v25 }
 0x803   :  { %v3636_v3 = vsub.f32 1.5, %v3635_v28 }
 0x804   :  { %v5761_v8 = vpop.eup %5760  ;;  %v3609_v4 = vadd.f32 1e-05, %v3593_v46  ;;  %v8113_v58 = vsub.f32 %v8045_v34, %v3519_v38  ;;  %v3820_v31 = vadd.f32 %v8122_v0, %v3801_v60 }
 0x805   :  { %v3637_v27 = vmul.f32 %v5759_v33, %v3636_v3  ;;  %v3643_v2 = vmul.f32 %v5761_v8, %v3608_v22  ;;  %vm3649_vm5 = vweird.f32 %v5761_v8 }
 0x806   :  { %5762 = vrsqrt.f32 %v3609_v4  ;;  %v3551_v52 = vmul.f32 %v8113_v58, %v8113_v58  ;;  %vm3650_vm7 = vmor %vm3648_vm6, %vm3649_vm5  ;;  %vm3658_vm9 = vweird.f32 %v3609_v4 }
 0x807   :  { %v3641_v26 = vsel %vm3640_vm4, %v5759_v33, %v3637_v27  ;;  %v3644_v6 = vmul.f32 %v5761_v8, %v3643_v2 }
 0x808   :  { %v3783_v54 = vmul.f32 %v3641_v26, %v8023_v39  ;;  %3508 = vadd.xlane.f32.xlu0 %v8115_v55  ;;  %3576 = vadd.xlane.f32.xlu2 %v3551_v52 }
 0x809   :  { %v3645_v19 = vmul.f32 0.5, %v3644_v6  ;;  %v3567_v30 = vpop.xlane.xlu2 %3566  ;;  %v3499_v37 = vpop.xlane.xlu0 %3498 }
 0x80a   :  { %v3802_v40 = vmul.f32 %v8109_v47, %v3783_v54  ;;  %v3594_v7 = vmul.f32 %v3567_v30, %v8469_v59  ;;  %v3520_v15 = vmul.f32 %v3499_v37, %v8469_v59 }
 0x80b   :  { %v3646_v51 = vsub.f32 1.5, %v3645_v19 }
 0x80c   :  { %v5763_v12 = vpop.eup %5762  ;;  %v3821_v9 = vadd.f32 %v8122_v0, %v3802_v40  ;;  %v3610_v33 = vadd.f32 1e-05, %v3594_v7  ;;  %v8133_v39 = vsub.f32 %v8055_v43, %v3520_v15 }
 0x80d   :  { %v3647_v24 = vmul.f32 %v5761_v8, %v3646_v51  ;;  %v3653_v49 = vmul.f32 %v5763_v12, %v3609_v4  ;;  %vm3659_vm8 = vweird.f32 %v5763_v12 }
 0x80e   :  { %5764 = vrsqrt.f32 %v3610_v33  ;;  %v3836_v63 = vpack.c.bf16 %v3821_v9, %v3820_v31  ;;  %v3552_v36 = vmul.f32 %v8133_v39, %v8133_v39  ;;  %vm3660_vm10 = vmor %vm3658_vm9, %vm3659_vm8  ;;  %vm3668_vm12 = vweird.f32 %v3610_v33 }
 0x80f   :  { %v3654_v32 = vmul.f32 %v5763_v12, %v3653_v49  ;;  %v3651_v20 = vsel %vm3650_vm7, %v5761_v8, %v3647_v24 }
 0x810   :  { %4054 = vmatmul.bf16.vlgmr.msra.gmra.mxu3 %v3836_v63  ;;  %4103 = vmatmul.bf16.vlgmr.msrb.gmra.mxu0 %v3836_v63  ;;  %v3784_v22 = vmul.f32 %v3651_v20, %v8033_v29 }
 0x811   :  { %v3655_v28 = vmul.f32 0.5, %v3654_v32  ;;  %4152 = vmatmul.bf16.vlgmr.msrb.gmra.mxu1 %v3836_v63  ;;  %4201 = vmatmul.bf16.vlgmr.msrb.gmra.mxu2 %v3836_v63  ;;  %v3569_v1 = vpop.xlane.xlu1 %3568  ;;  %v3501_v61 = vpop.xlane.xlu2 %3500 }
 0x812   :  { %3578 = vadd.xlane.f32.xlu2 %v3552_v36  ;;  %v3595_v57 = vmul.f32 %v3569_v1, %v8469_v59  ;;  %v3521_v46 = vmul.f32 %v3501_v61, %v8469_v59  ;;  %v3803_v60 = vmul.f32 %v8109_v47, %v3784_v22 }
 0x813   :  { %v3656_v38 = vsub.f32 1.5, %v3655_v28 }
 0x814   :  { %v5765_v3 = vpop.eup %5764  ;;  %v3611_v25 = vadd.f32 1e-05, %v3595_v57  ;;  %v8141_v27 = vsub.f32 %v8065_v48, %v3521_v46  ;;  %v3822_v7 = vadd.f32 %v8122_v0, %v3803_v60 }
 0x815   :  { %v3657_v8 = vmul.f32 %v5763_v12, %v3656_v38  ;;  %v3663_v2 = vmul.f32 %v5765_v3, %v3610_v33  ;;  %vm3669_vm11 = vweird.f32 %v5765_v3 }
 0x816   :  { %5766 = vrsqrt.f32 %v3611_v25  ;;  %v3553_v13 = vmul.f32 %v8141_v27, %v8141_v27  ;;  %vm3670_vm13 = vmor %vm3668_vm12, %vm3669_vm11  ;;  %vm3678_vm15 = vweird.f32 %v3611_v25 }
 0x817   :  { %v3661_v52 = vsel %vm3660_vm10, %v5763_v12, %v3657_v8  ;;  %v3664_v26 = vmul.f32 %v5765_v3, %v3663_v2 }
 0x818   :  { %v3785_v6 = vmul.f32 %v3661_v52, %v8043_v35  ;;  %3580 = vadd.xlane.f32.xlu1 %v3553_v13 }
 0x819   :  { %v3665_v29 = vmul.f32 0.5, %v3664_v26  ;;  %v3503_v54 = vpop.xlane.xlu2 %3502 }
 0x81a   :  { %v3522_v19 = vmul.f32 %v3503_v54, %v8469_v59  ;;  %v3804_v30 = vmul.f32 %v8109_v47, %v3785_v6 }
 0x81b   :  { %v3666_v4 = vsub.f32 1.5, %v3665_v29 }
 0x81c   :  { %v5767_v37 = vpop.eup %5766  ;;  %v8150_v40 = vsub.f32 %v8071_v41, %v3522_v19  ;;  %v3823_v15 = vadd.f32 %v8122_v0, %v3804_v30 }
 0x81d   :  { %v3667_v51 = vmul.f32 %v5765_v3, %v3666_v4  ;;  %v3673_v35 = vmul.f32 %v5767_v37, %v3611_v25  ;;  %vm3679_vm14 = vweird.f32 %v5767_v37 }
 0x81e   :  { %v3554_v12 = vmul.f32 %v8150_v40, %v8150_v40  ;;  %v3837_v31 = vpack.c.bf16 %v3823_v15, %v3822_v7  ;;  %vm3680_vm0 = vmor %vm3678_vm15, %vm3679_vm14 }
 0x81f   :  { %v3674_v9 = vmul.f32 %v5767_v37, %v3673_v35  ;;  %v3671_v24 = vsel %vm3670_vm13, %v5765_v3, %v3667_v51 }
 0x820   :  { %3582 = vadd.xlane.f32.xlu0 %v3554_v12  ;;  %4059 = vmatmul.bf16.gmra.mxu3 %v3837_v31  ;;  %v3786_v36 = vmul.f32 %v3671_v24, %v8053_v62 }
 0x821   :  { %v3675_v49 = vmul.f32 0.5, %v3674_v9  ;;  %4108 = vmatmul.bf16.gmra.mxu0 %v3837_v31  ;;  %4157 = vmatmul.bf16.gmra.mxu1 %v3837_v31 }
 0x822   :  { %4206 = vmatmul.bf16.gmra.mxu2 %v3837_v31  ;;  %v3805_v33 = vmul.f32 %v8109_v47, %v3786_v36 }
 0x823   :  { %v3676_v63 = vsub.f32 1.5, %v3675_v49 }
 0x824   :  { %v3824_v61 = vadd.f32 %v8122_v0, %v3805_v33 }
 0x825   :  { %v3677_v32 = vmul.f32 %v5767_v37, %v3676_v63 }
 0x827   :  { %v3681_v20 = vsel %vm3680_vm0, %v5767_v37, %v3677_v32 }
 0x828   :  { %v3787_v28 = vmul.f32 %v3681_v20, %v8063_v21 }
 0x82a   :  { %v3806_v1 = vmul.f32 %v8109_v47, %v3787_v28 }
 0x82c   :  { %v3825_v57 = vadd.f32 %v8122_v0, %v3806_v1 }
 0x82e   :  { %v3838_v46 = vpack.c.bf16 %v3825_v57, %v3824_v61 }
 0x830   :  { %4064 = vmatmul.bf16.gmra.mxu3 %v3838_v46 }
 0x831   :  { %4113 = vmatmul.bf16.gmra.mxu0 %v3838_v46  ;;  %4162 = vmatmul.bf16.gmra.mxu1 %v3838_v46 }
 0x832   :  { %4211 = vmatmul.bf16.gmra.mxu2 %v3838_v46 }
 0x834   :  { %v3571_v62 = vpop.xlane.xlu1 %3570 }
 0x835   :  { %v3596_v52 = vmul.f32 %v3571_v62, %v8469_v59 }
 0x837   :  { %v3612_v26 = vadd.f32 1e-05, %v3596_v52 }
 0x839   :  { %5768 = vrsqrt.f32 %v3612_v26  ;;  %vm3688_vm2 = vweird.f32 %v3612_v26 }
 0x83c   :  { %v3505_v38 = vpop.xlane.xlu1 %3504 }
 0x83d   :  { %v3523_v3 = vmul.f32 %v3505_v38, %v8469_v59 }
 0x83f   :  { %v8164_v22 = vsub.f32 %v8081_v11, %v3523_v3  ;;  %v5769_v6 = vpop.eup %5768 }
 0x840   :  { %v3683_v60 = vmul.f32 %v5769_v6, %v3612_v26  ;;  %vm3689_vm1 = vweird.f32 %v5769_v6 }
 0x841   :  { %v3555_v21 = vmul.f32 %v8164_v22, %v8164_v22  ;;  %vm3690_vm3 = vmor %vm3688_vm2, %vm3689_vm1 }
 0x842   :  { %v3684_v29 = vmul.f32 %v5769_v6, %v3683_v60 }
 0x843   :  { %3584 = vadd.xlane.f32.xlu2 %v3555_v21 }
 0x844   :  { %v3507_v25 = vpop.xlane.xlu1 %3506  ;;  %v3685_v4 = vmul.f32 0.5, %v3684_v29 }
 0x845   :  { %v3524_v8 = vmul.f32 %v3507_v25, %v8469_v59 }
 0x846   :  { %v3686_v37 = vsub.f32 1.5, %v3685_v4 }
 0x847   :  { %v8170_v2 = vsub.f32 %v8085_v14, %v3524_v8 }
 0x848   :  { %v3687_v12 = vmul.f32 %v5769_v6, %v3686_v37 }
 0x849   :  { %v3556_v13 = vmul.f32 %v8170_v2, %v8170_v2 }
 0x84a   :  { %v3691_v24 = vsel %vm3690_vm3, %v5769_v6, %v3687_v12 }
 0x84b   :  { %3586 = vadd.xlane.f32.xlu1 %v3556_v13  ;;  %v3788_v1 = vmul.f32 %v3691_v24, %v8076_v18 }
 0x84d   :  { %v3807_v8 = vmul.f32 %v8109_v47, %v3788_v1 }
 0x84f   :  { %v3826_v29 = vadd.f32 %v8122_v0, %v3807_v8 }
 0x86b   :  { %v3573_v54 = vpop.xlane.xlu0 %3572 }
 0x86c   :  { %v3597_v19 = vmul.f32 %v3573_v54, %v8469_v59 }
 0x86e   :  { %v3613_v30 = vadd.f32 1e-05, %v3597_v19 }
 0x870   :  { %5770 = vrsqrt.f32 %v3613_v30  ;;  %vm3698_vm5 = vweird.f32 %v3613_v30 }
 0x873   :  { %v3575_v7 = vpop.xlane.xlu0 %3574 }
 0x874   :  { %v3598_v15 = vmul.f32 %v3575_v7, %v8469_v59 }
 0x876   :  { %v5771_v51 = vpop.eup %5770  ;;  %v3614_v35 = vadd.f32 1e-05, %v3598_v15 }
 0x877   :  { %v3693_v31 = vmul.f32 %v5771_v51, %v3613_v30  ;;  %vm3699_vm4 = vweird.f32 %v5771_v51 }
 0x878   :  { %5772 = vrsqrt.f32 %v3614_v35  ;;  %vm3700_vm6 = vmor %vm3698_vm5, %vm3699_vm4  ;;  %vm3708_vm8 = vweird.f32 %v3614_v35 }
 0x879   :  { %v3694_v9 = vmul.f32 %v5771_v51, %v3693_v31 }
 0x87b   :  { %v3695_v49 = vmul.f32 0.5, %v3694_v9  ;;  %v3577_v63 = vpop.xlane.xlu2 %3576  ;;  %v3509_v36 = vpop.xlane.xlu0 %3508 }
 0x87c   :  { %v3599_v32 = vmul.f32 %v3577_v63, %v8469_v59  ;;  %v3525_v20 = vmul.f32 %v3509_v36, %v8469_v59 }
 0x87d   :  { %v3696_v28 = vsub.f32 1.5, %v3695_v49 }
 0x87e   :  { %v5773_v33 = vpop.eup %5772  ;;  %v3615_v61 = vadd.f32 1e-05, %v3599_v32  ;;  %v8181_v57 = vsub.f32 %v8115_v55, %v3525_v20 }
 0x87f   :  { %v3697_v46 = vmul.f32 %v5771_v51, %v3696_v28  ;;  %v3703_v62 = vmul.f32 %v5773_v33, %v3614_v35  ;;  %vm3709_vm7 = vweird.f32 %v5773_v33 }
 0x880   :  { %5774 = vrsqrt.f32 %v3615_v61  ;;  %v3557_v38 = vmul.f32 %v8181_v57, %v8181_v57  ;;  %vm3710_vm9 = vmor %vm3708_vm8, %vm3709_vm7  ;;  %vm3718_vm11 = vweird.f32 %v3615_v61 }
 0x881   :  { %v3701_v3 = vsel %vm3700_vm6, %v5771_v51, %v3697_v46  ;;  %v3704_v21 = vmul.f32 %v5773_v33, %v3703_v62 }
 0x882   :  { %v3789_v25 = vmul.f32 %v3701_v3, %v8092_v56  ;;  %3588 = vadd.xlane.f32.xlu0 %v3557_v38 }
 0x883   :  { %v3705_v18 = vmul.f32 0.5, %v3704_v21 }
 0x884   :  { %v3808_v13 = vmul.f32 %v8109_v47, %v3789_v25 }
 0x885   :  { %v3706_v52 = vsub.f32 1.5, %v3705_v18  ;;  %v3579_v26 = vpop.xlane.xlu2 %3578 }
 0x886   :  { %v5775_v6 = vpop.eup %5774  ;;  %v3600_v60 = vmul.f32 %v3579_v26, %v8469_v59  ;;  %v3827_v54 = vadd.f32 %v8122_v0, %v3808_v13 }
 0x887   :  { %v3713_v19 = vmul.f32 %v5775_v6, %v3615_v61  ;;  %v3707_v30 = vmul.f32 %v5773_v33, %v3706_v52  ;;  %vm3719_vm10 = vweird.f32 %v5775_v6 }
 0x888   :  { %v3616_v4 = vadd.f32 1e-05, %v3600_v60  ;;  %v3839_v56 = vpack.c.bf16 %v3827_v54, %v3826_v29  ;;  %vm3720_vm12 = vmor %vm3718_vm11, %vm3719_vm10 }
 0x889   :  { %v3714_v37 = vmul.f32 %v5775_v6, %v3713_v19  ;;  %v3711_v51 = vsel %vm3710_vm9, %v5773_v33, %v3707_v30 }
 0x88a   :  { %5776 = vrsqrt.f32 %v3616_v4  ;;  %4069 = vmatmul.bf16.gmra.mxu3 %v3839_v56  ;;  %4118 = vmatmul.bf16.gmra.mxu0 %v3839_v56  ;;  %v3790_v24 = vmul.f32 %v3711_v51, %v8099_v10  ;;  %vm3728_vm14 = vweird.f32 %v3616_v4 }
 0x88b   :  { %v3715_v7 = vmul.f32 0.5, %v3714_v37  ;;  %4167 = vmatmul.bf16.gmra.mxu1 %v3839_v56  ;;  %4216 = vmatmul.bf16.gmra.mxu2 %v3839_v56  ;;  %v3581_v15 = vpop.xlane.xlu1 %3580 }
 0x88c   :  { %v3601_v12 = vmul.f32 %v3581_v15, %v8469_v59  ;;  %v3809_v28 = vmul.f32 %v8109_v47, %v3790_v24  ;;  %v5424_v24 = vld [vmem:[#allocation15 + $0xb8] sm:$0xff] }
 0x88d   :  { %v3716_v31 = vsub.f32 1.5, %v3715_v7  ;;  %4696 = vmatpush.bf16.msra.mxu1 %v5424_v24  ;;  %v5428_v24 = vld [vmem:[#allocation15 + $0xd8] sm:$0xff] }
 0x88e   :  { %v3617_v9 = vadd.f32 1e-05, %v3601_v12  ;;  %v3828_v61 = vadd.f32 %v8122_v0, %v3809_v28  ;;  %v5432_v12 = vld [vmem:[#allocation15 + $0xf8] sm:$0xff] }
 0x88f   :  { %v3717_v49 = vmul.f32 %v5775_v6, %v3716_v31  ;;  %v5416_v31 = vld [vmem:[#allocation15 + $0x78] sm:$0xff]  ;;  %4745 = vmatpush.bf16.msra.mxu2 %v5432_v12 }
 0x890   :  { %v5777_v63 = vpop.eup %5776  ;;  %5778 = vrsqrt.f32 %v3617_v9  ;;  %vm3738_vm1 = vweird.f32 %v3617_v9  ;;  %4647 = vmatpush.bf16.msra.mxu0 %v5416_v31  ;;  %v5412_v12 = vld [vmem:[#allocation15 + $0x58] sm:$0xff] }
 0x891   :  { %v3721_v35 = vsel %vm3720_vm12, %v5775_v6, %v3717_v49  ;;  %v3723_v36 = vmul.f32 %v5777_v63, %v3616_v4  ;;  %vm3729_vm13 = vweird.f32 %v5777_v63  ;;  %v5407_v49 = vld [vmem:[#allocation15 + $0x30] sm:$0xff]  ;;  %v5420_v31 = vld [vmem:[#allocation15 + $0x98] sm:$0xff] }
 0x892   :  { %v3791_v32 = vmul.f32 %v3721_v35, %v8113_v58  ;;  %vm3730_vm15 = vmor %vm3728_vm14, %vm3729_vm13 }
 0x893   :  { %v3724_v20 = vmul.f32 %v5777_v63, %v3723_v36  ;;  %v3583_v13 = vpop.xlane.xlu0 %3582  ;;  %v5415_v36 = vld [vmem:[#allocation15 + $0x70] sm:$0xff] }
 0x894   :  { %v3810_v33 = vmul.f32 %v8109_v47, %v3791_v32  ;;  %v3602_v6 = vmul.f32 %v3583_v13, %v8469_v59  ;;  %v5423_v32 = vld [vmem:[#allocation15 + $0xb0] sm:$0xff]  ;;  %4648 = vmatpush.bf16.msra.mxu0 %v5415_v36 }
 0x895   :  { %v3725_v1 = vmul.f32 0.5, %v3724_v20  ;;  %4697 = vmatpush.bf16.msra.mxu1 %v5423_v32  ;;  %v5403_v32 = vld [vmem:[#allocation15 + $0x10] sm:$0xff] }
 0x896   :  { %v5779_v46 = vpop.eup %5778  ;;  %v3829_v62 = vadd.f32 %v8122_v0, %v3810_v33  ;;  %v3618_v19 = vadd.f32 1e-05, %v3602_v6 }
 0x897   :  { %v3726_v38 = vsub.f32 1.5, %v3725_v1  ;;  %v3733_v10 = vmul.f32 %v5779_v46, %v3617_v9  ;;  %vm3739_vm0 = vweird.f32 %v5779_v46 }
 0x898   :  { %v3840_v25 = vpack.c.bf16 %v3829_v62, %v3828_v61  ;;  %vm3740_vm2 = vmor %vm3738_vm1, %vm3739_vm0  ;;  %5780 = vrsqrt.f32 %v3618_v19  ;;  %vm3748_vm4 = vweird.f32 %v3618_v19 }
 0x899   :  { %v3727_v3 = vmul.f32 %v5777_v63, %v3726_v38  ;;  %v3734_v21 = vmul.f32 %v5779_v46, %v3733_v10 }
 0x89a   :  { %4074 = vmatmul.bf16.gmra.mxu3 %v3840_v25  ;;  %4123 = vmatmul.bf16.gmra.mxu0 %v3840_v25 }
 0x89b   :  { %v3731_v58 = vsel %vm3730_vm15, %v5777_v63, %v3727_v3  ;;  %v3735_v8 = vmul.f32 0.5, %v3734_v21  ;;  %4172 = vmatmul.bf16.gmra.mxu1 %v3840_v25  ;;  %4221 = vmatmul.bf16.gmra.mxu2 %v3840_v25  ;;  %v5431_v63 = vld [vmem:[#allocation15 + $0xf0] sm:$0xff] }
 0x89c   :  { %v3792_v52 = vmul.f32 %v3731_v58, %v8133_v39  ;;  %4746 = vmatpush.bf16.msra.mxu2 %v5431_v63  ;;  %v8222_v63 = vpop.f32.mrf.mxu0 }
 0x89d   :  { %v3736_v18 = vsub.f32 1.5, %v3735_v8 }
 0x89e   :  { %v3811_v54 = vmul.f32 %v8109_v47, %v3792_v52  ;;  %v5781_v39 = vpop.eup %5780 }
 0x89f   :  { %v3737_v26 = vmul.f32 %v5779_v46, %v3736_v18  ;;  %v3743_v7 = vmul.f32 %v5781_v39, %v3618_v19  ;;  %vm3749_vm3 = vweird.f32 %v5781_v39  ;;  %v5422_v19 = vld [vmem:[#allocation15 + $0xa8] sm:$0xff] }
 0x8a0   :  { %v3830_v4 = vadd.f32 %v8122_v0, %v3811_v54  ;;  %vm3750_vm5 = vmor %vm3748_vm4, %vm3749_vm3  ;;  %v5414_v54 = vld [vmem:[#allocation15 + $0x68] sm:$0xff]  ;;  %4698 = vmatpush.bf16.msra.mxu1 %v5422_v19 }
 0x8a1   :  { %v3741_v60 = vsel %vm3740_vm2, %v5779_v46, %v3737_v26  ;;  %v3744_v15 = vmul.f32 %v5781_v39, %v3743_v7  ;;  %4649 = vmatpush.bf16.msra.mxu0 %v5414_v54  ;;  %v5421_v7 = vld [vmem:[#allocation15 + $0xa0] sm:$0xff] }
 0x8a2   :  { %v3793_v29 = vmul.f32 %v3741_v60, %v8141_v27  ;;  %v5408_v27 = vld [vmem:[#allocation15 + $0x38] sm:$0xff] }
 0x8a3   :  { %4598 = vmatpush.bf16.msrb.mxu3 %v5408_v27  ;;  %v3745_v20 = vmul.f32 0.5, %v3744_v15  ;;  %v5404_v27 = vld [vmem:[#allocation15 + $0x18] sm:$0xff] }
 0x8a4   :  { %v3812_v30 = vmul.f32 %v8109_v47, %v3793_v29  ;;  %v5430_v29 = vld [vmem:[#allocation15 + $0xe8] sm:$0xff]  ;;  %4699 = vmatpush.bf16.msra.mxu1 %v5421_v7 }
 0x8a5   :  { %v3746_v28 = vsub.f32 1.5, %v3745_v20  ;;  %4747 = vmatpush.bf16.msra.mxu2 %v5430_v29  ;;  %v5411_v20 = vld [vmem:[#allocation15 + $0x50] sm:$0xff] }
 0x8a6   :  { %v3831_v56 = vadd.f32 %v8122_v0, %v3812_v30 }
 0x8a7   :  { %4599 = vmatpush.bf16.msrb.mxu3 %v5407_v49  ;;  %v3747_v1 = vmul.f32 %v5781_v39, %v3746_v28  ;;  %v5419_v28 = vld [vmem:[#allocation15 + $0x90] sm:$0xff] }
 0x8a8   :  { %v3841_v37 = vpack.c.bf16 %v3831_v56, %v3830_v4  ;;  %v5405_v4 = vld [vmem:[#allocation15 + $0x20] sm:$0xff]  ;;  %4700 = vmatpush.bf16.msra.mxu1 %v5420_v31 }
 0x8a9   :  { %v3751_v38 = vsel %vm3750_vm5, %v5781_v39, %v3747_v1  ;;  %v5413_v39 = vld [vmem:[#allocation15 + $0x60] sm:$0xff]  ;;  %v8228_v1 = vpop.f32.mrf.mxu2 }
 0x8aa   :  { %4079 = vmatmul.bf16.gmra.mxu3 %v3841_v37  ;;  %4128 = vmatmul.bf16.gmra.mxu0 %v3841_v37  ;;  %v3794_v3 = vmul.f32 %v3751_v38, %v8150_v40  ;;  %v5410_v38 = vld [vmem:[#allocation15 + $0x48] sm:$0xff] }
 0x8ab   :  { %4177 = vmatmul.bf16.gmra.mxu1 %v3841_v37  ;;  %4226 = vmatmul.bf16.gmra.mxu2 %v3841_v37  ;;  %v5429_v37 = vld [vmem:[#allocation15 + $0xe0] sm:$0xff] }
 0x8ac   :  { %v3813_v8 = vmul.f32 %v8109_v47, %v3794_v3  ;;  %4748 = vmatpush.bf16.msra.mxu2 %v5429_v37  ;;  %4650 = vmatpush.bf16.msra.mxu0 %v5413_v39 }
 0x8ad   :  { %4701 = vmatpush.bf16.msra.mxu1 %v5419_v28 }
 0x8ae   :  { %v3832_v13 = vadd.f32 %v8122_v0, %v3813_v8  ;;  %v5409_v8 = vld [vmem:[#allocation15 + $0x40] sm:$0xff] }
 0x8b0   :  { %4651 = vmatpush.bf16.msra.mxu0 %v5412_v12  ;;  %4749 = vmatpush.bf16.msra.mxu2 %v5428_v24 }
 0x8b4   :  { %4652 = vmatpush.bf16.msra.mxu0 %v5411_v20 }
 0x8b6   :  { %v3585_v51 = vpop.xlane.xlu2 %3584 }
 0x8b7   :  { %v3603_v9 = vmul.f32 %v3585_v51, %v8469_v59 }
 0x8b8   :  { %4653 = vmatpush.bf16.msra.mxu0 %v5410_v38 }
 0x8b9   :  { %v3619_v35 = vadd.f32 1e-05, %v3603_v9 }
 0x8bb   :  { %5782 = vrsqrt.f32 %v3619_v35  ;;  %vm3758_vm7 = vweird.f32 %v3619_v35 }
 0x8bc   :  { %4654 = vmatpush.bf16.msra.mxu0 %v5409_v8 }
 0x8be   :  { %v3587_v40 = vpop.xlane.xlu1 %3586 }
 0x8bf   :  { %v3604_v6 = vmul.f32 %v3587_v40, %v8469_v59 }
 0x8c1   :  { %v5783_v33 = vpop.eup %5782  ;;  %v8213_v60 = vadd.f32 1e-05, %v3604_v6 }
 0x8c2   :  { %v3753_v46 = vmul.f32 %v5783_v33, %v3619_v35  ;;  %vm3759_vm6 = vweird.f32 %v5783_v33  ;;  %v8224_v35 = vpop.f32.mrf.mxu3 }
 0x8c3   :  { %vm3760_vm8 = vmor %vm3758_vm7, %vm3759_vm6  ;;  %5784 = vrsqrt.f32 %v8213_v60  ;;  %vm3768_vm10 = vweird.f32 %v8213_v60 }
 0x8c4   :  { %v3754_v62 = vmul.f32 %v5783_v33, %v3753_v46 }
 0x8c6   :  { %v3755_v10 = vmul.f32 0.5, %v3754_v62  ;;  %v5402_v62 = vld [vmem:[#allocation15 + $0x8] sm:$0xff] }
 0x8c8   :  { %v3756_v61 = vsub.f32 1.5, %v3755_v10  ;;  %v5418_v10 = vld [vmem:[#allocation15 + $0x88] sm:$0xff] }
 0x8c9   :  { %v8216_v30 = vpop.eup %5784  ;;  %4702 = vmatpush.bf16.msra.mxu1 %v5418_v10 }
 0x8ca   :  { %v3757_v21 = vmul.f32 %v5783_v33, %v3756_v61  ;;  %v3763_v56 = vmul.f32 %v8216_v30, %v8213_v60  ;;  %v5426_v61 = vld [vmem:[#allocation15 + $0xc8] sm:$0xff]  ;;  %vm3769_vm9 = vweird.f32 %v8216_v30 }
 0x8cb   :  { %vm3770_vm11 = vmor %vm3768_vm10, %vm3769_vm9 }
 0x8cc   :  { %v3761_v25 = vsel %vm3760_vm8, %v5783_v33, %v3757_v21  ;;  %v3764_v15 = vmul.f32 %v8216_v30, %v3763_v56  ;;  %v8226_v33 = vpop.f32.mrf.mxu1 }
 0x8cd   :  { %v3795_v58 = vmul.f32 %v3761_v25, %v8164_v22  ;;  %v5406_v22 = vld [vmem:[#allocation15 + $0x28] sm:$0xff] }
 0x8ce   :  { %4600 = vmatpush.bf16.msrb.mxu3 %v5406_v22  ;;  %v3765_v36 = vmul.f32 0.5, %v3764_v15  ;;  %v4204_v22 = vpop.f32.mrf.mxu2 }
 0x8cf   :  { %v3814_v18 = vmul.f32 %v8109_v47, %v3795_v58  ;;  %v5401_v58 = vld [vmem:[#allocation15] sm:$0xff] }
 0x8d0   :  { %v3766_v46 = vsub.f32 1.5, %v3765_v36 }
 0x8d1   :  { %v3833_v52 = vadd.f32 %v8122_v0, %v3814_v18  ;;  %v5417_v18 = vld [vmem:[#allocation15 + $0x80] sm:$0xff] }
 0x8d2   :  { %4601 = vmatpush.bf16.msrb.mxu3 %v5405_v4  ;;  %v3767_v21 = vmul.f32 %v8216_v30, %v3766_v46  ;;  %4703 = vmatpush.bf16.msra.mxu1 %v5417_v18 }
 0x8d3   :  { %v3842_v26 = vpack.c.bf16 %v3833_v52, %v3832_v13  ;;  %v5425_v13 = vld [vmem:[#allocation15 + $0xc0] sm:$0xff]  ;;  %v4106_v52 = vpop.f32.mrf.mxu0 }
 0x8d4   :  { %v4155_v6 = vpop.f32.mrf.mxu1  ;;  %v3771_v29 = vsel %vm3770_vm11, %v8216_v30, %v3767_v21 }
 0x8d5   :  { %4084 = vmatmul.bf16.gmra.mxu3 %v3842_v26  ;;  %4133 = vmatmul.bf16.gmra.mxu0 %v3842_v26  ;;  %v3796_v4 = vmul.f32 %v3771_v29, %v8170_v2  ;;  %v3876_v2 = vld [vmem:[%s8373_s11] sm:$0xf] }
 0x8d6   :  { %4182 = vmatmul.bf16.gmra.mxu1 %v3842_v26  ;;  %4231 = vmatmul.bf16.gmra.mxu2 %v3842_v26  ;;  %v4057_v26 = vpop.f32.mrf.mxu3  ;;  %v8245_v36 = vperm.slane %v3876_v2, 0  ;;  %v8247_v20 = vperm.slane %v3876_v2, 2 }
 0x8d7   :  { %4602 = vmatpush.bf16.msrb.mxu3 %v5404_v27  ;;  %v3815_v39 = vmul.f32 %v8109_v47, %v3796_v4  ;;  %v4207_v27 = vpop.f32.mrf.mxu2 }
 0x8d8   :  { %v4156_v46 = vadd.f32 %v4155_v6, %v8247_v20  ;;  %v4056_v10 = vadd.f32 %v8224_v35, %v8245_v36 }
 0x8d9   :  { %v3834_v30 = vadd.f32 %v8122_v0, %v3815_v39 }
 0x8db   :  { %4603 = vmatpush.bf16.msrb.mxu3 %v5403_v32  ;;  %v4109_v7 = vpop.f32.mrf.mxu0 }
 0x8de   :  { %v4060_v15 = vpop.f32.mrf.mxu3 }
 0x8df   :  { %4604 = vmatpush.bf16.msrb.mxu3 %v5402_v62  ;;  %v4209_v32 = vpop.f32.mrf.mxu2 }
 0x8e3   :  { %4605 = vmatpush.bf16.msrb.mxu3 %v5401_v58  ;;  %v4248_v58 = vmax.f32 %v4156_v46, 0.0 }
 0x8e6   :  { %v4062_v24 = vpop.f32.mrf.mxu3 }
 0x8e7   :  { %v4212_v35 = vpop.f32.mrf.mxu2 }
 0x8ee   :  { %v4065_v6 = vpop.f32.mrf.mxu3 }
 0x8f5   :  { %v3589_v51 = vpop.xlane.xlu0 %3588 }
 0x8f6   :  { %v3605_v9 = vmul.f32 %v3589_v51, %v8469_v59  ;;  %v5427_v59 = vld [vmem:[#allocation15 + $0xd0] sm:$0xff]  ;;  %v4158_v51 = vpop.f32.mrf.mxu1 }
 0x8f7   :  { %4750 = vmatpush.bf16.msra.mxu2 %v5427_v59  ;;  %v4058_v59 = vadd.f32 %v4057_v26, %v8245_v36 }
 0x8f8   :  { %v3621_v49 = vadd.f32 1e-05, %v3605_v9 }
 0x8fa   :  { %5786 = vrsqrt.f32 %v3621_v49  ;;  %vm3778_vm13 = vweird.f32 %v3621_v49 }
 0x8fb   :  { %4751 = vmatpush.bf16.msra.mxu2 %v5426_v61  ;;  %v4154_v61 = vadd.f32 %v8226_v33, %v8247_v20 }
 0x8ff   :  { %4752 = vmatpush.bf16.msra.mxu2 %v5425_v13  ;;  %v4242_v13 = vmax.f32 %v4056_v10, 0.0 }
 0x900   :  { %v5787_v3 = vpop.eup %5786 }
 0x901   :  { %v3773_v25 = vmul.f32 %v5787_v3, %v3621_v49  ;;  %vm3779_vm12 = vweird.f32 %v5787_v3  ;;  %v8243_v49 = vperm.slane %v3876_v2, 1 }
 0x902   :  { %vm3780_vm14 = vmor %vm3778_vm13, %vm3779_vm12 }
 0x903   :  { %v3774_v40 = vmul.f32 %v5787_v3, %v3773_v25  ;;  %v4107_v28 = vadd.f32 %v4106_v52, %v8243_v49  ;;  %v4105_v38 = vadd.f32 %v8222_v63, %v8243_v49  ;;  %v4246_v25 = vmax.f32 %v4058_v59, 0.0 }
 0x904   :  { %v4244_v52 = vmax.f32 %v4154_v61, 0.0  ;;  %v4110_v39 = vadd.f32 %v4109_v7, %v8243_v49 }
 0x905   :  { %v3775_v54 = vmul.f32 0.5, %v3774_v40  ;;  %v4247_v21 = vmax.f32 %v4107_v28, 0.0  ;;  %v4243_v18 = vmax.f32 %v4105_v38, 0.0 }
 0x906   :  { %v4251_v46 = vmax.f32 %v4110_v39, 0.0 }
 0x907   :  { %v3776_v19 = vsub.f32 1.5, %v3775_v54  ;;  %v4307_v63 = vpack.c.bf16 %v4247_v21, %v4243_v18  ;;  %v4308_v54 = vpack.c.bf16 %v4248_v58, %v4244_v52 }
 0x909   :  { %v3777_v56 = vmul.f32 %v5787_v3, %v3776_v19 }
 0x90b   :  { %v3781_v37 = vsel %vm3780_vm14, %v5787_v3, %v3777_v56 }
 0x90c   :  { %v3797_v60 = vmul.f32 %v3781_v37, %v8181_v57  ;;  %v4111_v57 = vpop.f32.mrf.mxu0 }
 0x90d   :  { %v4112_v33 = vadd.f32 %v4111_v57, %v8243_v49 }
 0x90e   :  { %v3816_v12 = vmul.f32 %v8109_v47, %v3797_v60  ;;  %v4160_v47 = vpop.f32.mrf.mxu1  ;;  %v4067_v60 = vpop.f32.mrf.mxu3 }
 0x90f   :  { %v4161_v4 = vadd.f32 %v4160_v47, %v8247_v20  ;;  %v4255_v28 = vmax.f32 %v4112_v33, 0.0 }
 0x910   :  { %v3835_v31 = vadd.f32 %v8122_v0, %v3816_v12  ;;  %v8249_v0 = vperm.slane %v3876_v2, 3  ;;  %v4061_v12 = vadd.f32 %v4060_v15, %v8245_v36 }
 0x911   :  { %v4256_v59 = vmax.f32 %v4161_v4, 0.0  ;;  %v4311_v10 = vpack.c.bf16 %v4255_v28, %v4251_v46 }
 0x912   :  { %v3843_v9 = vpack.c.bf16 %v3835_v31, %v3834_v30  ;;  %v4205_v62 = vadd.f32 %v4204_v22, %v8249_v0  ;;  %v4203_v3 = vadd.f32 %v8228_v1, %v8249_v0  ;;  %v4306_v22 = vpack.c.bf16 %v4246_v25, %v4242_v13  ;;  %v4214_v31 = vpop.f32.mrf.mxu2 }
 0x913   :  { %v4063_v1 = vadd.f32 %v4062_v24, %v8245_v36  ;;  %v4210_v56 = vadd.f32 %v4209_v32, %v8249_v0  ;;  %v4208_v2 = vadd.f32 %v4207_v27, %v8249_v0  ;;  %v4250_v47 = vmax.f32 %v4061_v12, 0.0 }
 0x914   :  { %4089 = vmatmul.bf16.gmra.mxu3 %v3843_v9  ;;  %4138 = vmatmul.bf16.gmra.mxu0 %v3843_v9  ;;  %v4249_v8 = vmax.f32 %v4205_v62, 0.0  ;;  %v4245_v26 = vmax.f32 %v4203_v3, 0.0  ;;  %v4114_v40 = vpop.f32.mrf.mxu0  ;;  %v4068_v27 = vadd.f32 %v4067_v60, %v8245_v36  ;;  %v4066_v13 = vadd.f32 %v4065_v6, %v8245_v36 }
 0x915   :  { %4187 = vmatmul.bf16.gmra.mxu1 %v3843_v9  ;;  %4236 = vmatmul.bf16.gmra.mxu2 %v3843_v9  ;;  %v4159_v9 = vadd.f32 %v4158_v51, %v8247_v20  ;;  %v4254_v57 = vmax.f32 %v4063_v1, 0.0  ;;  %v4257_v24 = vmax.f32 %v4210_v56, 0.0  ;;  %v4253_v32 = vmax.f32 %v4208_v2, 0.0 }
 0x916   :  { %v4163_v29 = vpop.f32.mrf.mxu1  ;;  %v4309_v19 = vpack.c.bf16 %v4249_v8, %v4245_v26  ;;  %v4070_v7 = vpop.f32.mrf.mxu3  ;;  %v4215_v8 = vadd.f32 %v4214_v31, %v8249_v0  ;;  %v4115_v18 = vadd.f32 %v4114_v40, %v8243_v49  ;;  %v4213_v26 = vadd.f32 %v4212_v35, %v8249_v0 }
 0x917   :  { %v4252_v62 = vmax.f32 %v4159_v9, 0.0  ;;  %v4310_v38 = vpack.c.bf16 %v4254_v57, %v4250_v47  ;;  %v4313_v15 = vpack.c.bf16 %v4257_v24, %v4253_v32  ;;  %v4164_v52 = vadd.f32 %v4163_v29, %v8247_v20 }
 0x918   :  { %v4265_v56 = vmax.f32 %v4215_v8, 0.0  ;;  %v4258_v60 = vmax.f32 %v4066_v13, 0.0  ;;  %v4261_v12 = vmax.f32 %v4213_v26, 0.0  ;;  %v4071_v47 = vadd.f32 %v4070_v7, %v8245_v36 }
 0x919   :  { %v4312_v3 = vpack.c.bf16 %v4256_v59, %v4252_v62  ;;  %v4260_v39 = vmax.f32 %v4164_v52, 0.0 }
 0x91a   :  { %v4217_v25 = vpop.f32.mrf.mxu2  ;;  %v4317_v6 = vpack.c.bf16 %v4265_v56, %v4261_v12 }
 0x91b   :  { %v4218_v32 = vadd.f32 %v4217_v25, %v8249_v0 }
 0x91c   :  { %v4116_v37 = vpop.f32.mrf.mxu0 }
 0x91d   :  { %v4117_v51 = vadd.f32 %v4116_v37, %v8243_v49  ;;  %v4259_v37 = vmax.f32 %v4115_v18, 0.0  ;;  %v4269_v8 = vmax.f32 %v4218_v32, 0.0 }
 0x91e   :  { %v4165_v30 = vpop.f32.mrf.mxu1 }
 0x91f   :  { %v4166_v58 = vadd.f32 %v4165_v30, %v8247_v20 }
 0x921   :  { %v4264_v4 = vmax.f32 %v4166_v58, 0.0 }
 0x922   :  { %v4219_v1 = vpop.f32.mrf.mxu2 }
 0x923   :  { %v4316_v31 = vpack.c.bf16 %v4264_v4, %v4260_v39  ;;  %v4220_v24 = vadd.f32 %v4219_v1, %v8249_v0 }
 0x924   :  { %4606 = vmatmul.bf16.vlgmr.msrb.gmra.mxu3 %v4306_v22  ;;  %4655 = vmatmul.bf16.vlgmr.msra.gmra.mxu0 %v4307_v63  ;;  %v4119_v61 = vpop.f32.mrf.mxu0  ;;  %v4072_v22 = vpop.f32.mrf.mxu3 }
 0x925   :  { %4704 = vmatmul.bf16.vlgmr.msra.gmra.mxu1 %v4308_v54  ;;  %4753 = vmatmul.bf16.vlgmr.msra.gmra.mxu2 %v4309_v19  ;;  %v4263_v54 = vmax.f32 %v4117_v51, 0.0  ;;  %v4262_v19 = vmax.f32 %v4068_v27, 0.0  ;;  %v4073_v57 = vadd.f32 %v4072_v22, %v8245_v36  ;;  %v4120_v46 = vadd.f32 %v4119_v61, %v8243_v49 }
 0x926   :  { %v4168_v21 = vpop.f32.mrf.mxu1  ;;  %v4266_v27 = vmax.f32 %v4071_v47, 0.0 }
 0x927   :  { %v4314_v30 = vpack.c.bf16 %v4262_v19, %v4258_v60  ;;  %v4315_v40 = vpack.c.bf16 %v4263_v54, %v4259_v37  ;;  %v4169_v62 = vadd.f32 %v4168_v21, %v8247_v20  ;;  %v4267_v51 = vmax.f32 %v4120_v46, 0.0 }
 0x929   :  { %v4268_v58 = vmax.f32 %v4169_v62, 0.0 }
 0x92a   :  { %v4222_v2 = vpop.f32.mrf.mxu2 }
 0x92b   :  { %v4223_v12 = vadd.f32 %v4222_v2, %v8249_v0 }
 0x92c   :  { %v4121_v63 = vpop.f32.mrf.mxu0  ;;  %v4075_v35 = vpop.f32.mrf.mxu3 }
 0x92d   :  { %v4122_v28 = vadd.f32 %v4121_v63, %v8243_v49  ;;  %v4076_v56 = vadd.f32 %v4075_v35, %v8245_v36 }
 0x92e   :  { %v4170_v33 = vpop.f32.mrf.mxu1 }
 0x92f   :  { %v4171_v59 = vadd.f32 %v4170_v33, %v8247_v20 }
 0x932   :  { %v4224_v26 = vpop.f32.mrf.mxu2 }
 0x933   :  { %v4225_v19 = vadd.f32 %v4224_v26, %v8249_v0 }
 0x934   :  { %4611 = vmatmul.bf16.gmra.mxu3 %v4310_v38  ;;  %4660 = vmatmul.bf16.gmra.mxu0 %v4311_v10  ;;  %v4124_v29 = vpop.f32.mrf.mxu0  ;;  %v4271_v38 = vmax.f32 %v4122_v28, 0.0  ;;  %v4270_v10 = vmax.f32 %v4073_v57, 0.0  ;;  %v4077_v13 = vpop.f32.mrf.mxu3  ;;  %v4274_v57 = vmax.f32 %v4076_v56, 0.0 }
 0x935   :  { %4709 = vmatmul.bf16.gmra.mxu1 %v4312_v3  ;;  %4758 = vmatmul.bf16.gmra.mxu2 %v4313_v15  ;;  %v4272_v3 = vmax.f32 %v4171_v59, 0.0  ;;  %v4273_v15 = vmax.f32 %v4220_v24, 0.0  ;;  %v4078_v25 = vadd.f32 %v4077_v13, %v8245_v36  ;;  %v4125_v4 = vadd.f32 %v4124_v29, %v8243_v49 }
 0x936   :  { %v4173_v9 = vpop.f32.mrf.mxu1  ;;  %v4318_v63 = vpack.c.bf16 %v4270_v10, %v4266_v27  ;;  %v4319_v61 = vpack.c.bf16 %v4271_v38, %v4267_v51  ;;  %v4277_v24 = vmax.f32 %v4223_v12, 0.0 }
 0x937   :  { %v4320_v22 = vpack.c.bf16 %v4272_v3, %v4268_v58  ;;  %v4321_v7 = vpack.c.bf16 %v4273_v15, %v4269_v8  ;;  %v4174_v39 = vadd.f32 %v4173_v9, %v8247_v20  ;;  %v4275_v28 = vmax.f32 %v4125_v4, 0.0 }
 0x939   :  { %v4276_v59 = vmax.f32 %v4174_v39, 0.0 }
 0x93a   :  { %v4227_v60 = vpop.f32.mrf.mxu2 }
 0x93b   :  { %v4228_v8 = vadd.f32 %v4227_v60, %v8249_v0 }
 0x93c   :  { %v4126_v18 = vpop.f32.mrf.mxu0  ;;  %v4080_v1 = vpop.f32.mrf.mxu3 }
 0x93d   :  { %v4127_v21 = vadd.f32 %v4126_v18, %v8243_v49  ;;  %v4081_v27 = vadd.f32 %v4080_v1, %v8245_v36 }
 0x93e   :  { %v4175_v52 = vpop.f32.mrf.mxu1 }
 0x93f   :  { %v4176_v54 = vadd.f32 %v4175_v52, %v8247_v20 }
 0x942   :  { %v4229_v2 = vpop.f32.mrf.mxu2 }
 0x943   :  { %v4230_v15 = vadd.f32 %v4229_v2, %v8249_v0 }
 0x944   :  { %4616 = vmatmul.bf16.gmra.mxu3 %v4314_v30  ;;  %4665 = vmatmul.bf16.gmra.mxu0 %v4315_v40  ;;  %v4129_v33 = vpop.f32.mrf.mxu0  ;;  %v4279_v30 = vmax.f32 %v4127_v21, 0.0  ;;  %v4278_v40 = vmax.f32 %v4078_v25, 0.0  ;;  %v4082_v32 = vpop.f32.mrf.mxu3  ;;  %v4282_v25 = vmax.f32 %v4081_v27, 0.0 }
 0x945   :  { %4714 = vmatmul.bf16.gmra.mxu1 %v4316_v31  ;;  %4763 = vmatmul.bf16.gmra.mxu2 %v4317_v6  ;;  %v4280_v31 = vmax.f32 %v4176_v54, 0.0  ;;  %v4281_v6 = vmax.f32 %v4225_v19, 0.0  ;;  %v4083_v10 = vadd.f32 %v4082_v32, %v8245_v36  ;;  %v4130_v51 = vadd.f32 %v4129_v33, %v8243_v49 }
 0x946   :  { %v4178_v37 = vpop.f32.mrf.mxu1  ;;  %v4323_v46 = vpack.c.bf16 %v4279_v30, %v4275_v28  ;;  %v4322_v47 = vpack.c.bf16 %v4278_v40, %v4274_v57  ;;  %v4285_v19 = vmax.f32 %v4228_v8, 0.0 }
 0x947   :  { %v4324_v62 = vpack.c.bf16 %v4280_v31, %v4276_v59  ;;  %v4325_v29 = vpack.c.bf16 %v4281_v6, %v4277_v24  ;;  %v4179_v58 = vadd.f32 %v4178_v37, %v8247_v20  ;;  %v4286_v26 = vmax.f32 %v4083_v10, 0.0 }
 0x948   :  { %v4283_v21 = vmax.f32 %v4130_v51, 0.0 }
 0x949   :  { %v4284_v54 = vmax.f32 %v4179_v58, 0.0  ;;  %v4326_v33 = vpack.c.bf16 %v4286_v26, %v4282_v25 }
 0x94c   :  { %v4131_v35 = vpop.f32.mrf.mxu0 }
 0x94d   :  { %v4132_v38 = vadd.f32 %v4131_v35, %v8243_v49 }
 0x94e   :  { %v4180_v9 = vpop.f32.mrf.mxu1 }
 0x94f   :  { %v4181_v3 = vadd.f32 %v4180_v9, %v8247_v20  ;;  %v4287_v52 = vmax.f32 %v4132_v38, 0.0 }
 0x951   :  { %v4327_v4 = vpack.c.bf16 %v4287_v52, %v4283_v21 }
 0x954   :  { %4621 = vmatmul.bf16.gmra.mxu3 %v4318_v63  ;;  %4670 = vmatmul.bf16.gmra.mxu0 %v4319_v61  ;;  %v4134_v18 = vpop.f32.mrf.mxu0 }
 0x955   :  { %4719 = vmatmul.bf16.gmra.mxu1 %v4320_v22  ;;  %4768 = vmatmul.bf16.gmra.mxu2 %v4321_v7  ;;  %v4288_v22 = vmax.f32 %v4181_v3, 0.0  ;;  %v4289_v7 = vmax.f32 %v4230_v15, 0.0  ;;  %v4135_v28 = vadd.f32 %v4134_v18, %v8243_v49 }
 0x956   :  { %v4183_v63 = vpop.f32.mrf.mxu1 }
 0x957   :  { %v4328_v56 = vpack.c.bf16 %v4288_v22, %v4284_v54  ;;  %v4329_v1 = vpack.c.bf16 %v4289_v7, %v4285_v19  ;;  %v4184_v59 = vadd.f32 %v4183_v63, %v8247_v20  ;;  %v4291_v35 = vmax.f32 %v4135_v28, 0.0 }
 0x958   :  { %v4085_v13 = vpop.f32.mrf.mxu3 }
 0x959   :  { %v4232_v61 = vpop.f32.mrf.mxu2  ;;  %v4086_v57 = vadd.f32 %v4085_v13, %v8245_v36  ;;  %v4292_v9 = vmax.f32 %v4184_v59, 0.0 }
 0x95a   :  { %v4233_v24 = vadd.f32 %v4232_v61, %v8249_v0 }
 0x95b   :  { %v4290_v32 = vmax.f32 %v4086_v57, 0.0 }
 0x95c   :  { %v4136_v37 = vpop.f32.mrf.mxu0  ;;  %v4293_v2 = vmax.f32 %v4233_v24, 0.0 }
 0x95d   :  { %v4137_v30 = vadd.f32 %v4136_v37, %v8243_v49 }
 0x95e   :  { %v4185_v39 = vpop.f32.mrf.mxu1 }
 0x95f   :  { %v4186_v31 = vadd.f32 %v4185_v39, %v8247_v20 }
 0x960   :  { %v4087_v60 = vpop.f32.mrf.mxu3 }
 0x961   :  { %v4234_v12 = vpop.f32.mrf.mxu2  ;;  %v4088_v40 = vadd.f32 %v4087_v60, %v8245_v36 }
 0x962   :  { %v4235_v6 = vadd.f32 %v4234_v12, %v8249_v0 }
 0x964   :  { %4626 = vmatmul.bf16.gmra.mxu3 %v4322_v47  ;;  %4675 = vmatmul.bf16.gmra.mxu0 %v4323_v46  ;;  %v4295_v46 = vmax.f32 %v4137_v30, 0.0  ;;  %v4294_v47 = vmax.f32 %v4088_v40, 0.0 }
 0x965   :  { %4724 = vmatmul.bf16.gmra.mxu1 %v4324_v62  ;;  %4773 = vmatmul.bf16.gmra.mxu2 %v4325_v29  ;;  %v4296_v62 = vmax.f32 %v4186_v31, 0.0  ;;  %v4297_v29 = vmax.f32 %v4235_v6, 0.0  ;;  %v8322_v6 = vld [vmem:[%s8375_s13] ss:$0 sm:$0xff]  ;;  %s6050_s13 = smov [#allocation17]  }
 0x966   :  { %v4331_v38 = vpack.c.bf16 %v4295_v46, %v4291_v35  ;;  %v4330_v10 = vpack.c.bf16 %v4294_v47, %v4290_v32  ;;  %s4830_s27 = sshll.u32 %s6050_s13, 4  ;;  %s4831_s27 = int_to_ptr.vmem [resolvable:$true] %s4830_s27 }
 0x967   :  { %v4332_v3 = vpack.c.bf16 %v4296_v62, %v4292_v9  ;;  %v4333_v15 = vpack.c.bf16 %v4297_v29, %v4293_v2 }
 0x974   :  { %4631 = vmatmul.bf16.gmra.mxu3 %v4326_v33  ;;  %4680 = vmatmul.bf16.gmra.mxu0 %v4327_v4 }
 0x975   :  { %4729 = vmatmul.bf16.gmra.mxu1 %v4328_v56  ;;  %4778 = vmatmul.bf16.gmra.mxu2 %v4329_v1 }
 0x984   :  { %4636 = vmatmul.bf16.gmra.mxu3 %v4330_v10  ;;  %4685 = vmatmul.bf16.gmra.mxu0 %v4331_v38 }
 0x985   :  { %4734 = vmatmul.bf16.gmra.mxu1 %v4332_v3  ;;  %4783 = vmatmul.bf16.gmra.mxu2 %v4333_v15 }
 0x991   :  { %v4139_v51 = vpop.f32.mrf.mxu0 }
 0x992   :  { %v4188_v27 = vpop.f32.mrf.mxu1  ;;  %v4140_v8 = vadd.f32 %v4139_v51, %v8243_v49 }
 0x993   :  { %v4189_v13 = vadd.f32 %v4188_v27, %v8247_v20 }
 0x994   :  { %v4299_v22 = vmax.f32 %v4140_v8, 0.0 }
 0x995   :  { %v4300_v21 = vmax.f32 %v4189_v13, 0.0 }
 0x997   :  { %v4090_v58 = vpop.f32.mrf.mxu3 }
 0x998   :  { %v4237_v18 = vpop.f32.mrf.mxu2  ;;  %v4091_v54 = vadd.f32 %v4090_v58, %v8245_v36 }
 0x999   :  { %v4141_v52 = vpop.f32.mrf.mxu0  ;;  %v4238_v4 = vadd.f32 %v4237_v18, %v8249_v0 }
 0x99a   :  { %v4142_v26 = vadd.f32 %v4141_v52, %v8243_v49  ;;  %v4190_v63 = vpop.f32.mrf.mxu1 }
 0x99b   :  { %v4191_v61 = vadd.f32 %v4190_v63, %v8247_v20  ;;  %v4298_v20 = vmax.f32 %v4091_v54, 0.0  ;;  %v4301_v30 = vmax.f32 %v4238_v4, 0.0 }
 0x99c   :  { %v4303_v7 = vmax.f32 %v4142_v26, 0.0 }
 0x99d   :  { %v4304_v25 = vmax.f32 %v4191_v61, 0.0 }
 0x99e   :  { %v4335_v19 = vpack.c.bf16 %v4303_v7, %v4299_v22 }
 0x99f   :  { %v4336_v33 = vpack.c.bf16 %v4304_v25, %v4300_v21  ;;  %v4092_v56 = vpop.f32.mrf.mxu3 }
 0x9a0   :  { %v4093_v1 = vadd.f32 %v4092_v56, %v8245_v36  ;;  %v4239_v37 = vpop.f32.mrf.mxu2  ;;  %4690 = vmatmul.bf16.gmra.mxu0 %v4335_v19 }
 0x9a1   :  { %v4240_v49 = vadd.f32 %v4239_v37, %v8249_v0  ;;  %4739 = vmatmul.bf16.gmra.mxu1 %v4336_v33  ;;  %v4656_v60 = vpop.f32.mrf.mxu0 }
 0x9a2   :  { %v4302_v39 = vmax.f32 %v4093_v1, 0.0  ;;  %v4705_v12 = vpop.f32.mrf.mxu1 }
 0x9a3   :  { %v4305_v40 = vmax.f32 %v4240_v49, 0.0 }
 0x9a4   :  { %v4334_v31 = vpack.c.bf16 %v4302_v39, %v4298_v20 }
 0x9a5   :  { %v4337_v28 = vpack.c.bf16 %v4305_v40, %v4301_v30 }
 0x9a6   :  { %4641 = vmatmul.bf16.gmra.mxu3 %v4334_v31 }
 0x9a7   :  { %4788 = vmatmul.bf16.gmra.mxu2 %v4337_v28  ;;  %v4607_v36 = vpop.f32.mrf.mxu3 }
 0x9a8   :  { %v4608_v57 = vadd.f32 %v8322_v6, %v4607_v36  ;;  %v4754_v0 = vpop.f32.mrf.mxu2 }
 0x9a9   :  { %v4658_v59 = vpop.f32.mrf.mxu0 }
 0x9aa   :  { %v4657_v24 = vadd.f32 %v4656_v60, %v4608_v57  ;;  %v4707_v46 = vpop.f32.mrf.mxu1 }
 0x9ac   :  { %v4706_v47 = vadd.f32 %v4705_v12, %v4657_v24 }
 0x9ae   :  { %v4755_v62 = vadd.f32 %v4754_v0, %v4706_v47 }
 0x9af   :  { %v4609_v29 = vpop.f32.mrf.mxu3 }
 0x9b0   :  { %v4794_v35 = vadd.f32 %v4755_v62, %v7982_v42  ;;  %v4610_v32 = vadd.f32 %v8322_v6, %v4609_v29  ;;  %v4756_v9 = vpop.f32.mrf.mxu2 }
 0x9b1   :  { %v4661_v2 = vpop.f32.mrf.mxu0 }
 0x9b2   :  { %4810 = vst [vmem:[#allocation17] sm:$0xff] %v4794_v35  ;;  %v4659_v38 = vadd.f32 %v4658_v59, %v4610_v32  ;;  %v4710_v10 = vpop.f32.mrf.mxu1 }
 0x9b4   :  { %v4708_v3 = vadd.f32 %v4707_v46, %v4659_v38 }
 0x9b6   :  { %v4757_v15 = vadd.f32 %v4756_v9, %v4708_v3 }
 0x9b7   :  { %v4612_v51 = vpop.f32.mrf.mxu3 }
 0x9b8   :  { %v4795_v27 = vadd.f32 %v4757_v15, %v7987_v17  ;;  %v4613_v58 = vadd.f32 %v8322_v6, %v4612_v51  ;;  %v4759_v8 = vpop.f32.mrf.mxu2 }
 0x9b9   :  { %v4663_v18 = vpop.f32.mrf.mxu0 }
 0x9ba   :  { %4811 = vst [vmem:[#allocation17 + $0x8] sm:$0xff] %v4795_v27  ;;  %v4662_v13 = vadd.f32 %v4661_v2, %v4613_v58  ;;  %v4712_v52 = vpop.f32.mrf.mxu1 }
 0x9bc   :  { %v4711_v42 = vadd.f32 %v4710_v10, %v4662_v13 }
 0x9be   :  { %v4760_v26 = vadd.f32 %v4759_v8, %v4711_v42 }
 0x9bf   :  { %v4614_v63 = vpop.f32.mrf.mxu3 }
 0x9c0   :  { %v4796_v61 = vadd.f32 %v4760_v26, %v7994_v23  ;;  %v4615_v22 = vadd.f32 %v8322_v6, %v4614_v63  ;;  %v4761_v7 = vpop.f32.mrf.mxu2 }
 0x9c1   :  { %v4666_v21 = vpop.f32.mrf.mxu0 }
 0x9c2   :  { %4812 = vst [vmem:[#allocation17 + $0x10] sm:$0xff] %v4796_v61  ;;  %v4664_v25 = vadd.f32 %v4663_v18, %v4615_v22  ;;  %v4715_v54 = vpop.f32.mrf.mxu1 }
 0x9c4   :  { %v4713_v17 = vadd.f32 %v4712_v52, %v4664_v25 }
 0x9c6   :  { %v4762_v19 = vadd.f32 %v4761_v7, %v4713_v17 }
 0x9c7   :  { %v4617_v4 = vpop.f32.mrf.mxu3 }
 0x9c8   :  { %v4797_v33 = vadd.f32 %v4762_v19, %v7999_v5  ;;  %v4618_v56 = vadd.f32 %v8322_v6, %v4617_v4  ;;  %v4764_v1 = vpop.f32.mrf.mxu2 }
 0x9c9   :  { %v4668_v37 = vpop.f32.mrf.mxu0 }
 0x9ca   :  { %4813 = vst [vmem:[#allocation17 + $0x18] sm:$0xff] %v4797_v33  ;;  %v4667_v49 = vadd.f32 %v4666_v21, %v4618_v56  ;;  %v4717_v60 = vpop.f32.mrf.mxu1 }
 0x9cc   :  { %v4716_v23 = vadd.f32 %v4715_v54, %v4667_v49 }
 0x9ce   :  { %v4765_v20 = vadd.f32 %v4764_v1, %v4716_v23 }
 0x9cf   :  { %v4619_v39 = vpop.f32.mrf.mxu3 }
 0x9d0   :  { %v4798_v12 = vadd.f32 %v4765_v20, %v8003_v44  ;;  %v4620_v30 = vadd.f32 %v8322_v6, %v4619_v39  ;;  %v4766_v40 = vpop.f32.mrf.mxu2 }
 0x9d1   :  { %v4671_v31 = vpop.f32.mrf.mxu0 }
 0x9d2   :  { %4814 = vst [vmem:[#allocation17 + $0x20] sm:$0xff] %v4798_v12  ;;  %v4669_v28 = vadd.f32 %v4668_v37, %v4620_v30  ;;  %v4720_v36 = vpop.f32.mrf.mxu1 }
 0x9d4   :  { %v4718_v5 = vadd.f32 %v4717_v60, %v4669_v28 }
 0x9d6   :  { %v4767_v57 = vadd.f32 %v4766_v40, %v4718_v5 }
 0x9d7   :  { %v4622_v0 = vpop.f32.mrf.mxu3 }
 0x9d8   :  { %v4799_v59 = vadd.f32 %v4767_v57, %v8007_v16  ;;  %v4623_v24 = vadd.f32 %v8322_v6, %v4622_v0  ;;  %v4769_v46 = vpop.f32.mrf.mxu2 }
 0x9d9   :  { %v4673_v47 = vpop.f32.mrf.mxu0 }
 0x9da   :  { %4815 = vst [vmem:[#allocation17 + $0x28] sm:$0xff] %v4799_v59  ;;  %v4672_v62 = vadd.f32 %v4671_v31, %v4623_v24  ;;  %v4722_v29 = vpop.f32.mrf.mxu1 }
 0x9dc   :  { %v4721_v44 = vadd.f32 %v4720_v36, %v4672_v62 }
 0x9de   :  { %v4770_v35 = vadd.f32 %v4769_v46, %v4721_v44 }
 0x9df   :  { %v4624_v32 = vpop.f32.mrf.mxu3 }
 0x9e0   :  { %v4800_v9 = vadd.f32 %v4770_v35, %v8011_v45  ;;  %v4625_v2 = vadd.f32 %v8322_v6, %v4624_v32  ;;  %v4771_v38 = vpop.f32.mrf.mxu2 }
 0x9e1   :  { %v4676_v10 = vpop.f32.mrf.mxu0 }
 0x9e2   :  { %4816 = vst [vmem:[#allocation17 + $0x30] sm:$0xff] %v4800_v9  ;;  %v4674_v3 = vadd.f32 %v4673_v47, %v4625_v2  ;;  %v4725_v15 = vpop.f32.mrf.mxu1 }
 0x9e4   :  { %v4723_v16 = vadd.f32 %v4722_v29, %v4674_v3 }
 0x9e6   :  { %v4772_v51 = vadd.f32 %v4771_v38, %v4723_v16 }
 0x9e7   :  { %v4627_v27 = vpop.f32.mrf.mxu3 }
 0x9e8   :  { %v4801_v58 = vadd.f32 %v4772_v51, %v8025_v50  ;;  %v4628_v8 = vadd.f32 %v8322_v6, %v4627_v27  ;;  %v4774_v18 = vpop.f32.mrf.mxu2 }
 0x9e9   :  { %v4678_v13 = vpop.f32.mrf.mxu0 }
 0x9ea   :  { %4817 = vst [vmem:[#allocation17 + $0x38] sm:$0xff] %v4801_v58  ;;  %v4677_v52 = vadd.f32 %v4676_v10, %v4628_v8  ;;  %v4727_v42 = vpop.f32.mrf.mxu1 }
 0x9ec   :  { %v4726_v45 = vadd.f32 %v4725_v15, %v4677_v52 }
 0x9ee   :  { %v4775_v26 = vadd.f32 %v4774_v18, %v4726_v45 }
 0x9ef   :  { %v4629_v63 = vpop.f32.mrf.mxu3 }
 0x9f0   :  { %v4802_v61 = vadd.f32 %v4775_v26, %v8035_v53  ;;  %v4630_v22 = vadd.f32 %v8322_v6, %v4629_v63  ;;  %v4776_v7 = vpop.f32.mrf.mxu2 }
 0x9f1   :  { %v4681_v25 = vpop.f32.mrf.mxu0 }
 0x9f2   :  { %4818 = vst [vmem:[#allocation17 + $0x40] sm:$0xff] %v4802_v61  ;;  %v4679_v21 = vadd.f32 %v4678_v13, %v4630_v22  ;;  %v4730_v50 = vpop.f32.mrf.mxu1 }
 0x9f4   :  { %v4728_v54 = vadd.f32 %v4727_v42, %v4679_v21 }
 0x9f6   :  { %v4777_v17 = vadd.f32 %v4776_v7, %v4728_v54 }
 0x9f7   :  { %v4632_v19 = vpop.f32.mrf.mxu3 }
 0x9f8   :  { %v4803_v4 = vadd.f32 %v4777_v17, %v8045_v34  ;;  %v4633_v33 = vadd.f32 %v8322_v6, %v4632_v19  ;;  %v4779_v56 = vpop.f32.mrf.mxu2 }
 0x9f9   :  { %v4683_v49 = vpop.f32.mrf.mxu0 }
 0x9fa   :  { %4819 = vst [vmem:[#allocation17 + $0x48] sm:$0xff] %v4803_v4  ;;  %v4682_v1 = vadd.f32 %v4681_v25, %v4633_v33  ;;  %v4732_v60 = vpop.f32.mrf.mxu1 }
 0x9fc   :  { %v4731_v37 = vadd.f32 %v4730_v50, %v4682_v1 }
 0x9fe   :  { %v4780_v53 = vadd.f32 %v4779_v56, %v4731_v37 }
 0x9ff   :  { %v4634_v23 = vpop.f32.mrf.mxu3 }
 0xa00   :  { %v4804_v20 = vadd.f32 %v4780_v53, %v8055_v43  ;;  %v4635_v39 = vadd.f32 %v8322_v6, %v4634_v23  ;;  %v4781_v12 = vpop.f32.mrf.mxu2 }
 0xa01   :  { %v4686_v34 = vpop.f32.mrf.mxu0 }
 0xa02   :  { %4820 = vst [vmem:[#allocation17 + $0x50] sm:$0xff] %v4804_v20  ;;  %v4684_v30 = vadd.f32 %v4683_v49, %v4635_v39  ;;  %v4735_v57 = vpop.f32.mrf.mxu1 }
 0xa04   :  { %v4733_v40 = vadd.f32 %v4732_v60, %v4684_v30 }
 0xa06   :  { %v4782_v31 = vadd.f32 %v4781_v12, %v4733_v40 }
 0xa07   :  { %v4637_v28 = vpop.f32.mrf.mxu3 }
 0xa08   :  { %v4805_v36 = vadd.f32 %v4782_v31, %v8065_v48  ;;  %v4638_v5 = vadd.f32 %v8322_v6, %v4637_v28  ;;  %v4784_v59 = vpop.f32.mrf.mxu2 }
 0xa09   :  { %v4688_v29 = vpop.f32.mrf.mxu0 }
 0xa0a   :  { %4821 = vst [vmem:[#allocation17 + $0x58] sm:$0xff] %v4805_v36  ;;  %v4687_v0 = vadd.f32 %v4686_v34, %v4638_v5  ;;  %v4737_v35 = vpop.f32.mrf.mxu1 }
 0xa0c   :  { %v4736_v24 = vadd.f32 %v4735_v57, %v4687_v0 }
 0xa0e   :  { %v4785_v46 = vadd.f32 %v4784_v59, %v4736_v24 }
 0xa0f   :  { %v4639_v43 = vpop.f32.mrf.mxu3 }
 0xa10   :  { %v4806_v47 = vadd.f32 %v4785_v46, %v8071_v41  ;;  %v4640_v62 = vadd.f32 %v8322_v6, %v4639_v43  ;;  %v4786_v9 = vpop.f32.mrf.mxu2 }
 0xa12   :  { %4822 = vst [vmem:[#allocation17 + $0x60] sm:$0xff] %v4806_v47  ;;  %v4689_v44 = vadd.f32 %v4688_v29, %v4640_v62 }
 0xa14   :  { %v4738_v32 = vadd.f32 %v4737_v35, %v4689_v44 }
 0xa16   :  { %v4787_v48 = vadd.f32 %v4786_v9, %v4738_v32 }
 0xa18   :  { %v4807_v2 = vadd.f32 %v4787_v48, %v8081_v11 }
 0xa1a   :  { %4823 = vst [vmem:[#allocation17 + $0x68] sm:$0xff] %v4807_v2 }
 0xa1d   :  { %v4691_v38 = vpop.f32.mrf.mxu0 }
 0xa1e   :  { %v4740_v15 = vpop.f32.mrf.mxu1 }
 0xa25   :  { %v4693_v13 = vpop.f32.mrf.mxu0 }
 0xa26   :  { %v4742_v42 = vpop.f32.mrf.mxu1 }
 0xa29   :  { %v4642_v10 = vpop.f32.mrf.mxu3 }
 0xa2a   :  { %v4643_v3 = vadd.f32 %v8322_v6, %v4642_v10  ;;  %v4789_v51 = vpop.f32.mrf.mxu2 }
 0xa2c   :  { %v4692_v16 = vadd.f32 %v4691_v38, %v4643_v3 }
 0xa2e   :  { %v4741_v41 = vadd.f32 %v4740_v15, %v4692_v16 }
 0xa30   :  { %v4790_v27 = vadd.f32 %v4789_v51, %v4741_v41 }
 0xa31   :  { %v4644_v58 = vpop.f32.mrf.mxu3 }
 0xa32   :  { %v4808_v8 = vadd.f32 %v4790_v27, %v8085_v14  ;;  %v4645_v18 = vadd.f32 %v8322_v6, %v4644_v58  ;;  %v4791_v45 = vpop.f32.mrf.mxu2 }
 0xa34   :  { %4824 = vst [vmem:[#allocation17 + $0x70] sm:$0xff] %v4808_v8  ;;  %v4694_v52 = vadd.f32 %v4693_v13, %v4645_v18 }
 0xa36   :  { %v4743_v11 = vadd.f32 %v4742_v42, %v4694_v52 }
 0xa38   :  { %v4792_v26 = vadd.f32 %v4791_v45, %v4743_v11 }
 0xa3a   :  { %v4809_v63 = vadd.f32 %v4792_v26, %v8115_v55 }
 0xa3c   :  { %4825 = vst [vmem:[#allocation17 + $0x78] sm:$0xff] %v4809_v63 }
 0xa3d   :  { %4838 = dma.vmem_to_hbm [thread:$0]  %s4831_s27, 2048, %s4833_s4, [#allocation5], %s6038_s16, %s6038_s16, %s6039_s17  }
 0xa3e   :  { %6030 = dma.done.wait [#allocation5], 2048  }
 0xa3f   :  { %6031 = vsyncadd [#allocation5], 4294965248 }
 0xa40   :  { %4843 = vsyncpa [#allocation4], 1 }
 0xa41   :  { %4844 = vsyncpa [#allocation7], 1 }
 0xa42   :  { %4845 = vsyncpa [#allocation10], 1 }
 0xa43   :  { %4846 = vsyncpa [#allocation13], 1 }
 0xa44   :  { %4847 = vsyncpa [#allocation16], 1 }
 0xa45   :  { %4848 = vsyncpa [#allocation5], 1 }

</bundles_post_ra>
